<compile_context>
chip_gen: v5e
topology: v5e:2x2
jax: 0.10.0
libtpu: 0.0.40
codegen_flags: <defaults>
</compile_context>

<pallas_src>
import jax
import jax.numpy as jnp
from jax import lax
from jax.experimental import pallas as pl
from jax.experimental.pallas import tpu as pltpu

CP = 128          # channel / lane padding width
EPS = 1e-5


# ----------------------------------------------------------------------------
# Fused kernel
# ----------------------------------------------------------------------------
def _make_kernel(img, B):
    H1, H2, H3, F = img, img // 2, img // 4, img // 8

    def _pool(y, H, W, pool_ref):
        """2x2 max-pool.  y: (B*H*W, CP) f32 with rows ordered (b, h, w).
        Returns (B*H//2, W//2, CP) f32."""
        Ho, Wo = H // 2, W // 2
        yh = y.reshape(B * Ho, 2 * W, CP)
        pool_ref[...] = jnp.maximum(yh[:, :W, :], yh[:, W:, :])       # pool h
        return jnp.maximum(pool_ref[:, pl.ds(0, Wo, 2), :],
                           pool_ref[:, pl.ds(1, Wo, 2), :])           # pool w

    def _conv9(read_tap, w_ref, shift_ref, H, W):
        """3x3 conv (pad=1, BN scale folded) as 9 shifted-tap matmuls + ReLU."""
        M = B * H * W
        acc = None
        for t in range(9):
            kh, kw = divmod(t, 3)
            lhs = read_tap(kh, kw).reshape(M, CP)                     # bf16
            part = jnp.dot(lhs, w_ref[t], preferred_element_type=jnp.float32)
            acc = part if acc is None else acc + part
        return jnp.maximum(acc + shift_ref[...], 0.0)                 # (M, CP) f32

    def kernel(x_ref, w1_ref, s1_ref, w2_ref, s2_ref, w3_ref, s3_ref,
               fw1_ref, fb1_ref, fw2_ref, fb2_ref, o_ref,
               a2_ref, a3_ref, p1s_ref, p2s_ref, p3s_ref):
        # ---- layer 1: offline-packed im2col -> ONE (B*H*W,128)x(128,128) matmul
        lhs1 = x_ref[...].reshape(B * H1 * H1, CP)                    # bf16
        y1 = jnp.maximum(
            jnp.dot(lhs1, w1_ref[...], preferred_element_type=jnp.float32)
            + s1_ref[...], 0.0)
        p1 = _pool(y1, H1, H1, p1s_ref)                               # (B*H2, H2, CP)

        # zero-padded layer-2 input (halo re-zeroed each step; see header note)
        a2_ref[...] = jnp.zeros(a2_ref.shape, jnp.bfloat16)
        a2_ref[:, 1:1 + H2, 1:1 + H2, :] = (
            p1.reshape(B, H2, H2, CP).astype(jnp.bfloat16))

        # ---- layer 2: 9 shifted-tap matmuls, M = B*H2*H2 ----
        y2 = _conv9(lambda kh, kw: a2_ref[:, kh:kh + H2, kw:kw + H2, :],
                    w2_ref, s2_ref, H2, H2)
        p2 = _pool(y2, H2, H2, p2s_ref)                               # (B*H3, H3, CP)

        a3_ref[...] = jnp.zeros(a3_ref.shape, jnp.bfloat16)
        a3_ref[:, 1:1 + H3, 1:1 + H3, :] = (
            p2.reshape(B, H3, H3, CP).astype(jnp.bfloat16))

        # ---- layer 3 ----
        y3 = _conv9(lambda kh, kw: a3_ref[:, kh:kh + H3, kw:kw + H3, :],
                    w3_ref, s3_ref, H3, H3)
        p3 = _pool(y3, H3, H3, p3s_ref)                               # (B*F, F, CP)

        # ---- classifier: Flatten -> Linear -> ReLU -> Linear (one matmul each)
        p3b = p3.reshape(B, F, F, CP)
        flat = jnp.concatenate(
            [p3b[:, hh, ww, :] for hh in range(F) for ww in range(F)],
            axis=-1).astype(jnp.bfloat16)                             # (B, F*F*CP)
        h = jnp.maximum(
            jnp.dot(flat, fw1_ref[...], preferred_element_type=jnp.float32)
            + fb1_ref[...], 0.0)                                      # (B, HID)
        logits = jnp.dot(h.astype(jnp.bfloat16), fw2_ref[...],
                         preferred_element_type=jnp.float32) + fb2_ref[...]
        o_ref[0] = logits                                             # (B, CP)

    return kernel


# ----------------------------------------------------------------------------
# Offline parameter preparation (BN folding, padding, bf16, layout folding)
# ----------------------------------------------------------------------------
def prepare_params(params, eps=EPS):
    conv = []

    # --- layer 1: pack the 9 taps x cin along K (im2col in K) -> (CP, CP) ----
    lp = params["conv"][0]
    w = lp["w"]                                         # (3,3,cin,cout) HWIO
    cin, cout = w.shape[2], w.shape[3]
    inv = lp["gamma"] / jnp.sqrt(lp["var"] + eps)
    wf = (w * inv).reshape(9 * cin, cout)               # row = (kh*3+kw)*cin + c
    shift = lp["beta"] + inv * (lp["b"] - lp["mean"])
    conv.append(dict(
        w=jnp.pad(wf, ((0, CP - 9 * cin), (0, CP - cout))).astype(jnp.bfloat16),
        shift=jnp.pad(shift, (0, CP - cout)).reshape(1, CP).astype(jnp.float32)))

    # --- layers 2/3: BN scale folded, padded to (9, CP, CP) ------------------
    for lp in params["conv"][1:]:
        w = lp["w"]
        cin, cout = w.shape[2], w.shape[3]
        inv = lp["gamma"] / jnp.sqrt(lp["var"] + eps)
        wf = jnp.pad(w * inv, ((0, 0), (0, 0), (0, CP - cin), (0, CP - cout)))
        shift = lp["beta"] + inv * (lp["b"] - lp["mean"])
        conv.append(dict(
            w=wf.reshape(9, CP, CP).astype(jnp.bfloat16),
            shift=jnp.pad(shift, (0, CP - cout)).reshape(1, CP).astype(jnp.float32)))

    # --- fc1: fold NCHW-flatten perm, single flat (F*F*CP, HID) matrix -------
    w1 = params["w1"]                                   # rows ordered (c, h, w)
    hid = w1.shape[1]
    f = int(round((w1.shape[0] // CP) ** 0.5))
    fw1 = (w1.reshape(CP, f, f, hid)
             .transpose(1, 2, 0, 3)                     # rows -> (h, w, c)
             .reshape(f * f * CP, hid))
    nc = params["w2"].shape[1]
    return dict(
        conv=conv,
        fw1=fw1.astype(jnp.bfloat16),
        fb1=params["b1"].reshape(1, hid).astype(jnp.float32),
        fw2=jnp.pad(params["w2"], ((0, 0), (0, CP - nc))).astype(jnp.bfloat16),
        fb2=jnp.pad(params["b2"], (0, CP - nc)).reshape(1, CP).astype(jnp.float32),
    )


# ----------------------------------------------------------------------------
# Forward wrapper: one fused pallas_call, B images per grid step
# ----------------------------------------------------------------------------
def simple_cnn_forward(x_nchw, prep, num_classes=3, block_n=8):
    # TODO(synk): Dropout2d/Dropout are train-time stochastic ops; identity in eval.
    N, cin, H, W = x_nchw.shape
    assert H == W and H % 8 == 0, "spatial size must be divisible by 8"
    assert 9 * cin <= CP, "layer-1 im2col packing needs 9*cin <= 128"
    img = H

    # Images per grid step: amortize per-step overhead, but keep >= 2 steps when
    # N >= 2 so both v7x TensorCores receive work.
    B = int(max(1, min(block_n, pl.cdiv(N, 2))))
    G = int(pl.cdiv(N, B))
    N_pad = G * B

    # Pack layer-1 im2col offline: lanes [0, 9*cin) = 9 taps x cin channels.
    x = jnp.transpose(x_nchw, (0, 2, 3, 1))                      # NHWC
    xp = jnp.pad(x, ((0, 0), (1, 1), (1, 1), (0, 0)))            # spatial halo
    taps = [xp[:, kh:kh + img, kw:kw + img, :]
            for kh in range(3) for kw in range(3)]
    x1 = jnp.concatenate(taps, axis=-1)                          # (N, img, img, 9*cin)
    x1 = jnp.pad(x1, ((0, N_pad - N), (0, 0), (0, 0), (0, CP - 9 * cin)))
    x1 = x1.astype(jnp.bfloat16)

    c1, c2, c3 = prep["conv"]
    hid = prep["fb1"].shape[1]
    kfc = prep["fw1"].shape[0]                                   # F*F*CP
    H2, H3 = img // 2, img // 4

    grid_spec = pltpu.PrefetchScalarGridSpec(
        num_scalar_prefetch=0,
        grid=(G,),
        in_specs=[
            pl.BlockSpec((B, img, img, CP), lambda n: (n, 0, 0, 0)),   # packed input
            pl.BlockSpec((CP, CP), lambda n: (0, 0)),                  # conv1 packed W
            pl.BlockSpec((1, CP), lambda n: (0, 0)),
            pl.BlockSpec((9, CP, CP), lambda n: (0, 0, 0)),            # conv2 taps
            pl.BlockSpec((1, CP), lambda n: (0, 0)),
            pl.BlockSpec((9, CP, CP), lambda n: (0, 0, 0)),            # conv3 taps
            pl.BlockSpec((1, CP), lambda n: (0, 0)),
            pl.BlockSpec((kfc, hid), lambda n: (0, 0)),                # fc1
            pl.BlockSpec((1, hid), lambda n: (0, 0)),
            pl.BlockSpec((hid, CP), lambda n: (0, 0)),                 # fc2
            pl.BlockSpec((1, CP), lambda n: (0, 0)),
        ],
        out_specs=pl.BlockSpec((1, B, CP), lambda n: (n, 0, 0)),
        scratch_shapes=[
            pltpu.VMEM((B, H2 + 2, H2 + 2, CP), jnp.bfloat16),   # padded L2 input
            pltpu.VMEM((B, H3 + 2, H3 + 2, CP), jnp.bfloat16),   # padded L3 input
            pltpu.VMEM((B * (img // 2), img, CP), jnp.float32),  # pool scratch L1
            pltpu.VMEM((B * (img // 4), img // 2, CP), jnp.float32),   # L2
            pltpu.VMEM((B * (img // 8), img // 4, CP), jnp.float32),   # L3
        ],
    )

    out = pl.pallas_call(
        _make_kernel(img, B),
        out_shape=jax.ShapeDtypeStruct((G, B, CP), jnp.float32),
        grid_spec=grid_spec,
        compiler_params=pltpu.CompilerParams(
            dimension_semantics=("parallel",)),
    )(x1, c1["w"], c1["shift"], c2["w"], c2["shift"], c3["w"], c3["shift"],
      prep["fw1"], prep["fb1"], prep["fw2"], prep["fb2"])

    return out.reshape(N_pad, CP)[:N, :num_classes]


# ----------------------------------------------------------------------------
# Deterministic parameter init (shapes from SimpleCNN.__init__)
# ----------------------------------------------------------------------------
def init_params(key, num_classes=3, img_size=16):
    chans = [(3, 32), (32, 64), (64, 128)]
    keys = iter(jax.random.split(key, 6 * len(chans) + 4))
    conv_layers = []
    for cin, cout in chans:
        conv_layers.append(dict(
            w=jax.random.normal(next(keys), (3, 3, cin, cout), jnp.float32)
              * jnp.sqrt(2.0 / (9 * cin)),
            b=0.01 * jax.random.normal(next(keys), (cout,), jnp.float32),
            gamma=1.0 + 0.1 * jax.random.normal(next(keys), (cout,), jnp.float32),
            beta=0.1 * jax.random.normal(next(keys), (cout,), jnp.float32),
            mean=0.1 * jax.random.normal(next(keys), (cout,), jnp.float32),
            var=0.5 + jnp.abs(jax.random.normal(next(keys), (cout,), jnp.float32)),
        ))
    feat = 128 * (img_size // 8) * (img_size // 8)
    return dict(
        conv=conv_layers,
        w1=jax.random.normal(next(keys), (feat, 256), jnp.float32)
           * jnp.sqrt(2.0 / feat),
        b1=0.01 * jax.random.normal(next(keys), (256,), jnp.float32),
        w2=jax.random.normal(next(keys), (256, num_classes), jnp.float32)
           * jnp.sqrt(2.0 / 256),
        b2=0.01 * jax.random.normal(next(keys), (num_classes,), jnp.float32),
    )


# ----------------------------------------------------------------------------
# References
# ----------------------------------------------------------------------------
def reference_forward_f32(x_nchw, params, eps=EPS):
    """Exact eval-mode PyTorch semantics in f32 (loose sanity check)."""
    x = x_nchw
    for lp in params["conv"]:
        y = lax.conv_general_dilated(
            x, lp["w"], (1, 1), "SAME",
            dimension_numbers=("NCHW", "HWIO", "NCHW"),
            precision=lax.Precision.HIGHEST)
        y = y + lp["b"].reshape(1, -1, 1, 1)
        inv = (lp["gamma"] / jnp.sqrt(lp["var"] + eps)).reshape(1, -1, 1, 1)
        y = (y - lp["mean"].reshape(1, -1, 1, 1)) * inv \
            + lp["beta"].reshape(1, -1, 1, 1)
        y = jnp.maximum(y, 0.0)
        x = lax.reduce_window(y, -jnp.inf, lax.max,
                              (1, 1, 2, 2), (1, 1, 2, 2), "VALID")
    x = x.reshape(x.shape[0], -1)
    h = jnp.maximum(x @ params["w1"] + params["b1"], 0.0)
    return h @ params["w2"] + params["b2"]


def reference_forward_bf16(x_nchw, params, eps=EPS):
    """Mirrors the kernel numerics: BN scale folded into bf16 weights, bf16
    inter-layer activations, f32 accumulation (strict comparison basis)."""
    x = jnp.transpose(x_nchw, (0, 2, 3, 1)).astype(jnp.bfloat16)   # NHWC
    for lp in params["conv"]:
        inv = lp["gamma"] / jnp.sqrt(lp["var"] + eps)
        wf = (lp["w"] * inv).astype(jnp.bfloat16)
        shift = lp["beta"] + inv * (lp["b"] - lp["mean"])
        y = lax.conv_general_dilated(
            x, wf, (1, 1), "SAME",
            dimension_numbers=("NHWC", "HWIO", "NHWC"),
            preferred_element_type=jnp.float32)
        y = jnp.maximum(y + shift.reshape(1, 1, 1, -1), 0.0)
        y = lax.reduce_window(y, -jnp.inf, lax.max,
                              (1, 2, 2, 1), (1, 2, 2, 1), "VALID")
        x = y.astype(jnp.bfloat16)
    feats = jnp.transpose(x, (0, 3, 1, 2)).reshape(x.shape[0], -1)  # NCHW flatten
    h = jnp.dot(feats, params["w1"].astype(jnp.bfloat16),
                preferred_element_type=jnp.float32) + params["b1"]
    h = jnp.maximum(h, 0.0)
    return jnp.dot(h.astype(jnp.bfloat16), params["w2"].astype(jnp.bfloat16),
                   preferred_element_type=jnp.float32) + params["b2"]


if __name__ == "__main__":
    key = jax.random.PRNGKey(0)
    kx, kp = jax.random.split(key)

    N, C, IMG = 4, 3, 16                      # small shapes; img divisible by 8
    x = jax.random.normal(kx, (N, C, IMG, IMG), jnp.float32)
    params = init_params(kp, num_classes=3, img_size=IMG)
    prep = prepare_params(params)             # BN folding / packing done offline

    fwd = jax.jit(simple_cnn_forward)
    out = jax.block_until_ready(fwd(x, prep))
    assert out.shape == (N, 3), out.shape

    # Strict check against a reference using the same bf16 quantization.
    ref_q = reference_forward_bf16(x, params)
    err_q = float(jnp.max(jnp.abs(out - ref_q)))
    assert err_q < 2e-2, f"max abs diff vs bf16-matched reference: {err_q}"

    # Loose relative sanity check against the pure-f32 PyTorch semantics.
    ref_f = reference_forward_f32(x, params)
    rel = float(jnp.max(jnp.abs(out - ref_f))
                / jnp.maximum(1.0, jnp.max(jnp.abs(ref_f))))
    assert rel < 0.2, f"relative diff vs f32 reference: {rel}"

    print("KERNEL_OK")
</pallas_src>

<mosaic_0001>
module attributes {stable_mosaic.version = 11 : i64} {
  func.func @kernel(%arg0: i32, %arg1: memref<2x16x16x128xbf16, #tpu.memory_space<vmem>>, %arg2: memref<128x128xbf16, #tpu.memory_space<vmem>>, %arg3: memref<1x128xf32, #tpu.memory_space<vmem>>, %arg4: memref<9x128x128xbf16, #tpu.memory_space<vmem>>, %arg5: memref<1x128xf32, #tpu.memory_space<vmem>>, %arg6: memref<9x128x128xbf16, #tpu.memory_space<vmem>>, %arg7: memref<1x128xf32, #tpu.memory_space<vmem>>, %arg8: memref<512x256xbf16, #tpu.memory_space<vmem>>, %arg9: memref<1x256xf32, #tpu.memory_space<vmem>>, %arg10: memref<256x128xbf16, #tpu.memory_space<vmem>>, %arg11: memref<1x128xf32, #tpu.memory_space<vmem>>, %arg12: memref<1x2x128xf32, #tpu.memory_space<vmem>>, %arg13: memref<2x10x10x128xbf16, #tpu.memory_space<vmem>>, %arg14: memref<2x6x6x128xbf16, #tpu.memory_space<vmem>>, %arg15: memref<16x16x128xf32, #tpu.memory_space<vmem>>, %arg16: memref<8x8x128xf32, #tpu.memory_space<vmem>>, %arg17: memref<4x4x128xf32, #tpu.memory_space<vmem>>) attributes {dimension_semantics = [#tpu.dimension_semantics<parallel>], iteration_bounds = array<i64: 2>, scalar_prefetch = 0 : i64, scratch_operands = 5 : i64, tpu.core_type = #tpu.core_type<tc>, window_params = [{transform_indices = @transform_0, window_bounds = array<i64: 2, 16, 16, 128>}, {pipeline_mode = #tpu.pipeline_mode<synchronous>, transform_indices = @transform_1, window_bounds = array<i64: 128, 128>}, {pipeline_mode = #tpu.pipeline_mode<synchronous>, transform_indices = @transform_2, window_bounds = array<i64: 1, 128>}, {pipeline_mode = #tpu.pipeline_mode<synchronous>, transform_indices = @transform_3, window_bounds = array<i64: 9, 128, 128>}, {pipeline_mode = #tpu.pipeline_mode<synchronous>, transform_indices = @transform_4, window_bounds = array<i64: 1, 128>}, {pipeline_mode = #tpu.pipeline_mode<synchronous>, transform_indices = @transform_5, window_bounds = array<i64: 9, 128, 128>}, {pipeline_mode = #tpu.pipeline_mode<synchronous>, transform_indices = @transform_6, window_bounds = array<i64: 1, 128>}, {pipeline_mode = #tpu.pipeline_mode<synchronous>, transform_indices = @transform_7, window_bounds = array<i64: 512, 256>}, {pipeline_mode = #tpu.pipeline_mode<synchronous>, transform_indices = @transform_8, window_bounds = array<i64: 1, 256>}, {pipeline_mode = #tpu.pipeline_mode<synchronous>, transform_indices = @transform_9, window_bounds = array<i64: 256, 128>}, {pipeline_mode = #tpu.pipeline_mode<synchronous>, transform_indices = @transform_10, window_bounds = array<i64: 1, 128>}, {transform_indices = @transform_11, window_bounds = array<i64: 1, 2, 128>}]} {
    %c0 = arith.constant 0 : index
    %c0_0 = arith.constant 0 : index
    %c0_1 = arith.constant 0 : index
    %c0_2 = arith.constant 0 : index
    %0 = vector.load %arg1[%c0, %c0_0, %c0_1, %c0_2] : memref<2x16x16x128xbf16, #tpu.memory_space<vmem>>, vector<2x16x16x128xbf16>
    %1 = vector.shape_cast %0 : vector<2x16x16x128xbf16> to vector<512x128xbf16>
    %c0_3 = arith.constant 0 : index
    %c0_4 = arith.constant 0 : index
    %2 = vector.load %arg2[%c0_3, %c0_4] : memref<128x128xbf16, #tpu.memory_space<vmem>>, vector<128x128xbf16>
    %cst = arith.constant dense<0.000000e+00> : vector<512x128xf32>
    %3 = tpu.matmul %1, %2, %cst {dimension_numbers = #tpu.dot_dimension_numbers<[1], [0], [0], [1], [0, 0, 1, 1], [], []>} : vector<512x128xbf16>, vector<128x128xbf16>, vector<512x128xf32> -> vector<512x128xf32>
    %c0_5 = arith.constant 0 : index
    %c0_6 = arith.constant 0 : index
    %4 = vector.load %arg3[%c0_5, %c0_6] : memref<1x128xf32, #tpu.memory_space<vmem>>, vector<1x128xf32>
    %5 = vector.broadcast %4 : vector<1x128xf32> to vector<512x128xf32>
    %6 = arith.addf %3, %5 : vector<512x128xf32>
    %cst_7 = arith.constant 0.000000e+00 : f32
    %7 = vector.broadcast %cst_7 : f32 to vector<512x128xf32>
    %8 = arith.maximumf %6, %7 : vector<512x128xf32>
    %9 = vector.shape_cast %8 : vector<512x128xf32> to vector<16x32x128xf32>
    %10 = vector.extract_strided_slice %9 {offsets = [0, 0, 0], sizes = [16, 16, 128], strides = [1, 1, 1]} : vector<16x32x128xf32> to vector<16x16x128xf32>
    %11 = vector.extract_strided_slice %9 {offsets = [0, 16, 0], sizes = [16, 16, 128], strides = [1, 1, 1]} : vector<16x32x128xf32> to vector<16x16x128xf32>
    %12 = arith.maximumf %10, %11 : vector<16x16x128xf32>
    %c0_8 = arith.constant 0 : index
    %c0_9 = arith.constant 0 : index
    %c0_10 = arith.constant 0 : index
    %13 = vector.load %arg15[%c0_8, %c0_9, %c0_10] : memref<16x16x128xf32, #tpu.memory_space<vmem>>, vector<16x16x128xf32>
    tpu.vector_store %arg15[%c0_8, %c0_9, %c0_10], %12 {strides = array<i32>} : memref<16x16x128xf32, #tpu.memory_space<vmem>>, vector<16x16x128xf32>,
    %c0_11 = arith.constant 0 : index
    %c0_12 = arith.constant 0 : index
    %c0_13 = arith.constant 0 : index
    %14 = tpu.strided_load %arg15[%c0_11, %c0_12, %c0_13] {strides = array<i32: 1, 2, 1>} : memref<16x16x128xf32, #tpu.memory_space<vmem>>, vector<16x8x128xf32>
    %c0_14 = arith.constant 0 : index
    %c1 = arith.constant 1 : index
    %c0_15 = arith.constant 0 : index
    %15 = tpu.strided_load %arg15[%c0_14, %c1, %c0_15] {strides = array<i32: 1, 2, 1>} : memref<16x16x128xf32, #tpu.memory_space<vmem>>, vector<16x8x128xf32>
    %16 = arith.maximumf %14, %15 : vector<16x8x128xf32>
    %cst_16 = arith.constant 0.000000e+00 : bf16
    %17 = vector.broadcast %cst_16 : bf16 to vector<2x10x10x128xbf16>
    %c0_17 = arith.constant 0 : index
    %c0_18 = arith.constant 0 : index
    %c0_19 = arith.constant 0 : index
    %c0_20 = arith.constant 0 : index
    %18 = vector.load %arg13[%c0_17, %c0_18, %c0_19, %c0_20] : memref<2x10x10x128xbf16, #tpu.memory_space<vmem>>, vector<2x10x10x128xbf16>
    tpu.vector_store %arg13[%c0_17, %c0_18, %c0_19, %c0_20], %17 {strides = array<i32>} : memref<2x10x10x128xbf16, #tpu.memory_space<vmem>>, vector<2x10x10x128xbf16>,
    %19 = vector.shape_cast %16 : vector<16x8x128xf32> to vector<2x8x8x128xf32>
    %20 = arith.truncf %19 : vector<2x8x8x128xf32> to vector<2x8x8x128xbf16>
    %c0_21 = arith.constant 0 : index
    %c1_22 = arith.constant 1 : index
    %c1_23 = arith.constant 1 : index
    %c0_24 = arith.constant 0 : index
    %21 = vector.load %arg13[%c0_21, %c1_22, %c1_23, %c0_24] : memref<2x10x10x128xbf16, #tpu.memory_space<vmem>>, vector<2x8x8x128xbf16>
    tpu.vector_store %arg13[%c0_21, %c1_22, %c1_23, %c0_24], %20 {strides = array<i32>} : memref<2x10x10x128xbf16, #tpu.memory_space<vmem>>, vector<2x8x8x128xbf16>,
    %c0_25 = arith.constant 0 : index
    %c0_26 = arith.constant 0 : index
    %c0_27 = arith.constant 0 : index
    %c0_28 = arith.constant 0 : index
    %22 = vector.load %arg13[%c0_25, %c0_26, %c0_27, %c0_28] : memref<2x10x10x128xbf16, #tpu.memory_space<vmem>>, vector<2x8x8x128xbf16>
    %23 = vector.shape_cast %22 : vector<2x8x8x128xbf16> to vector<128x128xbf16>
    %c0_29 = arith.constant 0 : index
    %c0_30 = arith.constant 0 : index
    %c0_31 = arith.constant 0 : index
    %24 = vector.load %arg4[%c0_29, %c0_30, %c0_31] : memref<9x128x128xbf16, #tpu.memory_space<vmem>>, vector<1x128x128xbf16>
    %25 = vector.shape_cast %24 : vector<1x128x128xbf16> to vector<128x128xbf16>
    %cst_32 = arith.constant dense<0.000000e+00> : vector<128x128xf32>
    %26 = tpu.matmul %23, %25, %cst_32 {dimension_numbers = #tpu.dot_dimension_numbers<[1], [0], [0], [1], [0, 0, 1, 1], [], []>} : vector<128x128xbf16>, vector<128x128xbf16>, vector<128x128xf32> -> vector<128x128xf32>
    %c0_33 = arith.constant 0 : index
    %c0_34 = arith.constant 0 : index
    %c1_35 = arith.constant 1 : index
    %c0_36 = arith.constant 0 : index
    %27 = vector.load %arg13[%c0_33, %c0_34, %c1_35, %c0_36] : memref<2x10x10x128xbf16, #tpu.memory_space<vmem>>, vector<2x8x8x128xbf16>
    %28 = vector.shape_cast %27 : vector<2x8x8x128xbf16> to vector<128x128xbf16>
    %c1_37 = arith.constant 1 : index
    %c0_38 = arith.constant 0 : index
    %c0_39 = arith.constant 0 : index
    %29 = vector.load %arg4[%c1_37, %c0_38, %c0_39] : memref<9x128x128xbf16, #tpu.memory_space<vmem>>, vector<1x128x128xbf16>
    %30 = vector.shape_cast %29 : vector<1x128x128xbf16> to vector<128x128xbf16>
    %cst_40 = arith.constant dense<0.000000e+00> : vector<128x128xf32>
    %31 = tpu.matmul %28, %30, %cst_40 {dimension_numbers = #tpu.dot_dimension_numbers<[1], [0], [0], [1], [0, 0, 1, 1], [], []>} : vector<128x128xbf16>, vector<128x128xbf16>, vector<128x128xf32> -> vector<128x128xf32>
    %32 = arith.addf %26, %31 : vector<128x128xf32>
    %c0_41 = arith.constant 0 : index
    %c0_42 = arith.constant 0 : index
    %c2 = arith.constant 2 : index
    %c0_43 = arith.constant 0 : index
    %33 = vector.load %arg13[%c0_41, %c0_42, %c2, %c0_43] : memref<2x10x10x128xbf16, #tpu.memory_space<vmem>>, vector<2x8x8x128xbf16>
    %34 = vector.shape_cast %33 : vector<2x8x8x128xbf16> to vector<128x128xbf16>
    %c2_44 = arith.constant 2 : index
    %c0_45 = arith.constant 0 : index
    %c0_46 = arith.constant 0 : index
    %35 = vector.load %arg4[%c2_44, %c0_45, %c0_46] : memref<9x128x128xbf16, #tpu.memory_space<vmem>>, vector<1x128x128xbf16>
    %36 = vector.shape_cast %35 : vector<1x128x128xbf16> to vector<128x128xbf16>
    %cst_47 = arith.constant dense<0.000000e+00> : vector<128x128xf32>
    %37 = tpu.matmul %34, %36, %cst_47 {dimension_numbers = #tpu.dot_dimension_numbers<[1], [0], [0], [1], [0, 0, 1, 1], [], []>} : vector<128x128xbf16>, vector<128x128xbf16>, vector<128x128xf32> -> vector<128x128xf32>
    %38 = arith.addf %32, %37 : vector<128x128xf32>
    %c0_48 = arith.constant 0 : index
    %c1_49 = arith.constant 1 : index
    %c0_50 = arith.constant 0 : index
    %c0_51 = arith.constant 0 : index
    %39 = vector.load %arg13[%c0_48, %c1_49, %c0_50, %c0_51] : memref<2x10x10x128xbf16, #tpu.memory_space<vmem>>, vector<2x8x8x128xbf16>
    %40 = vector.shape_cast %39 : vector<2x8x8x128xbf16> to vector<128x128xbf16>
    %c3 = arith.constant 3 : index
    %c0_52 = arith.constant 0 : index
    %c0_53 = arith.constant 0 : index
    %41 = vector.load %arg4[%c3, %c0_52, %c0_53] : memref<9x128x128xbf16, #tpu.memory_space<vmem>>, vector<1x128x128xbf16>
    %42 = vector.shape_cast %41 : vector<1x128x128xbf16> to vector<128x128xbf16>
    %cst_54 = arith.constant dense<0.000000e+00> : vector<128x128xf32>
    %43 = tpu.matmul %40, %42, %cst_54 {dimension_numbers = #tpu.dot_dimension_numbers<[1], [0], [0], [1], [0, 0, 1, 1], [], []>} : vector<128x128xbf16>, vector<128x128xbf16>, vector<128x128xf32> -> vector<128x128xf32>
    %44 = arith.addf %38, %43 : vector<128x128xf32>
    %c0_55 = arith.constant 0 : index
    %c1_56 = arith.constant 1 : index
    %c1_57 = arith.constant 1 : index
    %c0_58 = arith.constant 0 : index
    %45 = vector.load %arg13[%c0_55, %c1_56, %c1_57, %c0_58] : memref<2x10x10x128xbf16, #tpu.memory_space<vmem>>, vector<2x8x8x128xbf16>
    %46 = vector.shape_cast %45 : vector<2x8x8x128xbf16> to vector<128x128xbf16>
    %c4 = arith.constant 4 : index
    %c0_59 = arith.constant 0 : index
    %c0_60 = arith.constant 0 : index
    %47 = vector.load %arg4[%c4, %c0_59, %c0_60] : memref<9x128x128xbf16, #tpu.memory_space<vmem>>, vector<1x128x128xbf16>
    %48 = vector.shape_cast %47 : vector<1x128x128xbf16> to vector<128x128xbf16>
    %cst_61 = arith.constant dense<0.000000e+00> : vector<128x128xf32>
    %49 = tpu.matmul %46, %48, %cst_61 {dimension_numbers = #tpu.dot_dimension_numbers<[1], [0], [0], [1], [0, 0, 1, 1], [], []>} : vector<128x128xbf16>, vector<128x128xbf16>, vector<128x128xf32> -> vector<128x128xf32>
    %50 = arith.addf %44, %49 : vector<128x128xf32>
    %c0_62 = arith.constant 0 : index
    %c1_63 = arith.constant 1 : index
    %c2_64 = arith.constant 2 : index
    %c0_65 = arith.constant 0 : index
    %51 = vector.load %arg13[%c0_62, %c1_63, %c2_64, %c0_65] : memref<2x10x10x128xbf16, #tpu.memory_space<vmem>>, vector<2x8x8x128xbf16>
    %52 = vector.shape_cast %51 : vector<2x8x8x128xbf16> to vector<128x128xbf16>
    %c5 = arith.constant 5 : index
    %c0_66 = arith.constant 0 : index
    %c0_67 = arith.constant 0 : index
    %53 = vector.load %arg4[%c5, %c0_66, %c0_67] : memref<9x128x128xbf16, #tpu.memory_space<vmem>>, vector<1x128x128xbf16>
    %54 = vector.shape_cast %53 : vector<1x128x128xbf16> to vector<128x128xbf16>
    %cst_68 = arith.constant dense<0.000000e+00> : vector<128x128xf32>
    %55 = tpu.matmul %52, %54, %cst_68 {dimension_numbers = #tpu.dot_dimension_numbers<[1], [0], [0], [1], [0, 0, 1, 1], [], []>} : vector<128x128xbf16>, vector<128x128xbf16>, vector<128x128xf32> -> vector<128x128xf32>
    %56 = arith.addf %50, %55 : vector<128x128xf32>
    %c0_69 = arith.constant 0 : index
    %c2_70 = arith.constant 2 : index
    %c0_71 = arith.constant 0 : index
    %c0_72 = arith.constant 0 : index
    %57 = vector.load %arg13[%c0_69, %c2_70, %c0_71, %c0_72] : memref<2x10x10x128xbf16, #tpu.memory_space<vmem>>, vector<2x8x8x128xbf16>
    %58 = vector.shape_cast %57 : vector<2x8x8x128xbf16> to vector<128x128xbf16>
    %c6 = arith.constant 6 : index
    %c0_73 = arith.constant 0 : index
    %c0_74 = arith.constant 0 : index
    %59 = vector.load %arg4[%c6, %c0_73, %c0_74] : memref<9x128x128xbf16, #tpu.memory_space<vmem>>, vector<1x128x128xbf16>
    %60 = vector.shape_cast %59 : vector<1x128x128xbf16> to vector<128x128xbf16>
    %cst_75 = arith.constant dense<0.000000e+00> : vector<128x128xf32>
    %61 = tpu.matmul %58, %60, %cst_75 {dimension_numbers = #tpu.dot_dimension_numbers<[1], [0], [0], [1], [0, 0, 1, 1], [], []>} : vector<128x128xbf16>, vector<128x128xbf16>, vector<128x128xf32> -> vector<128x128xf32>
    %62 = arith.addf %56, %61 : vector<128x128xf32>
    %c0_76 = arith.constant 0 : index
    %c2_77 = arith.constant 2 : index
    %c1_78 = arith.constant 1 : index
    %c0_79 = arith.constant 0 : index
    %63 = vector.load %arg13[%c0_76, %c2_77, %c1_78, %c0_79] : memref<2x10x10x128xbf16, #tpu.memory_space<vmem>>, vector<2x8x8x128xbf16>
    %64 = vector.shape_cast %63 : vector<2x8x8x128xbf16> to vector<128x128xbf16>
    %c7 = arith.constant 7 : index
    %c0_80 = arith.constant 0 : index
    %c0_81 = arith.constant 0 : index
    %65 = vector.load %arg4[%c7, %c0_80, %c0_81] : memref<9x128x128xbf16, #tpu.memory_space<vmem>>, vector<1x128x128xbf16>
    %66 = vector.shape_cast %65 : vector<1x128x128xbf16> to vector<128x128xbf16>
    %cst_82 = arith.constant dense<0.000000e+00> : vector<128x128xf32>
    %67 = tpu.matmul %64, %66, %cst_82 {dimension_numbers = #tpu.dot_dimension_numbers<[1], [0], [0], [1], [0, 0, 1, 1], [], []>} : vector<128x128xbf16>, vector<128x128xbf16>, vector<128x128xf32> -> vector<128x128xf32>
    %68 = arith.addf %62, %67 : vector<128x128xf32>
    %c0_83 = arith.constant 0 : index
    %c2_84 = arith.constant 2 : index
    %c2_85 = arith.constant 2 : index
    %c0_86 = arith.constant 0 : index
    %69 = vector.load %arg13[%c0_83, %c2_84, %c2_85, %c0_86] : memref<2x10x10x128xbf16, #tpu.memory_space<vmem>>, vector<2x8x8x128xbf16>
    %70 = vector.shape_cast %69 : vector<2x8x8x128xbf16> to vector<128x128xbf16>
    %c8 = arith.constant 8 : index
    %c0_87 = arith.constant 0 : index
    %c0_88 = arith.constant 0 : index
    %71 = vector.load %arg4[%c8, %c0_87, %c0_88] : memref<9x128x128xbf16, #tpu.memory_space<vmem>>, vector<1x128x128xbf16>
    %72 = vector.shape_cast %71 : vector<1x128x128xbf16> to vector<128x128xbf16>
    %cst_89 = arith.constant dense<0.000000e+00> : vector<128x128xf32>
    %73 = tpu.matmul %70, %72, %cst_89 {dimension_numbers = #tpu.dot_dimension_numbers<[1], [0], [0], [1], [0, 0, 1, 1], [], []>} : vector<128x128xbf16>, vector<128x128xbf16>, vector<128x128xf32> -> vector<128x128xf32>
    %74 = arith.addf %68, %73 : vector<128x128xf32>
    %c0_90 = arith.constant 0 : index
    %c0_91 = arith.constant 0 : index
    %75 = vector.load %arg5[%c0_90, %c0_91] : memref<1x128xf32, #tpu.memory_space<vmem>>, vector<1x128xf32>
    %76 = vector.broadcast %75 : vector<1x128xf32> to vector<128x128xf32>
    %77 = arith.addf %74, %76 : vector<128x128xf32>
    %cst_92 = arith.constant 0.000000e+00 : f32
    %78 = vector.broadcast %cst_92 : f32 to vector<128x128xf32>
    %79 = arith.maximumf %77, %78 : vector<128x128xf32>
    %80 = vector.shape_cast %79 : vector<128x128xf32> to vector<8x16x128xf32>
    %81 = vector.extract_strided_slice %80 {offsets = [0, 0, 0], sizes = [8, 8, 128], strides = [1, 1, 1]} : vector<8x16x128xf32> to vector<8x8x128xf32>
    %82 = vector.extract_strided_slice %80 {offsets = [0, 8, 0], sizes = [8, 8, 128], strides = [1, 1, 1]} : vector<8x16x128xf32> to vector<8x8x128xf32>
    %83 = arith.maximumf %81, %82 : vector<8x8x128xf32>
    %c0_93 = arith.constant 0 : index
    %c0_94 = arith.constant 0 : index
    %c0_95 = arith.constant 0 : index
    %84 = vector.load %arg16[%c0_93, %c0_94, %c0_95] : memref<8x8x128xf32, #tpu.memory_space<vmem>>, vector<8x8x128xf32>
    tpu.vector_store %arg16[%c0_93, %c0_94, %c0_95], %83 {strides = array<i32>} : memref<8x8x128xf32, #tpu.memory_space<vmem>>, vector<8x8x128xf32>,
    %c0_96 = arith.constant 0 : index
    %c0_97 = arith.constant 0 : index
    %c0_98 = arith.constant 0 : index
    %85 = tpu.strided_load %arg16[%c0_96, %c0_97, %c0_98] {strides = array<i32: 1, 2, 1>} : memref<8x8x128xf32, #tpu.memory_space<vmem>>, vector<8x4x128xf32>
    %c0_99 = arith.constant 0 : index
    %c1_100 = arith.constant 1 : index
    %c0_101 = arith.constant 0 : index
    %86 = tpu.strided_load %arg16[%c0_99, %c1_100, %c0_101] {strides = array<i32: 1, 2, 1>} : memref<8x8x128xf32, #tpu.memory_space<vmem>>, vector<8x4x128xf32>
    %87 = arith.maximumf %85, %86 : vector<8x4x128xf32>
    %cst_102 = arith.constant 0.000000e+00 : bf16
    %88 = vector.broadcast %cst_102 : bf16 to vector<2x6x6x128xbf16>
    %c0_103 = arith.constant 0 : index
    %c0_104 = arith.constant 0 : index
    %c0_105 = arith.constant 0 : index
    %c0_106 = arith.constant 0 : index
    %89 = vector.load %arg14[%c0_103, %c0_104, %c0_105, %c0_106] : memref<2x6x6x128xbf16, #tpu.memory_space<vmem>>, vector<2x6x6x128xbf16>
    tpu.vector_store %arg14[%c0_103, %c0_104, %c0_105, %c0_106], %88 {strides = array<i32>} : memref<2x6x6x128xbf16, #tpu.memory_space<vmem>>, vector<2x6x6x128xbf16>,
    %90 = vector.shape_cast %87 : vector<8x4x128xf32> to vector<2x4x4x128xf32>
    %91 = arith.truncf %90 : vector<2x4x4x128xf32> to vector<2x4x4x128xbf16>
    %c0_107 = arith.constant 0 : index
    %c1_108 = arith.constant 1 : index
    %c1_109 = arith.constant 1 : index
    %c0_110 = arith.constant 0 : index
    %92 = vector.load %arg14[%c0_107, %c1_108, %c1_109, %c0_110] : memref<2x6x6x128xbf16, #tpu.memory_space<vmem>>, vector<2x4x4x128xbf16>
    tpu.vector_store %arg14[%c0_107, %c1_108, %c1_109, %c0_110], %91 {strides = array<i32>} : memref<2x6x6x128xbf16, #tpu.memory_space<vmem>>, vector<2x4x4x128xbf16>,
    %c0_111 = arith.constant 0 : index
    %c0_112 = arith.constant 0 : index
    %c0_113 = arith.constant 0 : index
    %c0_114 = arith.constant 0 : index
    %93 = vector.load %arg14[%c0_111, %c0_112, %c0_113, %c0_114] : memref<2x6x6x128xbf16, #tpu.memory_space<vmem>>, vector<2x4x4x128xbf16>
    %94 = vector.shape_cast %93 : vector<2x4x4x128xbf16> to vector<32x128xbf16>
    %c0_115 = arith.constant 0 : index
    %c0_116 = arith.constant 0 : index
    %c0_117 = arith.constant 0 : index
    %95 = vector.load %arg6[%c0_115, %c0_116, %c0_117] : memref<9x128x128xbf16, #tpu.memory_space<vmem>>, vector<1x128x128xbf16>
    %96 = vector.shape_cast %95 : vector<1x128x128xbf16> to vector<128x128xbf16>
    %cst_118 = arith.constant dense<0.000000e+00> : vector<32x128xf32>
    %97 = tpu.matmul %94, %96, %cst_118 {dimension_numbers = #tpu.dot_dimension_numbers<[1], [0], [0], [1], [0, 0, 1, 1], [], []>} : vector<32x128xbf16>, vector<128x128xbf16>, vector<32x128xf32> -> vector<32x128xf32>
    %c0_119 = arith.constant 0 : index
    %c0_120 = arith.constant 0 : index
    %c1_121 = arith.constant 1 : index
    %c0_122 = arith.constant 0 : index
    %98 = vector.load %arg14[%c0_119, %c0_120, %c1_121, %c0_122] : memref<2x6x6x128xbf16, #tpu.memory_space<vmem>>, vector<2x4x4x128xbf16>
    %99 = vector.shape_cast %98 : vector<2x4x4x128xbf16> to vector<32x128xbf16>
    %c1_123 = arith.constant 1 : index
    %c0_124 = arith.constant 0 : index
    %c0_125 = arith.constant 0 : index
    %100 = vector.load %arg6[%c1_123, %c0_124, %c0_125] : memref<9x128x128xbf16, #tpu.memory_space<vmem>>, vector<1x128x128xbf16>
    %101 = vector.shape_cast %100 : vector<1x128x128xbf16> to vector<128x128xbf16>
    %cst_126 = arith.constant dense<0.000000e+00> : vector<32x128xf32>
    %102 = tpu.matmul %99, %101, %cst_126 {dimension_numbers = #tpu.dot_dimension_numbers<[1], [0], [0], [1], [0, 0, 1, 1], [], []>} : vector<32x128xbf16>, vector<128x128xbf16>, vector<32x128xf32> -> vector<32x128xf32>
    %103 = arith.addf %97, %102 : vector<32x128xf32>
    %c0_127 = arith.constant 0 : index
    %c0_128 = arith.constant 0 : index
    %c2_129 = arith.constant 2 : index
    %c0_130 = arith.constant 0 : index
    %104 = vector.load %arg14[%c0_127, %c0_128, %c2_129, %c0_130] : memref<2x6x6x128xbf16, #tpu.memory_space<vmem>>, vector<2x4x4x128xbf16>
    %105 = vector.shape_cast %104 : vector<2x4x4x128xbf16> to vector<32x128xbf16>
    %c2_131 = arith.constant 2 : index
    %c0_132 = arith.constant 0 : index
    %c0_133 = arith.constant 0 : index
    %106 = vector.load %arg6[%c2_131, %c0_132, %c0_133] : memref<9x128x128xbf16, #tpu.memory_space<vmem>>, vector<1x128x128xbf16>
    %107 = vector.shape_cast %106 : vector<1x128x128xbf16> to vector<128x128xbf16>
    %cst_134 = arith.constant dense<0.000000e+00> : vector<32x128xf32>
    %108 = tpu.matmul %105, %107, %cst_134 {dimension_numbers = #tpu.dot_dimension_numbers<[1], [0], [0], [1], [0, 0, 1, 1], [], []>} : vector<32x128xbf16>, vector<128x128xbf16>, vector<32x128xf32> -> vector<32x128xf32>
    %109 = arith.addf %103, %108 : vector<32x128xf32>
    %c0_135 = arith.constant 0 : index
    %c1_136 = arith.constant 1 : index
    %c0_137 = arith.constant 0 : index
    %c0_138 = arith.constant 0 : index
    %110 = vector.load %arg14[%c0_135, %c1_136, %c0_137, %c0_138] : memref<2x6x6x128xbf16, #tpu.memory_space<vmem>>, vector<2x4x4x128xbf16>
    %111 = vector.shape_cast %110 : vector<2x4x4x128xbf16> to vector<32x128xbf16>
    %c3_139 = arith.constant 3 : index
    %c0_140 = arith.constant 0 : index
    %c0_141 = arith.constant 0 : index
    %112 = vector.load %arg6[%c3_139, %c0_140, %c0_141] : memref<9x128x128xbf16, #tpu.memory_space<vmem>>, vector<1x128x128xbf16>
    %113 = vector.shape_cast %112 : vector<1x128x128xbf16> to vector<128x128xbf16>
    %cst_142 = arith.constant dense<0.000000e+00> : vector<32x128xf32>
    %114 = tpu.matmul %111, %113, %cst_142 {dimension_numbers = #tpu.dot_dimension_numbers<[1], [0], [0], [1], [0, 0, 1, 1], [], []>} : vector<32x128xbf16>, vector<128x128xbf16>, vector<32x128xf32> -> vector<32x128xf32>
    %115 = arith.addf %109, %114 : vector<32x128xf32>
    %c0_143 = arith.constant 0 : index
    %c1_144 = arith.constant 1 : index
    %c1_145 = arith.constant 1 : index
    %c0_146 = arith.constant 0 : index
    %116 = vector.load %arg14[%c0_143, %c1_144, %c1_145, %c0_146] : memref<2x6x6x128xbf16, #tpu.memory_space<vmem>>, vector<2x4x4x128xbf16>
    %117 = vector.shape_cast %116 : vector<2x4x4x128xbf16> to vector<32x128xbf16>
    %c4_147 = arith.constant 4 : index
    %c0_148 = arith.constant 0 : index
    %c0_149 = arith.constant 0 : index
    %118 = vector.load %arg6[%c4_147, %c0_148, %c0_149] : memref<9x128x128xbf16, #tpu.memory_space<vmem>>, vector<1x128x128xbf16>
    %119 = vector.shape_cast %118 : vector<1x128x128xbf16> to vector<128x128xbf16>
    %cst_150 = arith.constant dense<0.000000e+00> : vector<32x128xf32>
    %120 = tpu.matmul %117, %119, %cst_150 {dimension_numbers = #tpu.dot_dimension_numbers<[1], [0], [0], [1], [0, 0, 1, 1], [], []>} : vector<32x128xbf16>, vector<128x128xbf16>, vector<32x128xf32> -> vector<32x128xf32>
    %121 = arith.addf %115, %120 : vector<32x128xf32>
    %c0_151 = arith.constant 0 : index
    %c1_152 = arith.constant 1 : index
    %c2_153 = arith.constant 2 : index
    %c0_154 = arith.constant 0 : index
    %122 = vector.load %arg14[%c0_151, %c1_152, %c2_153, %c0_154] : memref<2x6x6x128xbf16, #tpu.memory_space<vmem>>, vector<2x4x4x128xbf16>
    %123 = vector.shape_cast %122 : vector<2x4x4x128xbf16> to vector<32x128xbf16>
    %c5_155 = arith.constant 5 : index
    %c0_156 = arith.constant 0 : index
    %c0_157 = arith.constant 0 : index
    %124 = vector.load %arg6[%c5_155, %c0_156, %c0_157] : memref<9x128x128xbf16, #tpu.memory_space<vmem>>, vector<1x128x128xbf16>
    %125 = vector.shape_cast %124 : vector<1x128x128xbf16> to vector<128x128xbf16>
    %cst_158 = arith.constant dense<0.000000e+00> : vector<32x128xf32>
    %126 = tpu.matmul %123, %125, %cst_158 {dimension_numbers = #tpu.dot_dimension_numbers<[1], [0], [0], [1], [0, 0, 1, 1], [], []>} : vector<32x128xbf16>, vector<128x128xbf16>, vector<32x128xf32> -> vector<32x128xf32>
    %127 = arith.addf %121, %126 : vector<32x128xf32>
    %c0_159 = arith.constant 0 : index
    %c2_160 = arith.constant 2 : index
    %c0_161 = arith.constant 0 : index
    %c0_162 = arith.constant 0 : index
    %128 = vector.load %arg14[%c0_159, %c2_160, %c0_161, %c0_162] : memref<2x6x6x128xbf16, #tpu.memory_space<vmem>>, vector<2x4x4x128xbf16>
    %129 = vector.shape_cast %128 : vector<2x4x4x128xbf16> to vector<32x128xbf16>
    %c6_163 = arith.constant 6 : index
    %c0_164 = arith.constant 0 : index
    %c0_165 = arith.constant 0 : index
    %130 = vector.load %arg6[%c6_163, %c0_164, %c0_165] : memref<9x128x128xbf16, #tpu.memory_space<vmem>>, vector<1x128x128xbf16>
    %131 = vector.shape_cast %130 : vector<1x128x128xbf16> to vector<128x128xbf16>
    %cst_166 = arith.constant dense<0.000000e+00> : vector<32x128xf32>
    %132 = tpu.matmul %129, %131, %cst_166 {dimension_numbers = #tpu.dot_dimension_numbers<[1], [0], [0], [1], [0, 0, 1, 1], [], []>} : vector<32x128xbf16>, vector<128x128xbf16>, vector<32x128xf32> -> vector<32x128xf32>
    %133 = arith.addf %127, %132 : vector<32x128xf32>
    %c0_167 = arith.constant 0 : index
    %c2_168 = arith.constant 2 : index
    %c1_169 = arith.constant 1 : index
    %c0_170 = arith.constant 0 : index
    %134 = vector.load %arg14[%c0_167, %c2_168, %c1_169, %c0_170] : memref<2x6x6x128xbf16, #tpu.memory_space<vmem>>, vector<2x4x4x128xbf16>
    %135 = vector.shape_cast %134 : vector<2x4x4x128xbf16> to vector<32x128xbf16>
    %c7_171 = arith.constant 7 : index
    %c0_172 = arith.constant 0 : index
    %c0_173 = arith.constant 0 : index
    %136 = vector.load %arg6[%c7_171, %c0_172, %c0_173] : memref<9x128x128xbf16, #tpu.memory_space<vmem>>, vector<1x128x128xbf16>
    %137 = vector.shape_cast %136 : vector<1x128x128xbf16> to vector<128x128xbf16>
    %cst_174 = arith.constant dense<0.000000e+00> : vector<32x128xf32>
    %138 = tpu.matmul %135, %137, %cst_174 {dimension_numbers = #tpu.dot_dimension_numbers<[1], [0], [0], [1], [0, 0, 1, 1], [], []>} : vector<32x128xbf16>, vector<128x128xbf16>, vector<32x128xf32> -> vector<32x128xf32>
    %139 = arith.addf %133, %138 : vector<32x128xf32>
    %c0_175 = arith.constant 0 : index
    %c2_176 = arith.constant 2 : index
    %c2_177 = arith.constant 2 : index
    %c0_178 = arith.constant 0 : index
    %140 = vector.load %arg14[%c0_175, %c2_176, %c2_177, %c0_178] : memref<2x6x6x128xbf16, #tpu.memory_space<vmem>>, vector<2x4x4x128xbf16>
    %141 = vector.shape_cast %140 : vector<2x4x4x128xbf16> to vector<32x128xbf16>
    %c8_179 = arith.constant 8 : index
    %c0_180 = arith.constant 0 : index
    %c0_181 = arith.constant 0 : index
    %142 = vector.load %arg6[%c8_179, %c0_180, %c0_181] : memref<9x128x128xbf16, #tpu.memory_space<vmem>>, vector<1x128x128xbf16>
    %143 = vector.shape_cast %142 : vector<1x128x128xbf16> to vector<128x128xbf16>
    %cst_182 = arith.constant dense<0.000000e+00> : vector<32x128xf32>
    %144 = tpu.matmul %141, %143, %cst_182 {dimension_numbers = #tpu.dot_dimension_numbers<[1], [0], [0], [1], [0, 0, 1, 1], [], []>} : vector<32x128xbf16>, vector<128x128xbf16>, vector<32x128xf32> -> vector<32x128xf32>
    %145 = arith.addf %139, %144 : vector<32x128xf32>
    %c0_183 = arith.constant 0 : index
    %c0_184 = arith.constant 0 : index
    %146 = vector.load %arg7[%c0_183, %c0_184] : memref<1x128xf32, #tpu.memory_space<vmem>>, vector<1x128xf32>
    %147 = vector.broadcast %146 : vector<1x128xf32> to vector<32x128xf32>
    %148 = arith.addf %145, %147 : vector<32x128xf32>
    %cst_185 = arith.constant 0.000000e+00 : f32
    %149 = vector.broadcast %cst_185 : f32 to vector<32x128xf32>
    %150 = arith.maximumf %148, %149 : vector<32x128xf32>
    %151 = vector.shape_cast %150 : vector<32x128xf32> to vector<4x8x128xf32>
    %152 = vector.extract_strided_slice %151 {offsets = [0, 0, 0], sizes = [4, 4, 128], strides = [1, 1, 1]} : vector<4x8x128xf32> to vector<4x4x128xf32>
    %153 = vector.extract_strided_slice %151 {offsets = [0, 4, 0], sizes = [4, 4, 128], strides = [1, 1, 1]} : vector<4x8x128xf32> to vector<4x4x128xf32>
    %154 = arith.maximumf %152, %153 : vector<4x4x128xf32>
    %c0_186 = arith.constant 0 : index
    %c0_187 = arith.constant 0 : index
    %c0_188 = arith.constant 0 : index
    %155 = vector.load %arg17[%c0_186, %c0_187, %c0_188] : memref<4x4x128xf32, #tpu.memory_space<vmem>>, vector<4x4x128xf32>
    tpu.vector_store %arg17[%c0_186, %c0_187, %c0_188], %154 {strides = array<i32>} : memref<4x4x128xf32, #tpu.memory_space<vmem>>, vector<4x4x128xf32>,
    %c0_189 = arith.constant 0 : index
    %c0_190 = arith.constant 0 : index
    %c0_191 = arith.constant 0 : index
    %156 = tpu.strided_load %arg17[%c0_189, %c0_190, %c0_191] {strides = array<i32: 1, 2, 1>} : memref<4x4x128xf32, #tpu.memory_space<vmem>>, vector<4x2x128xf32>
    %c0_192 = arith.constant 0 : index
    %c1_193 = arith.constant 1 : index
    %c0_194 = arith.constant 0 : index
    %157 = tpu.strided_load %arg17[%c0_192, %c1_193, %c0_194] {strides = array<i32: 1, 2, 1>} : memref<4x4x128xf32, #tpu.memory_space<vmem>>, vector<4x2x128xf32>
    %158 = arith.maximumf %156, %157 : vector<4x2x128xf32>
    %159 = vector.shape_cast %158 : vector<4x2x128xf32> to vector<2x2x2x128xf32>
    %160 = vector.extract_strided_slice %159 {offsets = [0, 0, 0, 0], sizes = [2, 1, 1, 128], strides = [1, 1, 1, 1]} : vector<2x2x2x128xf32> to vector<2x1x1x128xf32>
    %161 = vector.shape_cast %160 : vector<2x1x1x128xf32> to vector<2x128xf32>
    %162 = vector.extract_strided_slice %159 {offsets = [0, 0, 1, 0], sizes = [2, 1, 1, 128], strides = [1, 1, 1, 1]} : vector<2x2x2x128xf32> to vector<2x1x1x128xf32>
    %163 = vector.shape_cast %162 : vector<2x1x1x128xf32> to vector<2x128xf32>
    %164 = vector.extract_strided_slice %159 {offsets = [0, 1, 0, 0], sizes = [2, 1, 1, 128], strides = [1, 1, 1, 1]} : vector<2x2x2x128xf32> to vector<2x1x1x128xf32>
    %165 = vector.shape_cast %164 : vector<2x1x1x128xf32> to vector<2x128xf32>
    %166 = vector.extract_strided_slice %159 {offsets = [0, 1, 1, 0], sizes = [2, 1, 1, 128], strides = [1, 1, 1, 1]} : vector<2x2x2x128xf32> to vector<2x1x1x128xf32>
    %167 = vector.shape_cast %166 : vector<2x1x1x128xf32> to vector<2x128xf32>
    %168 = tpu.concatenate %161, %163, %165, %167 in 1 : vector<2x128xf32>, vector<2x128xf32>, vector<2x128xf32>, vector<2x128xf32> -> vector<2x512xf32>
    %169 = arith.truncf %168 : vector<2x512xf32> to vector<2x512xbf16>
    %c0_195 = arith.constant 0 : index
    %c0_196 = arith.constant 0 : index
    %170 = vector.load %arg8[%c0_195, %c0_196] : memref<512x256xbf16, #tpu.memory_space<vmem>>, vector<512x256xbf16>
    %cst_197 = arith.constant dense<0.000000e+00> : vector<2x256xf32>
    %171 = tpu.matmul %169, %170, %cst_197 {dimension_numbers = #tpu.dot_dimension_numbers<[1], [0], [0], [1], [0, 0, 1, 1], [], []>} : vector<2x512xbf16>, vector<512x256xbf16>, vector<2x256xf32> -> vector<2x256xf32>
    %c0_198 = arith.constant 0 : index
    %c0_199 = arith.constant 0 : index
    %172 = vector.load %arg9[%c0_198, %c0_199] : memref<1x256xf32, #tpu.memory_space<vmem>>, vector<1x256xf32>
    %173 = vector.broadcast %172 : vector<1x256xf32> to vector<2x256xf32>
    %174 = arith.addf %171, %173 : vector<2x256xf32>
    %cst_200 = arith.constant 0.000000e+00 : f32
    %175 = vector.broadcast %cst_200 : f32 to vector<2x256xf32>
    %176 = arith.maximumf %174, %175 : vector<2x256xf32>
    %177 = arith.truncf %176 : vector<2x256xf32> to vector<2x256xbf16>
    %c0_201 = arith.constant 0 : index
    %c0_202 = arith.constant 0 : index
    %178 = vector.load %arg10[%c0_201, %c0_202] : memref<256x128xbf16, #tpu.memory_space<vmem>>, vector<256x128xbf16>
    %cst_203 = arith.constant dense<0.000000e+00> : vector<2x128xf32>
    %179 = tpu.matmul %177, %178, %cst_203 {dimension_numbers = #tpu.dot_dimension_numbers<[1], [0], [0], [1], [0, 0, 1, 1], [], []>} : vector<2x256xbf16>, vector<256x128xbf16>, vector<2x128xf32> -> vector<2x128xf32>
    %c0_204 = arith.constant 0 : index
    %c0_205 = arith.constant 0 : index
    %180 = vector.load %arg11[%c0_204, %c0_205] : memref<1x128xf32, #tpu.memory_space<vmem>>, vector<1x128xf32>
    %181 = vector.broadcast %180 : vector<1x128xf32> to vector<2x128xf32>
    %182 = arith.addf %179, %181 : vector<2x128xf32>
    %c0_206 = arith.constant 0 : index
    %c0_207 = arith.constant 0 : index
    %c0_208 = arith.constant 0 : index
    %183 = vector.load %arg12[%c0_206, %c0_207, %c0_208] : memref<1x2x128xf32, #tpu.memory_space<vmem>>, vector<1x2x128xf32>
    %184 = vector.shape_cast %183 : vector<1x2x128xf32> to vector<2x128xf32>
    %185 = vector.shape_cast %182 : vector<2x128xf32> to vector<1x2x128xf32>
    tpu.vector_store %arg12[%c0_206, %c0_207, %c0_208], %185 {strides = array<i32>} : memref<1x2x128xf32, #tpu.memory_space<vmem>>, vector<1x2x128xf32>,
    return
  }
  func.func @transform_0(%arg0: i32) -> (i32, i32, i32, i32) {
    %c0_i32 = arith.constant 0 : i32
    %c0_i32_0 = arith.constant 0 : i32
    %c0_i32_1 = arith.constant 0 : i32
    %c0_i32_2 = arith.constant 0 : i32
    return %arg0, %c0_i32, %c0_i32_0, %c0_i32_1 : i32, i32, i32, i32
  }
  func.func @transform_1(%arg0: i32) -> (i32, i32) {
    %c0_i32 = arith.constant 0 : i32
    %c0_i32_0 = arith.constant 0 : i32
    %c0_i32_1 = arith.constant 0 : i32
    return %c0_i32, %c0_i32_0 : i32, i32
  }
  func.func @transform_2(%arg0: i32) -> (i32, i32) {
    %c0_i32 = arith.constant 0 : i32
    %c0_i32_0 = arith.constant 0 : i32
    %c0_i32_1 = arith.constant 0 : i32
    return %c0_i32, %c0_i32_0 : i32, i32
  }
  func.func @transform_3(%arg0: i32) -> (i32, i32, i32) {
    %c0_i32 = arith.constant 0 : i32
    %c0_i32_0 = arith.constant 0 : i32
    %c0_i32_1 = arith.constant 0 : i32
    %c0_i32_2 = arith.constant 0 : i32
    return %c0_i32, %c0_i32_0, %c0_i32_1 : i32, i32, i32
  }
  func.func @transform_4(%arg0: i32) -> (i32, i32) {
    %c0_i32 = arith.constant 0 : i32
    %c0_i32_0 = arith.constant 0 : i32
    %c0_i32_1 = arith.constant 0 : i32
    return %c0_i32, %c0_i32_0 : i32, i32
  }
  func.func @transform_5(%arg0: i32) -> (i32, i32, i32) {
    %c0_i32 = arith.constant 0 : i32
    %c0_i32_0 = arith.constant 0 : i32
    %c0_i32_1 = arith.constant 0 : i32
    %c0_i32_2 = arith.constant 0 : i32
    return %c0_i32, %c0_i32_0, %c0_i32_1 : i32, i32, i32
  }
  func.func @transform_6(%arg0: i32) -> (i32, i32) {
    %c0_i32 = arith.constant 0 : i32
    %c0_i32_0 = arith.constant 0 : i32
    %c0_i32_1 = arith.constant 0 : i32
    return %c0_i32, %c0_i32_0 : i32, i32
  }
  func.func @transform_7(%arg0: i32) -> (i32, i32) {
    %c0_i32 = arith.constant 0 : i32
    %c0_i32_0 = arith.constant 0 : i32
    %c0_i32_1 = arith.constant 0 : i32
    return %c0_i32, %c0_i32_0 : i32, i32
  }
  func.func @transform_8(%arg0: i32) -> (i32, i32) {
    %c0_i32 = arith.constant 0 : i32
    %c0_i32_0 = arith.constant 0 : i32
    %c0_i32_1 = arith.constant 0 : i32
    return %c0_i32, %c0_i32_0 : i32, i32
  }
  func.func @transform_9(%arg0: i32) -> (i32, i32) {
    %c0_i32 = arith.constant 0 : i32
    %c0_i32_0 = arith.constant 0 : i32
    %c0_i32_1 = arith.constant 0 : i32
    return %c0_i32, %c0_i32_0 : i32, i32
  }
  func.func @transform_10(%arg0: i32) -> (i32, i32) {
    %c0_i32 = arith.constant 0 : i32
    %c0_i32_0 = arith.constant 0 : i32
    %c0_i32_1 = arith.constant 0 : i32
    return %c0_i32, %c0_i32_0 : i32, i32
  }
  func.func @transform_11(%arg0: i32) -> (i32, i32, i32) {
    %c0_i32 = arith.constant 0 : i32
    %c0_i32_0 = arith.constant 0 : i32
    %c0_i32_1 = arith.constant 0 : i32
    return %arg0, %c0_i32, %c0_i32_0 : i32, i32, i32
  }
}

</mosaic_0001>

<bundles_post_ra>
// kernel: simple_cnn_forward.1
= control target key start
LH: loop header
LB: loop body
LE: loop exit
PB: predicated region body
PF: predicated region fallthrough
CT: control target
= control target key end

     0   :  { %s11074_s0 = inlined_call_operand.vmem [shape: bf16[4,16,16,128], index: 0, kind: input, shape index: {}]   ;;  %s11075_s1 = inlined_call_operand.vmem [shape: bf16[128,128], index: 1, kind: input, shape index: {}]   ;;  %s11076_s2 = inlined_call_operand.vmem [shape: f32[1,128], index: 2, kind: input, shape index: {}]   ;;  %s11077_s3 = inlined_call_operand.vmem [shape: bf16[9,128,128], index: 3, kind: input, shape index: {}]   ;;  %s11078_s4 = inlined_call_operand.vmem [shape: f32[1,128], index: 4, kind: input, shape index: {}]   ;;  %s11079_s5 = inlined_call_operand.vmem [shape: bf16[9,128,128], index: 5, kind: input, shape index: {}]   ;;  %s11080_s6 = inlined_call_operand.vmem [shape: f32[1,128], index: 6, kind: input, shape index: {}]   ;;  %s11081_s7 = inlined_call_operand.vmem [shape: bf16[512,256], index: 7, kind: input, shape index: {}]   ;;  %s11082_s8 = inlined_call_operand.vmem [shape: f32[1,256], index: 8, kind: input, shape index: {}]   ;;  %s11083_s9 = inlined_call_operand.vmem [shape: bf16[256,128], index: 9, kind: input, shape index: {}]   ;;  %s11084_s10 = inlined_call_operand.vmem [shape: f32[1,128], index: 10, kind: input, shape index: {}]   ;;  %s11085_s11 = inlined_call_operand.hbm [shape: f32[2,2,128], index: 11, kind: output, shape index: {}]  }
   0x1   :  { %11086 = sst [smem:[#allocation11_spill]] %s11074_s0 }
   0x2   :  { %11087 = sst [smem:[#allocation12_spill]] %s11075_s1 }
   0x3   :  { %16 = vsyncpa [#allocation8], 0 }
   0x4   :  { %18 = vsyncpa [#allocation8 + $0x1], 0  ;;  %s8937_s17 = smov 0   ;;  %s8939_s18 = smov 0  }
   0x5   :  { %s8941_s19 = smov 0   ;;  %s8943_s20 = smov 0  }
   0x6 LB: > { %s6961_s21 = sadd.s32 4294967295, %s8874_s20   ;;  %s6962_s22 = sadd.s32 4294967294, %s8874_s20   ;;  %s8874_s20 = sphi %s8943_s20, %s11115_s20   ;;  %s8870_s19 = sphi %s8941_s19, %s11114_s19   ;;  %s8866_s18 = sphi %s8939_s18, %s11113_s18   ;;  %s8862_s17 = sphi %s8937_s17, %s11112_s17  }
   0x7   : > { %s8960_s23 = sadd.s32 1, %s8874_s20   ;;  %s267_s24 = sadd.s32 1, %s8870_s19 }
   0x8   : > { %s264_s25 = ssub.s32 %s8874_s20, %s8960_s23  ;;  %p277_p0 = scmp.ne.s32.totalorder %s8870_s19, %s8866_s18 }
   0x9   : > { %p265_p1 = scmp.eq.s32.totalorder %s264_s25, 0  ;;  %p278_p2 = scmp.eq.s32.totalorder %s6961_s21, 1 }
   0xa   : > { %p283_p3 = scmp.ne.s32.totalorder %s8866_s18, %s8862_s17  ;;  %p284_p4 = scmp.eq.s32.totalorder %s6962_s22, 1 }
   0xb   : > { %s8970_s26 = scalar_select %p265_p1, %s8870_s19, %s267_s24  }
   0xc   : > { %p8972_p5 = por %p278_p2, %p277_p0  ;;  %p8976_p6 = por %p284_p4, %p283_p3 }
   0xd   : > { %11088 = sst [smem:[#allocation10_spill]] %s8970_s26  ;;  %p6965_p7 = scmp.ge.s32.totalorder %s8874_s20, 1 }
   0xe   : > { %p342_p8 = scmp.lt.s32.totalorder %s8874_s20, 3 }
  0x10   : > { %p343_p9 = pnand %p6965_p7, %p342_p8 }
  0x11   : > { %s11091_s1 = sld [smem:[#allocation12_spill]] (!%p343_p9)  ;;  %s8994_s24 = sshll.u32 (!%p343_p9), %s6961_s21, 1 }
  0x12   : > { %346 = sbr.rel (%p343_p9) target bundleno = 1684 (0x694), region = 64  ;;  %p384_p10 = scmp.lt.s32.totalorder (!%p343_p9), %s8994_s24, 3 }
  0x13   : > { %s11092_s0 = sld [smem:[#allocation11_spill]] (!%p343_p9)  ;;  %s380_s22 = sand.u32 (!%p343_p9), 1, %s8866_s18  }
  0x14   : > { %s6966_s25 = sshll.u32 (!%p343_p9), %s380_s22, 1  ;;  %s6888_s16 = scalar_lea.sflag (!%p343_p9), [#allocation8], %s380_s22 }
  0x15   : > { %s382_s14 = scalar_lea.vmem (!%p343_p9), [#allocation7], %s6966_s25 }
  0x16   : > { %s6900_s15 = sshll.u32 (!%p343_p9), %s382_s14, 4  ;;  %s6901_s15 = int_to_ptr.vmem [resolvable:$true] %s6900_s15 }
  0x17   : > { %v8518_v0 = vld [vmem:[%s11091_s1 + $0x38] sm:$0xff]  ;;  %v8517_v1 = vld [vmem:[%s11091_s1 + $0x30] sm:$0xff]  ;;  %v8516_v2 = vld [vmem:[%s11091_s1 + $0x28] sm:$0xff]  ;;  %s385_s13 = scalar_select %p384_p10, %s8994_s24, 3  ;;  %v8876_v27 = vmov 0   ;;  %vm1308_vm0 = vcmask 1043456  }
  0x18   : > { %715 = vmatpush.bf16.msra.mxu0 %v8518_v0  ;;  %v8515_v3 = vld [vmem:[%s11091_s1 + $0x20] sm:$0xff]  ;;  %v8514_v4 = vld [vmem:[%s11091_s1 + $0x18] sm:$0xff]  ;;  %v8513_v5 = vld [vmem:[%s11091_s1 + $0x10] sm:$0xff]  ;;  %1091 = vst [vmem:[#allocation2] sm:$0xf] %v8876_v27  ;;  %vm1314_vm3 = vcmask 1040384  }
  0x19   : > { %v8512_v6 = vld [vmem:[%s11091_s1 + $0x8] sm:$0xff]  ;;  %s8478_s21 = sshll.u32 %s385_s13, 7  ;;  %v8511_v7 = vld [vmem:[%s11091_s1] sm:$0xff]  ;;  %v8534_v16 = vld [vmem:[%s11077_s3 + $0x38] sm:$0xff]  ;;  %1093 = vst [vmem:[#allocation2 + $0x8] sm:$0xf] %v8876_v27  ;;  %s6898_s13 = scalar_lea.hbm %s11085_s11, %s8994_s24 }
  0x1a   : > { %s9013_s26 = scalar_lea.vmem %s11092_s0, %s8478_s21  ;;  %1927 = vmatpush.bf16.msra.mxu2 %v8534_v16  ;;  %v8533_v18 = vld [vmem:[%s11077_s3 + $0x30] sm:$0xff]  ;;  %v8550_v20 = vld [vmem:[%s11077_s3 + $0xb8] sm:$0xff]  ;;  %v8532_v21 = vld [vmem:[%s11077_s3 + $0x28] sm:$0xff]  ;;  %1092 = vst [vmem:[#allocation2 + $0x4] sm:$0x1] %v8876_v27  ;;  %vm2024_vm6 = vcmask 1042432  }
  0x1b   : > { %v8479_v8 = vld [vmem:[%s9013_s26] sm:$0xff]  ;;  %v8480_v9 = vld [vmem:[%s9013_s26 + $0x8] sm:$0xff]  ;;  %v8481_v10 = vld [vmem:[%s9013_s26 + $0x10] sm:$0xff]  ;;  %2188 = vmatpush.bf16.msra.mxu3 %v8550_v20  ;;  %1094 = vst [vmem:[#allocation2 + $0xc] sm:$0x1] %v8876_v27  ;;  %vm2025_vm7 = vcmask 1046532  }
  0x1c   : > { %716 = vmatpush.bf16.msra.mxu0 %v8517_v1  ;;  %v8482_v11 = vld [vmem:[%s9013_s26 + $0x18] sm:$0xff]  ;;  %v8483_v12 = vld [vmem:[%s9013_s26 + $0x20] sm:$0xff]  ;;  %v8484_v13 = vld [vmem:[%s9013_s26 + $0x28] sm:$0xff]  ;;  %1095 = vst [vmem:[#allocation2 + $0x10] sm:$0xf] %v8876_v27  ;;  %vm4276_vm14 = vcmask 1041408  }
  0x1d   : > { %v8485_v14 = vld [vmem:[%s9013_s26 + $0x30] sm:$0xff]  ;;  %v8486_v15 = vld [vmem:[%s9013_s26 + $0x38] sm:$0xff]  ;;  %v8487_v17 = vld [vmem:[%s9013_s26 + $0x40] sm:$0xff]  ;;  %1096 = vst [vmem:[#allocation2 + $0x14] sm:$0x1] %v8876_v27  ;;  %vm4280_vm15 = vcmask 1043458  }
  0x1e   : > { %1928 = vmatpush.bf16.msra.mxu2 %v8533_v18  ;;  %v8549_v22 = vld [vmem:[%s11077_s3 + $0xb0] sm:$0xff]  ;;  %v8542_v23 = vld [vmem:[%s11077_s3 + $0x78] sm:$0xff]  ;;  %v8531_v24 = vld [vmem:[%s11077_s3 + $0x20] sm:$0xff]  ;;  %1097 = vst [vmem:[#allocation2 + $0x18] sm:$0xf] %v8876_v27  ;;  %s6902_s21 = sshll.u32 %s6898_s13, 4  ;;  %s6903_s21 = int_to_ptr.hbm [resolvable:$true] %s6902_s21 }
  0x1f   : > { %2189 = vmatpush.bf16.msra.mxu3 %v8549_v22  ;;  %1782 = vmatpush.bf16.msra.mxu1 %v8542_v23  ;;  %v8548_v26 = vld [vmem:[%s11077_s3 + $0xa8] sm:$0xff]  ;;  %v8541_v28 = vld [vmem:[%s11077_s3 + $0x70] sm:$0xff]  ;;  %v9056_v29 = vld [vmem:[%s11076_s2] ss:$0 sm:$0xff]  ;;  %1098 = vst [vmem:[#allocation2 + $0x1c] sm:$0x1] %v8876_v27 }
  0x20   : > { %717 = vmatpush.bf16.msra.mxu0 %v8516_v2  ;;  %v8530_v30 = vld [vmem:[%s11077_s3 + $0x18] sm:$0xff]  ;;  %v8547_v31 = vld [vmem:[%s11077_s3 + $0xa0] sm:$0xff]  ;;  %v8540_v32 = vld [vmem:[%s11077_s3 + $0x68] sm:$0xff]  ;;  %1099 = vst [vmem:[#allocation2 + $0x20] sm:$0xf] %v8876_v27  ;;  %s8826_s0 = sshra.s32 %s6903_s21, 4  ;;  %s8827_s0 = int_to_ptr.hbm [resolvable:$true] %s8826_s0 }
  0x21   : > { %v8488_v34 = vld [vmem:[%s9013_s26 + $0x48] sm:$0xff]  ;;  %v8529_v35 = vld [vmem:[%s11077_s3 + $0x10] sm:$0xff]  ;;  %v8546_v37 = vld [vmem:[%s11077_s3 + $0x98] sm:$0xff]  ;;  %1100 = vst [vmem:[#allocation2 + $0x24] sm:$0x1] %v8876_v27  ;;  %s8828_s1 = scalar_lea.hbm %s8827_s0, 2  ;;  %p8833_p0 = scmp.lt.s32.totalorder %s8827_s0, %s11085_s11 }
  0x22   : > { %1929 = vmatpush.bf16.msra.mxu2 %v8532_v21  ;;  %v8539_v39 = vld [vmem:[%s11077_s3 + $0x60] sm:$0xff]  ;;  %v8528_v42 = vld [vmem:[%s11077_s3 + $0x8] sm:$0xff]  ;;  %1101 = vst [vmem:[#allocation2 + $0x28] sm:$0xf] %v8876_v27  ;;  %v8545_v43 = vld [vmem:[%s11077_s3 + $0x90] sm:$0xff]  ;;  %p8829_p11 = scmp.ne.s32.totalorder %s8827_s0, %s8828_s1  ;;  %s8832_s24 = scalar_lea.hbm %s11085_s11, 4 }
  0x23   : > { %2190 = vmatpush.bf16.msra.mxu3 %v8548_v26  ;;  %1783 = vmatpush.bf16.msra.mxu1 %v8541_v28  ;;  %1102 = vst [vmem:[#allocation2 + $0x2c] sm:$0x1] %v8876_v27  ;;  %v8538_v45 = vld [vmem:[%s11077_s3 + $0x58] sm:$0xff]  ;;  %v8527_v47 = vld [vmem:[%s11077_s3] sm:$0xff]  ;;  %v8544_v49 = vld [vmem:[%s11077_s3 + $0x88] sm:$0xff]  ;;  %p8834_p1 = scmp.lt.s32.totalorder %s8832_s24, %s8828_s1 }
  0x24   : > { %718 = vmatpush.bf16.msra.mxu0 %v8515_v3  ;;  %1103 = vst [vmem:[#allocation2 + $0x30] sm:$0xf] %v8876_v27  ;;  %v8537_v51 = vld [vmem:[%s11077_s3 + $0x50] sm:$0xff]  ;;  %v8543_v54 = vld [vmem:[%s11077_s3 + $0x80] sm:$0xff]  ;;  %v8536_v56 = vld [vmem:[%s11077_s3 + $0x48] sm:$0xff]  ;;  %p8830_p12 = pnand %p8829_p11, %p8972_p5 }
  0x25   : > { %1104 = vst [vmem:[#allocation2 + $0x34] sm:$0x1] %v8876_v27  ;;  %v8489_v57 = vld [vmem:[%s9013_s26 + $0x50] sm:$0xff]  ;;  %vm1309_vm1 = vsmask.f32 7938  ;;  %vm9179_vm10 = vmor %vm2024_vm6, %vm2025_vm7  ;;  %p8835_p2 = por %p8834_p1, %p8833_p0 }
  0x26   : > { %1930 = vmatpush.bf16.msra.mxu2 %v8531_v24  ;;  %1105 = vst [vmem:[#allocation2 + $0x38] sm:$0xf] %v8876_v27  ;;  %vm9139_vm2 = vmand %vm1308_vm0, %vm1309_vm1  ;;  %v7180_v16 = vld [vmem:[#allocation2] sm:$0xf]  ;;  %vm1315_vm4 = vsmask.f32 256  ;;  %p8831_p13 = pneg %p8830_p12 }
  0x27   : > { %2191 = vmatpush.bf16.msra.mxu3 %v8547_v31  ;;  %1784 = vmatpush.bf16.msra.mxu1 %v8540_v32  ;;  %1106 = vst [vmem:[#allocation2 + $0x3c] sm:$0x1] %v8876_v27  ;;  %vm9167_vm5 = vmand %vm1314_vm3, %vm1315_vm4  ;;  %v1317_v31 = vld [vmem:[#allocation2 + $0xc] sm:$0x1]  ;;  %vm1458_vm8 = vsmask.f32 3328 }
  0x28   : > { %719 = vmatpush.bf16.msra.mxu0 %v8514_v4  ;;  %1107 = vst [vmem:[#allocation2 + $0x40] sm:$0xf] %v8876_v27  ;;  %v1311_v4 = vld [vmem:[#allocation2 + $0x8] sm:$0xf]  ;;  %vm1459_vm9 = vsmask.f32 7440  ;;  %p8836_p3 = pnand %p8835_p2, %p8831_p13 }
  0x29   : > { %1108 = vst [vmem:[#allocation2 + $0x44] sm:$0x1] %v8876_v27  ;;  %vm9183_vm11 = vmor %vm1458_vm8, %vm1459_vm9  ;;  %vm4202_vm12 = vsmask.f32 2306  ;;  %vm4326_vm0 = vsmask.f32 1280 }
  0x2a   : > { %1931 = vmatpush.bf16.msra.mxu2 %v8530_v30  ;;  %1109 = vst [vmem:[#allocation2 + $0x48] sm:$0xf] %v8876_v27  ;;  %vm9828_vm13 = vmand %vm2024_vm6, %vm4202_vm12  ;;  %vm4327_vm1 = vsmask.f32 3336  ;;  %vm4329_vm4 = vsmask.f32 5392 }
  0x2b   : > { %2192 = vmatpush.bf16.msra.mxu3 %v8546_v37  ;;  %1785 = vmatpush.bf16.msra.mxu1 %v8539_v39  ;;  %1110 = vst [vmem:[#allocation2 + $0x4c] sm:$0x1] %v8876_v27  ;;  %vm4722_vm8 = vcmask 1042434   ;;  %vm4724_vm9 = vcmask 1044484  }
  0x2c   : > { %720 = vmatpush.bf16.msra.mxu0 %v8513_v5  ;;  %1111 = vst [vmem:[#allocation2 + $0x50] sm:$0xf] %v8876_v27 }
  0x2d   : > { %1112 = vst [vmem:[#allocation2 + $0x54] sm:$0x1] %v8876_v27 }
  0x2e   : > { %1932 = vmatpush.bf16.msra.mxu2 %v8529_v35  ;;  %1113 = vst [vmem:[#allocation2 + $0x58] sm:$0xf] %v8876_v27 }
  0x2f   : > { %2193 = vmatpush.bf16.msra.mxu3 %v8545_v43  ;;  %1786 = vmatpush.bf16.msra.mxu1 %v8538_v45  ;;  %1114 = vst [vmem:[#allocation2 + $0x5c] sm:$0x1] %v8876_v27 }
  0x30   : > { %721 = vmatpush.bf16.msra.mxu0 %v8512_v6  ;;  %1115 = vst [vmem:[#allocation2 + $0x60] sm:$0xf] %v8876_v27  ;;  %v8490_v6 = vld [vmem:[%s9013_s26 + $0x58] sm:$0xff] }
  0x31   : > { %1116 = vst [vmem:[#allocation2 + $0x64] sm:$0x1] %v8876_v27 }
  0x32   : > { %1933 = vmatpush.bf16.msra.mxu2 %v8528_v42  ;;  %1117 = vst [vmem:[#allocation2 + $0x68] sm:$0xf] %v8876_v27 }
  0x33   : > { %2194 = vmatpush.bf16.msra.mxu3 %v8544_v49  ;;  %1787 = vmatpush.bf16.msra.mxu1 %v8537_v51  ;;  %1118 = vst [vmem:[#allocation2 + $0x6c] sm:$0x1] %v8876_v27 }
  0x34   : > { %722 = vmatpush.bf16.msra.mxu0 %v8511_v7  ;;  %1119 = vst [vmem:[#allocation2 + $0x70] sm:$0xf] %v8876_v27 }
  0x35   : > { %1120 = vst [vmem:[#allocation2 + $0x74] sm:$0x1] %v8876_v27 }
  0x36   : > { %1934 = vmatpush.bf16.msra.mxu2 %v8527_v47  ;;  %1121 = vst [vmem:[#allocation2 + $0x78] sm:$0xf] %v8876_v27 }
  0x37   : > { %723 = vmatmul.bf16.vlgmr.msra.gmra.mxu0 %v8479_v8  ;;  %2195 = vmatpush.bf16.msra.mxu3 %v8543_v54  ;;  %1122 = vst [vmem:[#allocation2 + $0x7c] sm:$0x1] %v8876_v27 }
  0x38   : > { %1788 = vmatpush.bf16.msra.mxu1 %v8536_v56  ;;  %1123 = vst [vmem:[#allocation2 + $0x80] sm:$0xf] %v8876_v27 }
  0x39   : > { %1124 = vst [vmem:[#allocation2 + $0x84] sm:$0x1] %v8876_v27 }
  0x3a   : > { %1125 = vst [vmem:[#allocation2 + $0x88] sm:$0xf] %v8876_v27 }
  0x3b   : > { %1126 = vst [vmem:[#allocation2 + $0x8c] sm:$0x1] %v8876_v27 }
  0x3c   : > { %1127 = vst [vmem:[#allocation2 + $0x90] sm:$0xf] %v8876_v27 }
  0x3d   : > { %1128 = vst [vmem:[#allocation2 + $0x94] sm:$0x1] %v8876_v27 }
  0x3e   : > { %1129 = vst [vmem:[#allocation2 + $0x98] sm:$0xf] %v8876_v27 }
  0x3f   : > { %1130 = vst [vmem:[#allocation2 + $0x9c] sm:$0x1] %v8876_v27 }
  0x40   : > { %4117 = vst [vmem:[#allocation3] sm:$0x7] %v8876_v27 }
  0x41   : > { %4118 = vst [vmem:[#allocation3 + $0x4] sm:$0x7] %v8876_v27 }
  0x42   : > { %4119 = vst [vmem:[#allocation3 + $0x8] sm:$0x7] %v8876_v27 }
  0x43   : > { %4120 = vst [vmem:[#allocation3 + $0xc] sm:$0x7] %v8876_v27 }
  0x44   : > { %4121 = vst [vmem:[#allocation3 + $0x10] sm:$0x7] %v8876_v27 }
  0x45   : > { %4122 = vst [vmem:[#allocation3 + $0x14] sm:$0x7] %v8876_v27 }
  0x46   : > { %4123 = vst [vmem:[#allocation3 + $0x18] sm:$0x7] %v8876_v27 }
  0x47   : > { %728 = vmatmul.bf16.gmra.mxu0 %v8480_v9  ;;  %4124 = vst [vmem:[#allocation3 + $0x1c] sm:$0x7] %v8876_v27 }
  0x48   : > { %4125 = vst [vmem:[#allocation3 + $0x20] sm:$0x7] %v8876_v27 }
  0x49   : > { %4126 = vst [vmem:[#allocation3 + $0x24] sm:$0x7] %v8876_v27 }
  0x4a   : > { %4127 = vst [vmem:[#allocation3 + $0x28] sm:$0x7] %v8876_v27 }
  0x4b   : > { %4128 = vst [vmem:[#allocation3 + $0x2c] sm:$0x7] %v8876_v27 }
  0x57   : > { %733 = vmatmul.bf16.gmra.mxu0 %v8481_v10 }
  0x67   : > { %738 = vmatmul.bf16.gmra.mxu0 %v8482_v11  ;;  %v8535_v11 = vld [vmem:[%s11077_s3 + $0x40] sm:$0xff] }
  0x68   : > { %1789 = vmatpush.bf16.msra.mxu1 %v8535_v11 }
  0x77   : > { %743 = vmatmul.bf16.gmra.mxu0 %v8483_v12 }
  0x87   : > { %748 = vmatmul.bf16.gmra.mxu0 %v8484_v13 }
  0x97   : > { %753 = vmatmul.bf16.gmra.mxu0 %v8485_v14 }
  0xa7   : > { %758 = vmatmul.bf16.gmra.mxu0 %v8486_v15 }
  0xb4   : > { %v724_v19 = vpop.f32.mrf.mxu0 }
  0xb5   : > { %v725_v33 = vadd.f32 %v9056_v29, %v724_v19 }
  0xb7   : > { %763 = vmatmul.bf16.gmra.mxu0 %v8487_v17  ;;  %v884_v40 = vmax.f32 %v725_v33, 0.0  ;;  %v1410_v17 = vld [vmem:[#allocation2] sm:$0xf] }
  0xb8   : > { %v1462_v23 = vshrl.u32 %v1410_v17, 16  ;;  %v1465_v24 = vshll.u32 %v1410_v17, 16  ;;  %v8492_v17 = vld [vmem:[%s9013_s26 + $0x68] sm:$0xff] }
  0xba   : > { %v1464_v33 = vrot.slane %v1462_v23, 4 }
  0xbc   : > { %v726_v25 = vpop.f32.mrf.mxu0 }
  0xbd   : > { %v727_v46 = vadd.f32 %v9056_v29, %v726_v25 }
  0xbf   : > { %v885_v52 = vmax.f32 %v727_v46, 0.0 }
  0xc4   : > { %v729_v36 = vpop.f32.mrf.mxu0 }
  0xc5   : > { %v730_v38 = vadd.f32 %v9056_v29, %v729_v36 }
  0xc7   : > { %v886_v41 = vmax.f32 %v730_v38, 0.0  ;;  %768 = vmatmul.bf16.gmra.mxu0 %v8488_v34  ;;  %v1467_v34 = vrot.slane %v1465_v24, 5  ;;  %v8491_v38 = vld [vmem:[%s9013_s26 + $0x60] sm:$0xff] }
  0xc9   : > { %v948_v44 = vmax.f32 %v884_v40, %v886_v41  ;;  %v1442_v40 = vld [vmem:[#allocation2 + $0x4] sm:$0x1]  ;;  %v1976_v41 = vld [vmem:[#allocation2] sm:$0xe]  ;;  %v1468_v42 = vor.u32 %v1467_v34, %v1464_v33 }
  0xca   : > { %v1471_v43 = vshll.u32 %v1442_v40, 16  ;;  %v7242_v46 = vrot.slane %v1976_v41, 9  ;;  %v2029_v47 = vrot.slane %v1442_v40, 5 }
  0xcb   : > { %980 = vst [vmem:[#allocation4] sm:$0xff] %v948_v44  ;;  %v1469_v51 = vrot.slane %v1468_v42, 4 }
  0xcc   : > { %v731_v48 = vpop.f32.mrf.mxu0  ;;  %v2030_v56 = vsel %vm9179_vm10, %v7242_v46, %v2029_v47  ;;  %v1326_v47 = vld [vmem:[#allocation2 + $0x18] sm:$0xf] }
  0xcd   : > { %v732_v50 = vadd.f32 %v9056_v29, %v731_v48 }
  0xcf   : > { %v887_v53 = vmax.f32 %v732_v50, 0.0 }
  0xd1   : > { %v949_v55 = vmax.f32 %v885_v52, %v887_v53  ;;  %v1473_v52 = vrot.slane %v1471_v43, 5 }
  0xd3   : > { %981 = vst [vmem:[#allocation4 + $0x8] sm:$0xff] %v949_v55 }
  0xd4   : > { %v734_v58 = vpop.f32.mrf.mxu0 }
  0xd5   : > { %v735_v5 = vadd.f32 %v9056_v29, %v734_v58 }
  0xd7   : > { %773 = vmatmul.bf16.gmra.mxu0 %v8489_v57  ;;  %v888_v12 = vmax.f32 %v735_v5, 0.0 }
  0xda   : > { %v1012_v59 = vld [vmem:[#allocation4] ss:$2 sm:$0xff]  ;;  %v1044_v60 = vld [vmem:[#allocation4 + $0x1] ss:$2 sm:$0xff] }
  0xdb   : > { %v1075_v61 = vmax.f32 %v1012_v59, %v1044_v60 }
  0xdc   : > { %v736_v62 = vpop.f32.mrf.mxu0 }
  0xdd   : > { %v1131_v63 = vpack.c.bf16 %v1075_v61, %v1075_v61  ;;  %v737_v15 = vadd.f32 %v9056_v29, %v736_v62  ;;  %v1474_v62 = vsel %vm9183_vm11, %v1469_v51, %v1473_v52  ;;  %v8494_v51 = vld [vmem:[%s9013_s26 + $0x78] sm:$0xff] }
  0xdf   : > { %v1148_v0 = vshrl.u32 %v1131_v63, 16  ;;  %v1151_v2 = vshll.u32 %v1131_v63, 16  ;;  %v889_v21 = vmax.f32 %v737_v15, 0.0 }
  0xe1   : > { %v1150_v1 = vrot.slane %v1148_v0, 7 }
  0xe3   : > { %v1153_v7 = vor.u32 %v1151_v2, %v1150_v1  ;;  %v1154_v25 = vrot.slane %v1150_v1, 4  ;;  %v2108_v2 = vunpack.c.l.b16 %v2030_v56 }
  0xe4   : > { %v739_v8 = vpop.f32.mrf.mxu0 }
  0xe5   : > { %v740_v9 = vadd.f32 %v9056_v29, %v739_v8  ;;  %v1312_v10 = vsel %vm9139_vm2, %v1153_v7, %v1311_v4  ;;  %v1318_v37 = vsel %vm9167_vm5, %v1154_v25, %v1317_v31 }
  0xe6   : > { %1313 = vst [vmem:[#allocation2 + $0x8] sm:$0xf] %v1312_v10 }
  0xe7   : > { %v890_v13 = vmax.f32 %v740_v9, 0.0  ;;  %778 = vmatmul.bf16.gmra.mxu0 %v8490_v6  ;;  %1319 = vst [vmem:[#allocation2 + $0xc] sm:$0x1] %v1318_v37  ;;  %v1702_v9 = vunpack.c.l.b16 %v1474_v62 }
  0xe9   : > { %v950_v14 = vmax.f32 %v888_v12, %v890_v13  ;;  %v1320_v12 = vld [vmem:[#allocation2 + $0x10] sm:$0xf]  ;;  %v1323_v13 = vld [vmem:[#allocation2 + $0x14] sm:$0x1] }
  0xeb   : > { %982 = vst [vmem:[#allocation4 + $0x10] sm:$0xff] %v950_v14 }
  0xec   : > { %v741_v18 = vpop.f32.mrf.mxu0 }
  0xed   : > { %v742_v19 = vadd.f32 %v9056_v29, %v741_v18  ;;  %v8519_v20 = vld [vmem:[#allocation2 + $0x4] sm:$0xf0] }
  0xee   : > { %v7181_v22 = vor.u32 %v8519_v20, %v7180_v16  ;;  %v1411_v28 = vld [vmem:[#allocation2 + $0x8] sm:$0xf]  ;;  %v1443_v60 = vld [vmem:[#allocation2 + $0xc] sm:$0x1] }
  0xef   : > { %v891_v26 = vmax.f32 %v742_v19, 0.0  ;;  %v1476_v35 = vshrl.u32 %v1411_v28, 16  ;;  %v1479_v36 = vshll.u32 %v1411_v28, 16  ;;  %v1977_v48 = vld [vmem:[#allocation2 + $0x8] sm:$0xe]  ;;  %v2033_v61 = vrot.slane %v1443_v60, 5 }
  0xf0   : > { %1935 = vmatmul.bf16.vlgmr.msra.gmra.mxu2 %v7181_v22  ;;  %v7243_v57 = vrot.slane %v1977_v48, 9  ;;  %v1485_v0 = vshll.u32 %v1443_v60, 16  ;;  %v1329_v48 = vld [vmem:[#allocation2 + $0x1c] sm:$0x1] }
  0xf1   : > { %v951_v32 = vmax.f32 %v889_v21, %v891_v26  ;;  %v1478_v44 = vrot.slane %v1476_v35, 4  ;;  %v1481_v45 = vrot.slane %v1479_v36, 5  ;;  %v8493_v36 = vld [vmem:[%s9013_s26 + $0x70] sm:$0xff] }
  0xf2   : > { %v2034_v4 = vsel %vm9179_vm10, %v7243_v57, %v2033_v61  ;;  %v1487_v5 = vrot.slane %v1485_v0, 5 }
  0xf3   : > { %983 = vst [vmem:[#allocation4 + $0x18] sm:$0xff] %v951_v32  ;;  %v1482_v53 = vor.u32 %v1481_v45, %v1478_v44  ;;  %v2109_v8 = vunpack.c.l.b16 %v2034_v4 }
  0xf4   : > { %v744_v39 = vpop.f32.mrf.mxu0 }
  0xf5   : > { %v1483_v63 = vrot.slane %v1482_v53, 4  ;;  %v745_v10 = vadd.f32 %v9056_v29, %v744_v39  ;;  %v2124_v15 = vpack.c.b16 %v2109_v8, %v2108_v2 }
  0xf7   : > { %783 = vmatmul.bf16.gmra.mxu0 %v8491_v38  ;;  %v1488_v11 = vsel %vm9183_vm11, %v1483_v63, %v1487_v5  ;;  %2196 = vmatmul.bf16.vlgmr.msra.gmra.mxu3 %v2124_v15  ;;  %v892_v24 = vmax.f32 %v745_v10, 0.0 }
  0xf8   : > { %v1703_v16 = vunpack.c.l.b16 %v1488_v11 }
  0xfa   : > { %v1014_v27 = vld [vmem:[#allocation4 + $0x10] ss:$2 sm:$0xff]  ;;  %v1046_v50 = vld [vmem:[#allocation4 + $0x11] ss:$2 sm:$0xff]  ;;  %v1718_v20 = vpack.c.b16 %v1703_v16, %v1702_v9 }
  0xfb   : > { %v1076_v54 = vmax.f32 %v1014_v27, %v1046_v50 }
  0xfc   : > { %v746_v58 = vpop.f32.mrf.mxu0  ;;  %1790 = vmatmul.bf16.vlgmr.msra.gmra.mxu1 %v1718_v20 }
  0xfd   : > { %v1132_v59 = vpack.c.bf16 %v1076_v54, %v1076_v54  ;;  %v747_v28 = vadd.f32 %v9056_v29, %v746_v58 }
  0xff   : > { %v1156_v1 = vshrl.u32 %v1132_v59, 16  ;;  %v1159_v7 = vshll.u32 %v1132_v59, 16  ;;  %v893_v33 = vmax.f32 %v747_v28, 0.0 }
 0x101   : > { %v1158_v6 = vrot.slane %v1156_v1, 7 }
 0x103   : > { %v1162_v14 = vrot.slane %v1158_v6, 4  ;;  %v1161_v18 = vor.u32 %v1159_v7, %v1158_v6 }
 0x104   : > { %v749_v19 = vpop.f32.mrf.mxu0 }
 0x105   : > { %v750_v21 = vadd.f32 %v9056_v29, %v749_v19  ;;  %v1321_v22 = vsel %vm9139_vm2, %v1161_v18, %v1320_v12  ;;  %v1324_v23 = vsel %vm9167_vm5, %v1162_v14, %v1323_v13 }
 0x106   : > { %1322 = vst [vmem:[#allocation2 + $0x10] sm:$0xf] %v1321_v22 }
 0x107   : > { %v894_v25 = vmax.f32 %v750_v21, 0.0  ;;  %788 = vmatmul.bf16.gmra.mxu0 %v8492_v17  ;;  %1325 = vst [vmem:[#allocation2 + $0x14] sm:$0x1] %v1324_v23 }
 0x109   : > { %v952_v26 = vmax.f32 %v892_v24, %v894_v25 }
 0x10b   : > { %984 = vst [vmem:[#allocation4 + $0x20] sm:$0xff] %v952_v26 }
 0x10c   : > { %v751_v31 = vpop.f32.mrf.mxu0 }
 0x10d   : > { %v752_v32 = vadd.f32 %v9056_v29, %v751_v31  ;;  %v1412_v46 = vld [vmem:[#allocation2 + $0x10] sm:$0xf] }
 0x10e   : > { %v1490_v54 = vshrl.u32 %v1412_v46, 16  ;;  %v1493_v56 = vshll.u32 %v1412_v46, 16  ;;  %v1444_v62 = vld [vmem:[#allocation2 + $0x14] sm:$0x1]  ;;  %v1978_v63 = vld [vmem:[#allocation2 + $0x10] sm:$0xe] }
 0x10f   : > { %v895_v34 = vmax.f32 %v752_v32, 0.0  ;;  %v7244_v5 = vrot.slane %v1978_v63, 9  ;;  %v2037_v6 = vrot.slane %v1444_v62, 5  ;;  %v7184_v8 = vld [vmem:[#allocation2 + $0x10] sm:$0xf]  ;;  %v1499_v10 = vshll.u32 %v1444_v62, 16 }
 0x110   : > { %v1492_v0 = vrot.slane %v1490_v54, 4  ;;  %v1495_v1 = vrot.slane %v1493_v56, 5  ;;  %v1332_v56 = vld [vmem:[#allocation2 + $0x20] sm:$0xf] }
 0x111   : > { %v953_v35 = vmax.f32 %v893_v33, %v895_v34  ;;  %v2038_v22 = vsel %vm9179_vm10, %v7244_v5, %v2037_v6 }
 0x112   : > { %v1496_v9 = vor.u32 %v1495_v1, %v1492_v0  ;;  %v2110_v33 = vunpack.c.l.b16 %v2038_v22 }
 0x113   : > { %985 = vst [vmem:[#allocation4 + $0x28] sm:$0xff] %v953_v35  ;;  %v1501_v35 = vrot.slane %v1499_v10, 5 }
 0x114   : > { %v754_v37 = vpop.f32.mrf.mxu0  ;;  %v1497_v24 = vrot.slane %v1496_v9, 4 }
 0x115   : > { %v755_v50 = vadd.f32 %v9056_v29, %v754_v37  ;;  %v8495_v37 = vld [vmem:[%s9013_s26 + $0x80] sm:$0xff] }
 0x117   : > { %793 = vmatmul.bf16.gmra.mxu0 %v8493_v36  ;;  %v896_v60 = vmax.f32 %v755_v50, 0.0 }
 0x11a   : > { %v1016_v38 = vld [vmem:[#allocation4 + $0x20] ss:$2 sm:$0xff]  ;;  %v1048_v39 = vld [vmem:[#allocation4 + $0x21] ss:$2 sm:$0xff] }
 0x11b   : > { %v1077_v40 = vmax.f32 %v1016_v38, %v1048_v39 }
 0x11c   : > { %v756_v41 = vpop.f32.mrf.mxu0 }
 0x11d   : > { %v1133_v42 = vpack.c.bf16 %v1077_v40, %v1077_v40  ;;  %v757_v4 = vadd.f32 %v9056_v29, %v756_v41  ;;  %v1502_v40 = vsel %vm9183_vm11, %v1497_v24, %v1501_v35  ;;  %v1341_v24 = vld [vmem:[#allocation2 + $0x2c] sm:$0x1] }
 0x11f   : > { %v1164_v43 = vshrl.u32 %v1133_v42, 16  ;;  %v1167_v45 = vshll.u32 %v1133_v42, 16  ;;  %v897_v20 = vmax.f32 %v757_v4, 0.0 }
 0x121   : > { %v1166_v44 = vrot.slane %v1164_v43, 7 }
 0x123   : > { %v1170_v27 = vrot.slane %v1166_v44, 4  ;;  %v1169_v52 = vor.u32 %v1167_v45, %v1166_v44  ;;  %v1704_v44 = vunpack.c.l.b16 %v1502_v40 }
 0x124   : > { %v759_v53 = vpop.f32.mrf.mxu0 }
 0x125   : > { %v760_v57 = vadd.f32 %v9056_v29, %v759_v53  ;;  %v1327_v58 = vsel %vm9139_vm2, %v1169_v52, %v1326_v47  ;;  %v1330_v59 = vsel %vm9167_vm5, %v1170_v27, %v1329_v48 }
 0x126   : > { %1328 = vst [vmem:[#allocation2 + $0x18] sm:$0xf] %v1327_v58 }
 0x127   : > { %v898_v61 = vmax.f32 %v760_v57, 0.0  ;;  %798 = vmatmul.bf16.gmra.mxu0 %v8494_v51  ;;  %1331 = vst [vmem:[#allocation2 + $0x1c] sm:$0x1] %v1330_v59  ;;  %v1335_v57 = vld [vmem:[#allocation2 + $0x24] sm:$0x1] }
 0x129   : > { %v954_v2 = vmax.f32 %v896_v60, %v898_v61  ;;  %v8496_v60 = vld [vmem:[%s9013_s26 + $0x88] sm:$0xff] }
 0x12b   : > { %986 = vst [vmem:[#allocation4 + $0x30] sm:$0xff] %v954_v2 }
 0x12c   : > { %v761_v7 = vpop.f32.mrf.mxu0 }
 0x12d   : > { %v762_v11 = vadd.f32 %v9056_v29, %v761_v7  ;;  %v8520_v12 = vld [vmem:[#allocation2 + $0x14] sm:$0xf0] }
 0x12e   : > { %v1979_v13 = vld [vmem:[#allocation2 + $0x18] sm:$0xe]  ;;  %v7185_v15 = vor.u32 %v8520_v12, %v7184_v8  ;;  %v1445_v16 = vld [vmem:[#allocation2 + $0x1c] sm:$0x1]  ;;  %v8497_v12 = vld [vmem:[%s9013_s26 + $0x90] sm:$0xff] }
 0x12f   : > { %v1413_v14 = vld [vmem:[#allocation2 + $0x18] sm:$0xf]  ;;  %v7245_v17 = vrot.slane %v1979_v13, 9  ;;  %v899_v21 = vmax.f32 %v762_v11, 0.0  ;;  %v2041_v23 = vrot.slane %v1445_v16, 5  ;;  %v1513_v28 = vshll.u32 %v1445_v16, 16 }
 0x130   : > { %v1504_v18 = vshrl.u32 %v1413_v14, 16  ;;  %v1507_v19 = vshll.u32 %v1413_v14, 16  ;;  %1940 = vmatmul.bf16.gmra.mxu2 %v7185_v15 }
 0x131   : > { %v955_v31 = vmax.f32 %v897_v20, %v899_v21  ;;  %v2042_v32 = vsel %vm9179_vm10, %v7245_v17, %v2041_v23  ;;  %v1515_v42 = vrot.slane %v1513_v28, 5  ;;  %v1338_v23 = vld [vmem:[#allocation2 + $0x28] sm:$0xf]  ;;  %v8498_v28 = vld [vmem:[%s9013_s26 + $0x98] sm:$0xff] }
 0x132   : > { %v1506_v25 = vrot.slane %v1504_v18, 4  ;;  %v1509_v26 = vrot.slane %v1507_v19, 5  ;;  %v2111_v34 = vunpack.c.l.b16 %v2042_v32 }
 0x133   : > { %987 = vst [vmem:[#allocation4 + $0x38] sm:$0xff] %v955_v31 }
 0x134   : > { %v1510_v36 = vor.u32 %v1509_v26, %v1506_v25  ;;  %v764_v38 = vpop.f32.mrf.mxu0  ;;  %v2125_v39 = vpack.c.b16 %v2111_v34, %v2110_v33 }
 0x135   : > { %v765_v59 = vadd.f32 %v9056_v29, %v764_v38 }
 0x136   : > { %v1511_v41 = vrot.slane %v1510_v36, 4  ;;  %2201 = vmatmul.bf16.gmra.mxu3 %v2125_v39 }
 0x137   : > { %803 = vmatmul.bf16.gmra.mxu0 %v8495_v37  ;;  %v900_v2 = vmax.f32 %v765_v59, 0.0 }
 0x138   : > { %v1516_v43 = vsel %vm9183_vm11, %v1511_v41, %v1515_v42 }
 0x139   : > { %v1705_v45 = vunpack.c.l.b16 %v1516_v43 }
 0x13a   : > { %v1018_v47 = vld [vmem:[#allocation4 + $0x30] ss:$2 sm:$0xff]  ;;  %v1050_v48 = vld [vmem:[#allocation4 + $0x31] ss:$2 sm:$0xff] }
 0x13b   : > { %v1719_v46 = vpack.c.b16 %v1705_v45, %v1704_v44  ;;  %v1078_v27 = vmax.f32 %v1018_v47, %v1050_v48 }
 0x13c   : > { %v766_v50 = vpop.f32.mrf.mxu0 }
 0x13d   : > { %1795 = vmatmul.bf16.gmra.mxu1 %v1719_v46  ;;  %v1134_v51 = vpack.c.bf16 %v1078_v27, %v1078_v27  ;;  %v767_v6 = vadd.f32 %v9056_v29, %v766_v50 }
 0x13f   : > { %v1172_v52 = vshrl.u32 %v1134_v51, 16  ;;  %v1175_v54 = vshll.u32 %v1134_v51, 16  ;;  %v901_v9 = vmax.f32 %v767_v6, 0.0 }
 0x141   : > { %v1174_v53 = vrot.slane %v1172_v52, 7 }
 0x143   : > { %v1178_v58 = vrot.slane %v1174_v53, 4  ;;  %v1177_v61 = vor.u32 %v1175_v54, %v1174_v53 }
 0x144   : > { %v769_v62 = vpop.f32.mrf.mxu0 }
 0x145   : > { %v770_v63 = vadd.f32 %v9056_v29, %v769_v62  ;;  %v1333_v0 = vsel %vm9139_vm2, %v1177_v61, %v1332_v56  ;;  %v1336_v1 = vsel %vm9167_vm5, %v1178_v58, %v1335_v57 }
 0x146   : > { %1334 = vst [vmem:[#allocation2 + $0x20] sm:$0xf] %v1333_v0 }
 0x147   : > { %v902_v4 = vmax.f32 %v770_v63, 0.0  ;;  %808 = vmatmul.bf16.gmra.mxu0 %v8496_v60  ;;  %1337 = vst [vmem:[#allocation2 + $0x24] sm:$0x1] %v1336_v1 }
 0x149   : > { %v956_v5 = vmax.f32 %v900_v2, %v902_v4 }
 0x14b   : > { %988 = vst [vmem:[#allocation4 + $0x40] sm:$0xff] %v956_v5 }
 0x14c   : > { %v771_v7 = vpop.f32.mrf.mxu0 }
 0x14d   : > { %v772_v8 = vadd.f32 %v9056_v29, %v771_v7  ;;  %v1414_v22 = vld [vmem:[#allocation2 + $0x20] sm:$0xf] }
 0x14e   : > { %v1518_v33 = vshrl.u32 %v1414_v22, 16  ;;  %v1521_v34 = vshll.u32 %v1414_v22, 16  ;;  %v1446_v40 = vld [vmem:[#allocation2 + $0x24] sm:$0x1]  ;;  %v1980_v41 = vld [vmem:[#allocation2 + $0x20] sm:$0xe] }
 0x14f   : > { %v903_v10 = vmax.f32 %v772_v8, 0.0  ;;  %v7246_v46 = vrot.slane %v1980_v41, 9  ;;  %v2045_v47 = vrot.slane %v1446_v40, 5  ;;  %v7188_v27 = vld [vmem:[#allocation2 + $0x20] sm:$0xf]  ;;  %v1527_v51 = vshll.u32 %v1446_v40, 16 }
 0x150   : > { %v1520_v42 = vrot.slane %v1518_v33, 4  ;;  %v1523_v43 = vrot.slane %v1521_v34, 5  ;;  %v1344_v34 = vld [vmem:[#allocation2 + $0x30] sm:$0xf] }
 0x151   : > { %v957_v11 = vmax.f32 %v901_v9, %v903_v10  ;;  %v2046_v0 = vsel %vm9179_vm10, %v7246_v46, %v2045_v47 }
 0x152   : > { %v1524_v50 = vor.u32 %v1523_v43, %v1520_v42  ;;  %v2112_v9 = vunpack.c.l.b16 %v2046_v0 }
 0x153   : > { %989 = vst [vmem:[#allocation4 + $0x48] sm:$0xff] %v957_v11  ;;  %v1529_v11 = vrot.slane %v1527_v51, 5 }
 0x154   : > { %v774_v13 = vpop.f32.mrf.mxu0  ;;  %v1525_v2 = vrot.slane %v1524_v50, 4 }
 0x155   : > { %v775_v26 = vadd.f32 %v9056_v29, %v774_v13  ;;  %v8499_v13 = vld [vmem:[%s9013_s26 + $0xa0] sm:$0xff] }
 0x157   : > { %813 = vmatmul.bf16.gmra.mxu0 %v8497_v12  ;;  %v904_v38 = vmax.f32 %v775_v26, 0.0 }
 0x15a   : > { %v1020_v14 = vld [vmem:[#allocation4 + $0x40] ss:$2 sm:$0xff]  ;;  %v1052_v15 = vld [vmem:[#allocation4 + $0x41] ss:$2 sm:$0xff] }
 0x15b   : > { %v1079_v16 = vmax.f32 %v1020_v14, %v1052_v15 }
 0x15c   : > { %v776_v17 = vpop.f32.mrf.mxu0 }
 0x15d   : > { %v1135_v18 = vpack.c.bf16 %v1079_v16, %v1079_v16  ;;  %v777_v45 = vadd.f32 %v9056_v29, %v776_v17  ;;  %v1530_v16 = vsel %vm9183_vm11, %v1525_v2, %v1529_v11  ;;  %v8502_v11 = vld [vmem:[%s9013_s26 + $0xb8] sm:$0xff] }
 0x15f   : > { %v1180_v19 = vshrl.u32 %v1135_v18, 16  ;;  %v1183_v21 = vshll.u32 %v1135_v18, 16  ;;  %v905_v62 = vmax.f32 %v777_v45, 0.0 }
 0x161   : > { %v1182_v20 = vrot.slane %v1180_v19, 7 }
 0x163   : > { %v1186_v25 = vrot.slane %v1182_v20, 4  ;;  %v1185_v31 = vor.u32 %v1183_v21, %v1182_v20  ;;  %v1706_v20 = vunpack.c.l.b16 %v1530_v16 }
 0x164   : > { %v779_v32 = vpop.f32.mrf.mxu0 }
 0x165   : > { %v780_v35 = vadd.f32 %v9056_v29, %v779_v32  ;;  %v1339_v36 = vsel %vm9139_vm2, %v1185_v31, %v1338_v23  ;;  %v1342_v37 = vsel %vm9167_vm5, %v1186_v25, %v1341_v24 }
 0x166   : > { %1340 = vst [vmem:[#allocation2 + $0x28] sm:$0xf] %v1339_v36 }
 0x167   : > { %v906_v39 = vmax.f32 %v780_v35, 0.0  ;;  %818 = vmatmul.bf16.gmra.mxu0 %v8498_v28  ;;  %1343 = vst [vmem:[#allocation2 + $0x2c] sm:$0x1] %v1342_v37  ;;  %v1347_v35 = vld [vmem:[#allocation2 + $0x34] sm:$0x1] }
 0x169   : > { %v958_v44 = vmax.f32 %v904_v38, %v906_v39  ;;  %v8500_v39 = vld [vmem:[%s9013_s26 + $0xa8] sm:$0xff] }
 0x16b   : > { %990 = vst [vmem:[#allocation4 + $0x50] sm:$0xff] %v958_v44 }
 0x16c   : > { %v781_v48 = vpop.f32.mrf.mxu0 }
 0x16d   : > { %v782_v52 = vadd.f32 %v9056_v29, %v781_v48  ;;  %v8521_v53 = vld [vmem:[#allocation2 + $0x24] sm:$0xf0] }
 0x16e   : > { %v1981_v54 = vld [vmem:[#allocation2 + $0x28] sm:$0xe]  ;;  %v7189_v57 = vor.u32 %v8521_v53, %v7188_v27  ;;  %v1447_v58 = vld [vmem:[#allocation2 + $0x2c] sm:$0x1] }
 0x16f   : > { %v1415_v56 = vld [vmem:[#allocation2 + $0x28] sm:$0xf]  ;;  %v7247_v59 = vrot.slane %v1981_v54, 9  ;;  %v907_v63 = vmax.f32 %v782_v52, 0.0  ;;  %v2049_v1 = vrot.slane %v1447_v58, 5  ;;  %v1541_v6 = vshll.u32 %v1447_v58, 16 }
 0x170   : > { %v1532_v60 = vshrl.u32 %v1415_v56, 16  ;;  %v1535_v61 = vshll.u32 %v1415_v56, 16  ;;  %1945 = vmatmul.bf16.gmra.mxu2 %v7189_v57 }
 0x171   : > { %v959_v7 = vmax.f32 %v905_v62, %v907_v63  ;;  %v2050_v8 = vsel %vm9179_vm10, %v7247_v59, %v2049_v1  ;;  %v1543_v18 = vrot.slane %v1541_v6, 5  ;;  %v8501_v59 = vld [vmem:[%s9013_s26 + $0xb0] sm:$0xff] }
 0x172   : > { %v1534_v4 = vrot.slane %v1532_v60, 4  ;;  %v1537_v5 = vrot.slane %v1535_v61, 5  ;;  %v2113_v10 = vunpack.c.l.b16 %v2050_v8  ;;  %v1353_v8 = vld [vmem:[#allocation2 + $0x3c] sm:$0x1] }
 0x173   : > { %991 = vst [vmem:[#allocation4 + $0x58] sm:$0xff] %v959_v7  ;;  %v1936_v37 = vpop.f32.mrf.mxu2  ;;  %v1350_v7 = vld [vmem:[#allocation2 + $0x38] sm:$0xf] }
 0x174   : > { %v1538_v12 = vor.u32 %v1537_v5, %v1534_v4  ;;  %v784_v14 = vpop.f32.mrf.mxu0  ;;  %v2126_v15 = vpack.c.b16 %v2113_v10, %v2112_v9 }
 0x175   : > { %v785_v38 = vadd.f32 %v9056_v29, %v784_v14 }
 0x176   : > { %v1539_v17 = vrot.slane %v1538_v12, 4  ;;  %2206 = vmatmul.bf16.gmra.mxu3 %v2126_v15 }
 0x177   : > { %823 = vmatmul.bf16.gmra.mxu0 %v8499_v13  ;;  %v908_v47 = vmax.f32 %v785_v38, 0.0 }
 0x178   : > { %v1544_v19 = vsel %vm9183_vm11, %v1539_v17, %v1543_v18 }
 0x179   : > { %v1707_v21 = vunpack.c.l.b16 %v1544_v19  ;;  %v1791_v41 = vpop.f32.mrf.mxu1 }
 0x17a   : > { %v1022_v23 = vld [vmem:[#allocation4 + $0x50] ss:$2 sm:$0xff]  ;;  %v1054_v24 = vld [vmem:[#allocation4 + $0x51] ss:$2 sm:$0xff]  ;;  %v1937_v43 = vadd.f32 %v1936_v37, %v1791_v41  ;;  %v2197_v27 = vpop.f32.mrf.mxu3 }
 0x17b   : > { %v1720_v22 = vpack.c.b16 %v1707_v21, %v1706_v20  ;;  %v1080_v25 = vmax.f32 %v1022_v23, %v1054_v24 }
 0x17c   : > { %v786_v26 = vpop.f32.mrf.mxu0  ;;  %v9258_v50 = vadd.f32 %v2197_v27, %v1937_v43  ;;  %v9274_v27 = vpop.f32.mrf.mxu2 }
 0x17d   : > { %1800 = vmatmul.bf16.gmra.mxu1 %v1720_v22  ;;  %v1136_v28 = vpack.c.bf16 %v1080_v25, %v1080_v25  ;;  %v787_v52 = vadd.f32 %v9056_v29, %v786_v26 }
 0x17f   : > { %v1188_v31 = vshrl.u32 %v1136_v28, 16  ;;  %v1191_v33 = vshll.u32 %v1136_v28, 16  ;;  %v909_v56 = vmax.f32 %v787_v52, 0.0 }
 0x181   : > { %v1190_v32 = vrot.slane %v1188_v31, 7 }
 0x183   : > { %v1194_v36 = vrot.slane %v1190_v32, 4  ;;  %v1193_v40 = vor.u32 %v1191_v33, %v1190_v32 }
 0x184   : > { %v789_v42 = vpop.f32.mrf.mxu0 }
 0x185   : > { %v790_v44 = vadd.f32 %v9056_v29, %v789_v42  ;;  %v1345_v45 = vsel %vm9139_vm2, %v1193_v40, %v1344_v34  ;;  %v1348_v46 = vsel %vm9167_vm5, %v1194_v36, %v1347_v35 }
 0x186   : > { %1346 = vst [vmem:[#allocation2 + $0x30] sm:$0xf] %v1345_v45 }
 0x187   : > { %v910_v48 = vmax.f32 %v790_v44, 0.0  ;;  %828 = vmatmul.bf16.gmra.mxu0 %v8500_v39  ;;  %1349 = vst [vmem:[#allocation2 + $0x34] sm:$0x1] %v1348_v46 }
 0x189   : > { %v960_v51 = vmax.f32 %v908_v47, %v910_v48 }
 0x18b   : > { %992 = vst [vmem:[#allocation4 + $0x60] sm:$0xff] %v960_v51  ;;  %v9276_v51 = vpop.f32.mrf.mxu1 }
 0x18c   : > { %v791_v53 = vpop.f32.mrf.mxu0 }
 0x18d   : > { %v792_v54 = vadd.f32 %v9056_v29, %v791_v53  ;;  %v1416_v6 = vld [vmem:[#allocation2 + $0x30] sm:$0xf] }
 0x18e   : > { %v1546_v14 = vshrl.u32 %v1416_v6, 16  ;;  %v1549_v15 = vshll.u32 %v1416_v6, 16  ;;  %v1448_v21 = vld [vmem:[#allocation2 + $0x34] sm:$0x1]  ;;  %v1982_v22 = vld [vmem:[#allocation2 + $0x30] sm:$0xe] }
 0x18f   : > { %v911_v57 = vmax.f32 %v792_v54, 0.0  ;;  %v7248_v28 = vrot.slane %v1982_v22, 9  ;;  %v2053_v31 = vrot.slane %v1448_v21, 5  ;;  %v7192_v33 = vld [vmem:[#allocation2 + $0x30] sm:$0xf]  ;;  %v1555_v35 = vshll.u32 %v1448_v21, 16 }
 0x190   : > { %v1548_v23 = vrot.slane %v1546_v14, 4  ;;  %v1551_v24 = vrot.slane %v1549_v15, 5 }
 0x191   : > { %v961_v58 = vmax.f32 %v909_v56, %v911_v57  ;;  %v2054_v47 = vsel %vm9179_vm10, %v7248_v28, %v2053_v31  ;;  %v9292_v28 = vld [vmem:[%s11076_s2] ss:$0 sm:$0xff] }
 0x192   : > { %v1552_v34 = vor.u32 %v1551_v24, %v1548_v23  ;;  %v1356_v23 = vld [vmem:[#allocation2 + $0x40] sm:$0xf]  ;;  %v1359_v24 = vld [vmem:[#allocation2 + $0x44] sm:$0x1] }
 0x193   : > { %993 = vst [vmem:[#allocation4 + $0x68] sm:$0xff] %v961_v58  ;;  %v9280_v58 = vpop.f32.mrf.mxu3 }
 0x194   : > { %v794_v60 = vpop.f32.mrf.mxu0 }
 0x195   : > { %v795_v10 = vadd.f32 %v9056_v29, %v794_v60 }
 0x197   : > { %833 = vmatmul.bf16.gmra.mxu0 %v8501_v59  ;;  %v912_v19 = vmax.f32 %v795_v10, 0.0  ;;  %v2114_v59 = vunpack.c.l.b16 %v2054_v47 }
 0x19a   : > { %v1024_v61 = vld [vmem:[#allocation4 + $0x60] ss:$2 sm:$0xff]  ;;  %v1056_v62 = vld [vmem:[#allocation4 + $0x61] ss:$2 sm:$0xff] }
 0x19b   : > { %v1081_v63 = vmax.f32 %v1024_v61, %v1056_v62  ;;  %v1557_v61 = vrot.slane %v1555_v35, 5 }
 0x19c   : > { %v796_v0 = vpop.f32.mrf.mxu0 }
 0x19d   : > { %v1137_v1 = vpack.c.bf16 %v1081_v63, %v1081_v63  ;;  %v797_v26 = vadd.f32 %v9056_v29, %v796_v0  ;;  %v8503_v63 = vld [vmem:[%s9013_s26 + $0xc0] sm:$0xff] }
 0x19f   : > { %v1196_v2 = vshrl.u32 %v1137_v1, 16  ;;  %v1199_v5 = vshll.u32 %v1137_v1, 16  ;;  %v913_v45 = vmax.f32 %v797_v26, 0.0 }
 0x1a1   : > { %v1198_v4 = vrot.slane %v1196_v2, 7 }
 0x1a3   : > { %v1202_v9 = vrot.slane %v1198_v4, 4  ;;  %v1201_v12 = vor.u32 %v1199_v5, %v1198_v4 }
 0x1a4   : > { %v799_v13 = vpop.f32.mrf.mxu0 }
 0x1a5   : > { %v800_v16 = vadd.f32 %v9056_v29, %v799_v13  ;;  %v1351_v17 = vsel %vm9139_vm2, %v1201_v12, %v1350_v7  ;;  %v1354_v18 = vsel %vm9167_vm5, %v1202_v9, %v1353_v8 }
 0x1a6   : > { %1352 = vst [vmem:[#allocation2 + $0x38] sm:$0xf] %v1351_v17 }
 0x1a7   : > { %v914_v20 = vmax.f32 %v800_v16, 0.0  ;;  %838 = vmatmul.bf16.gmra.mxu0 %v8502_v11  ;;  %1355 = vst [vmem:[#allocation2 + $0x3c] sm:$0x1] %v1354_v18 }
 0x1a9   : > { %v962_v25 = vmax.f32 %v912_v19, %v914_v20 }
 0x1ab   : > { %994 = vst [vmem:[#allocation4 + $0x70] sm:$0xff] %v962_v25 }
 0x1ac   : > { %v801_v32 = vpop.f32.mrf.mxu0 }
 0x1ad   : > { %v802_v36 = vadd.f32 %v9056_v29, %v801_v32  ;;  %v8522_v37 = vld [vmem:[#allocation2 + $0x34] sm:$0xf0]  ;;  %v1553_v29 = vrot.slane %v1552_v34, 4  ;;  %v8504_v32 = vld [vmem:[%s9013_s26 + $0xc8] sm:$0xff] }
 0x1ae   : > { %v1983_v38 = vld [vmem:[#allocation2 + $0x38] sm:$0xe]  ;;  %v7193_v40 = vor.u32 %v8522_v37, %v7192_v33  ;;  %v1449_v41 = vld [vmem:[#allocation2 + $0x3c] sm:$0x1] }
 0x1af   : > { %v1417_v39 = vld [vmem:[#allocation2 + $0x38] sm:$0xf]  ;;  %v7249_v42 = vrot.slane %v1983_v38, 9  ;;  %v915_v46 = vmax.f32 %v802_v36, 0.0  ;;  %v2057_v48 = vrot.slane %v1449_v41, 5  ;;  %v1569_v54 = vshll.u32 %v1449_v41, 16 }
 0x1b0   : > { %v1560_v43 = vshrl.u32 %v1417_v39, 16  ;;  %v1563_v44 = vshll.u32 %v1417_v39, 16  ;;  %1950 = vmatmul.bf16.gmra.mxu2 %v7193_v40  ;;  %v1558_v2 = vsel %vm9183_vm11, %v1553_v29, %v1557_v61 }
 0x1b1   : > { %v963_v56 = vmax.f32 %v913_v45, %v915_v46  ;;  %v2058_v57 = vsel %vm9179_vm10, %v7249_v42, %v2057_v48  ;;  %v1571_v5 = vrot.slane %v1569_v54, 5  ;;  %v1708_v7 = vunpack.c.l.b16 %v1558_v2  ;;  %v8505_v46 = vld [vmem:[%s9013_s26 + $0xd0] sm:$0xff] }
 0x1b2   : > { %v1562_v52 = vrot.slane %v1560_v43, 4  ;;  %v1565_v53 = vrot.slane %v1563_v44, 5  ;;  %v2115_v60 = vunpack.c.l.b16 %v2058_v57 }
 0x1b3   : > { %995 = vst [vmem:[#allocation4 + $0x78] sm:$0xff] %v963_v56  ;;  %v1941_v9 = vpop.f32.mrf.mxu2  ;;  %v1418_v56 = vld [vmem:[#allocation2 + $0x50] sm:$0xf] }
 0x1b4   : > { %v1566_v62 = vor.u32 %v1565_v53, %v1562_v52  ;;  %v804_v0 = vpop.f32.mrf.mxu0  ;;  %v2127_v1 = vpack.c.b16 %v2115_v60, %v2114_v59  ;;  %v1574_v59 = vshrl.u32 %v1418_v56, 16  ;;  %v1577_v60 = vshll.u32 %v1418_v56, 16 }
 0x1b5   : > { %v805_v31 = vadd.f32 %v9292_v28, %v804_v0  ;;  %v1365_v0 = vld [vmem:[#allocation2 + $0x5c] sm:$0x1] }
 0x1b6   : > { %v1567_v4 = vrot.slane %v1566_v62, 4  ;;  %2211 = vmatmul.bf16.gmra.mxu3 %v2127_v1 }
 0x1b7   : > { %843 = vmatmul.bf16.gmra.mxu0 %v8503_v63  ;;  %v916_v37 = vmax.f32 %v805_v31, 0.0  ;;  %v1362_v63 = vld [vmem:[#allocation2 + $0x58] sm:$0xf] }
 0x1b8   : > { %v1572_v6 = vsel %vm9183_vm11, %v1567_v4, %v1571_v5  ;;  %v8506_v4 = vld [vmem:[%s9013_s26 + $0xd8] sm:$0xff] }
 0x1b9   : > { %v1709_v8 = vunpack.c.l.b16 %v1572_v6  ;;  %v2202_v15 = vpop.f32.mrf.mxu3 }
 0x1ba   : > { %v1796_v10 = vpop.f32.mrf.mxu1  ;;  %v1026_v13 = vld [vmem:[#allocation4 + $0x70] ss:$2 sm:$0xff]  ;;  %v1058_v14 = vld [vmem:[#allocation4 + $0x71] ss:$2 sm:$0xff] }
 0x1bb   : > { %v1942_v11 = vadd.f32 %v1941_v9, %v1796_v10  ;;  %v1721_v12 = vpack.c.b16 %v1709_v8, %v1708_v7  ;;  %v1082_v16 = vmax.f32 %v1026_v13, %v1058_v14  ;;  %v1576_v7 = vrot.slane %v1574_v59, 4  ;;  %v1984_v13 = vld [vmem:[#allocation2 + $0x50] sm:$0xe] }
 0x1bc   : > { %v806_v18 = vpop.f32.mrf.mxu0  ;;  %v1579_v8 = vrot.slane %v1577_v60, 5  ;;  %v8507_v60 = vld [vmem:[%s9013_s26 + $0xe0] sm:$0xff] }
 0x1bd   : > { %v9287_v17 = vadd.f32 %v2202_v15, %v1942_v11  ;;  %1805 = vmatmul.bf16.gmra.mxu1 %v1721_v12  ;;  %v1138_v19 = vpack.c.bf16 %v1082_v16, %v1082_v16  ;;  %v807_v40 = vadd.f32 %v9292_v28, %v806_v18  ;;  %v1450_v12 = vld [vmem:[#allocation2 + $0x54] sm:$0x1] }
 0x1be   : > { %v1580_v16 = vor.u32 %v1579_v8, %v1576_v7  ;;  %v1583_v18 = vshll.u32 %v1450_v12, 16 }
 0x1bf   : > { %v1204_v20 = vshrl.u32 %v1138_v19, 16  ;;  %v1207_v22 = vshll.u32 %v1138_v19, 16  ;;  %v917_v43 = vmax.f32 %v807_v40, 0.0 }
 0x1c1   : > { %v1206_v21 = vrot.slane %v1204_v20, 7  ;;  %v7250_v20 = vrot.slane %v1984_v13, 9 }
 0x1c3   : > { %v1209_v25 = vor.u32 %v1207_v22, %v1206_v21  ;;  %v1210_v26 = vrot.slane %v1206_v21, 4  ;;  %v2061_v21 = vrot.slane %v1450_v12, 5 }
 0x1c4   : > { %v809_v33 = vpop.f32.mrf.mxu0 }
 0x1c5   : > { %v810_v34 = vadd.f32 %v9292_v28, %v809_v33  ;;  %v1357_v35 = vsel %vm9139_vm2, %v1209_v25, %v1356_v23  ;;  %v1360_v36 = vsel %vm9167_vm5, %v1210_v26, %v1359_v24  ;;  %v7196_v23 = vld [vmem:[#allocation2 + $0x50] sm:$0xf]  ;;  %v1581_v25 = vrot.slane %v1580_v16, 4 }
 0x1c6   : > { %1358 = vst [vmem:[#allocation2 + $0x40] sm:$0xf] %v1357_v35  ;;  %v1585_v26 = vrot.slane %v1583_v18, 5 }
 0x1c7   : > { %v918_v38 = vmax.f32 %v810_v34, 0.0  ;;  %848 = vmatmul.bf16.gmra.mxu0 %v8504_v32  ;;  %1361 = vst [vmem:[#allocation2 + $0x44] sm:$0x1] %v1360_v36  ;;  %v2062_v34 = vsel %vm9179_vm10, %v7250_v20, %v2061_v21  ;;  %v1368_v20 = vld [vmem:[#allocation2 + $0x60] sm:$0xf] }
 0x1c8   : > { %v1371_v21 = vld [vmem:[#allocation2 + $0x64] sm:$0x1] }
 0x1c9   : > { %v964_v39 = vmax.f32 %v916_v37, %v918_v38 }
 0x1cb   : > { %996 = vst [vmem:[#allocation4 + $0x80] sm:$0xff] %v964_v39 }
 0x1cc   : > { %v811_v41 = vpop.f32.mrf.mxu0 }
 0x1cd   : > { %v812_v42 = vadd.f32 %v9292_v28, %v811_v41 }
 0x1cf   : > { %v919_v44 = vmax.f32 %v812_v42, 0.0 }
 0x1d1   : > { %v965_v45 = vmax.f32 %v917_v43, %v919_v44  ;;  %v9315_v44 = vpop.f32.mrf.mxu2 }
 0x1d3   : > { %997 = vst [vmem:[#allocation4 + $0x88] sm:$0xff] %v965_v45  ;;  %v9317_v45 = vpop.f32.mrf.mxu1 }
 0x1d4   : > { %v814_v47 = vpop.f32.mrf.mxu0 }
 0x1d5   : > { %v815_v2 = vadd.f32 %v9292_v28, %v814_v47 }
 0x1d7   : > { %853 = vmatmul.bf16.gmra.mxu0 %v8505_v46  ;;  %v920_v14 = vmax.f32 %v815_v2, 0.0  ;;  %v2116_v46 = vunpack.c.l.b16 %v2062_v34 }
 0x1da   : > { %v1028_v48 = vld [vmem:[#allocation4 + $0x80] ss:$2 sm:$0xff]  ;;  %v1060_v29 = vld [vmem:[#allocation4 + $0x81] ss:$2 sm:$0xff] }
 0x1db   : > { %v1083_v52 = vmax.f32 %v1028_v48, %v1060_v29 }
 0x1dc   : > { %v816_v53 = vpop.f32.mrf.mxu0 }
 0x1dd   : > { %v1139_v54 = vpack.c.bf16 %v1083_v52, %v1083_v52  ;;  %v817_v22 = vadd.f32 %v9292_v28, %v816_v53 }
 0x1df   : > { %v1212_v57 = vshrl.u32 %v1139_v54, 16  ;;  %v1215_v62 = vshll.u32 %v1139_v54, 16  ;;  %v921_v41 = vmax.f32 %v817_v22, 0.0  ;;  %v9321_v54 = vpop.f32.mrf.mxu3 }
 0x1e1   : > { %v1214_v61 = vrot.slane %v1212_v57, 7  ;;  %v1586_v57 = vsel %vm9183_vm11, %v1581_v25, %v1585_v26 }
 0x1e3   : > { %v1218_v1 = vrot.slane %v1214_v61, 4  ;;  %v1217_v5 = vor.u32 %v1215_v62, %v1214_v61 }
 0x1e4   : > { %v819_v6 = vpop.f32.mrf.mxu0 }
 0x1e5   : > { %v820_v9 = vadd.f32 %v9292_v28, %v819_v6  ;;  %v1363_v10 = vsel %vm9139_vm2, %v1217_v5, %v1362_v63  ;;  %v1366_v11 = vsel %vm9167_vm5, %v1218_v1, %v1365_v0  ;;  %v1710_v1 = vunpack.c.l.b16 %v1586_v57 }
 0x1e6   : > { %1364 = vst [vmem:[#allocation2 + $0x58] sm:$0xf] %v1363_v10 }
 0x1e7   : > { %v922_v15 = vmax.f32 %v820_v9, 0.0  ;;  %858 = vmatmul.bf16.gmra.mxu0 %v8506_v4  ;;  %1367 = vst [vmem:[#allocation2 + $0x5c] sm:$0x1] %v1366_v11 }
 0x1e9   : > { %v966_v19 = vmax.f32 %v920_v14, %v922_v15 }
 0x1eb   : > { %998 = vst [vmem:[#allocation4 + $0x90] sm:$0xff] %v966_v19 }
 0x1ec   : > { %v821_v24 = vpop.f32.mrf.mxu0 }
 0x1ed   : > { %v822_v31 = vadd.f32 %v9292_v28, %v821_v24  ;;  %v8523_v32 = vld [vmem:[#allocation2 + $0x54] sm:$0xf0]  ;;  %v8508_v24 = vld [vmem:[%s9013_s26 + $0xe8] sm:$0xff] }
 0x1ee   : > { %v1985_v33 = vld [vmem:[#allocation2 + $0x58] sm:$0xe]  ;;  %v7197_v36 = vor.u32 %v8523_v32, %v7196_v23  ;;  %v1451_v37 = vld [vmem:[#allocation2 + $0x5c] sm:$0x1] }
 0x1ef   : > { %v1419_v35 = vld [vmem:[#allocation2 + $0x58] sm:$0xf]  ;;  %v7251_v38 = vrot.slane %v1985_v33, 9  ;;  %v923_v42 = vmax.f32 %v822_v31, 0.0  ;;  %v2065_v43 = vrot.slane %v1451_v37, 5  ;;  %v1597_v29 = vshll.u32 %v1451_v37, 16 }
 0x1f0   : > { %v1588_v39 = vshrl.u32 %v1419_v35, 16  ;;  %v1591_v40 = vshll.u32 %v1419_v35, 16  ;;  %1955 = vmatmul.bf16.gmra.mxu2 %v7197_v36 }
 0x1f1   : > { %v967_v52 = vmax.f32 %v921_v41, %v923_v42  ;;  %v2066_v53 = vsel %vm9179_vm10, %v7251_v38, %v2065_v43  ;;  %v1599_v0 = vrot.slane %v1597_v29, 5  ;;  %v8509_v43 = vld [vmem:[%s9013_s26 + $0xf0] sm:$0xff] }
 0x1f2   : > { %v1590_v47 = vrot.slane %v1588_v39, 4  ;;  %v1593_v48 = vrot.slane %v1591_v40, 5  ;;  %v2117_v56 = vunpack.c.l.b16 %v2066_v53 }
 0x1f3   : > { %999 = vst [vmem:[#allocation4 + $0x98] sm:$0xff] %v967_v52  ;;  %v1946_v5 = vpop.f32.mrf.mxu2 }
 0x1f4   : > { %v1594_v59 = vor.u32 %v1593_v48, %v1590_v47  ;;  %v824_v61 = vpop.f32.mrf.mxu0  ;;  %v2128_v62 = vpack.c.b16 %v2117_v56, %v2116_v46 }
 0x1f5   : > { %v825_v23 = vadd.f32 %v9292_v28, %v824_v61  ;;  %v1374_v61 = vld [vmem:[#allocation2 + $0x68] sm:$0xf] }
 0x1f6   : > { %v1595_v63 = vrot.slane %v1594_v59, 4  ;;  %2216 = vmatmul.bf16.gmra.mxu3 %v2128_v62  ;;  %v1377_v62 = vld [vmem:[#allocation2 + $0x6c] sm:$0x1] }
 0x1f7   : > { %863 = vmatmul.bf16.gmra.mxu0 %v8507_v60  ;;  %v924_v34 = vmax.f32 %v825_v23, 0.0  ;;  %v8582_v23 = vld [vmem:[%s11077_s3 + $0x178] sm:$0xff] }
 0x1f8   : > { %v1600_v2 = vsel %vm9183_vm11, %v1595_v63, %v1599_v0  ;;  %3074 = vmatpush.bf16.msrb.mxu3 %v8582_v23 }
 0x1f9   : > { %v1711_v4 = vunpack.c.l.b16 %v1600_v2  ;;  %v2207_v11 = vpop.f32.mrf.mxu3 }
 0x1fa   : > { %v1801_v6 = vpop.f32.mrf.mxu1  ;;  %v1030_v9 = vld [vmem:[#allocation4 + $0x90] ss:$2 sm:$0xff]  ;;  %v1062_v10 = vld [vmem:[#allocation4 + $0x91] ss:$2 sm:$0xff] }
 0x1fb   : > { %v1947_v7 = vadd.f32 %v1946_v5, %v1801_v6  ;;  %v1722_v8 = vpack.c.b16 %v1711_v4, %v1710_v1  ;;  %v1084_v12 = vmax.f32 %v1030_v9, %v1062_v10  ;;  %v8510_v1 = vld [vmem:[%s9013_s26 + $0xf8] sm:$0xff] }
 0x1fc   : > { %v826_v14 = vpop.f32.mrf.mxu0 }
 0x1fd   : > { %v9328_v13 = vadd.f32 %v2207_v11, %v1947_v7  ;;  %1810 = vmatmul.bf16.gmra.mxu1 %v1722_v8  ;;  %v1140_v15 = vpack.c.bf16 %v1084_v12, %v1084_v12  ;;  %v827_v37 = vadd.f32 %v9292_v28, %v826_v14 }
 0x1ff   : > { %v1220_v16 = vshrl.u32 %v1140_v15, 16  ;;  %v1223_v19 = vshll.u32 %v1140_v15, 16  ;;  %v925_v40 = vmax.f32 %v827_v37, 0.0 }
 0x201   : > { %v1222_v18 = vrot.slane %v1220_v16, 7 }
 0x203   : > { %v1226_v22 = vrot.slane %v1222_v18, 4  ;;  %v1225_v25 = vor.u32 %v1223_v19, %v1222_v18 }
 0x204   : > { %v829_v26 = vpop.f32.mrf.mxu0 }
 0x205   : > { %v830_v31 = vadd.f32 %v9292_v28, %v829_v26  ;;  %v1369_v32 = vsel %vm9139_vm2, %v1225_v25, %v1368_v20  ;;  %v1372_v33 = vsel %vm9167_vm5, %v1226_v22, %v1371_v21  ;;  %v8574_v22 = vld [vmem:[%s11077_s3 + $0x138] sm:$0xff] }
 0x206   : > { %1370 = vst [vmem:[#allocation2 + $0x60] sm:$0xf] %v1369_v32  ;;  %2800 = vmatpush.bf16.msrb.mxu2 %v8574_v22 }
 0x207   : > { %v926_v35 = vmax.f32 %v830_v31, 0.0  ;;  %868 = vmatmul.bf16.gmra.mxu0 %v8508_v24  ;;  %1373 = vst [vmem:[#allocation2 + $0x64] sm:$0x1] %v1372_v33  ;;  %v8566_v24 = vld [vmem:[%s11077_s3 + $0xf8] sm:$0xff] }
 0x208   : > { %2382 = vmatpush.bf16.msrb.mxu1 %v8566_v24 }
 0x209   : > { %v968_v36 = vmax.f32 %v924_v34, %v926_v35 }
 0x20b   : > { %1000 = vst [vmem:[#allocation4 + $0xa0] sm:$0xff] %v968_v36 }
 0x20c   : > { %v831_v38 = vpop.f32.mrf.mxu0 }
 0x20d   : > { %v832_v39 = vadd.f32 %v9292_v28, %v831_v38  ;;  %v1420_v60 = vld [vmem:[#allocation2 + $0x60] sm:$0xf] }
 0x20e   : > { %v1602_v5 = vshrl.u32 %v1420_v60, 16  ;;  %v1605_v6 = vshll.u32 %v1420_v60, 16  ;;  %v1452_v12 = vld [vmem:[#allocation2 + $0x64] sm:$0x1]  ;;  %v1986_v14 = vld [vmem:[#allocation2 + $0x60] sm:$0xe] }
 0x20f   : > { %v927_v41 = vmax.f32 %v832_v39, 0.0  ;;  %v7252_v20 = vrot.slane %v1986_v14, 9  ;;  %v2069_v21 = vrot.slane %v1452_v12, 5  ;;  %v7200_v26 = vld [vmem:[#allocation2 + $0x60] sm:$0xf]  ;;  %v1611_v32 = vshll.u32 %v1452_v12, 16 }
 0x210   : > { %v1604_v15 = vrot.slane %v1602_v5, 4  ;;  %v1607_v16 = vrot.slane %v1605_v6, 5 }
 0x211   : > { %v969_v42 = vmax.f32 %v925_v40, %v927_v41 }
 0x212   : > { %v1608_v31 = vor.u32 %v1607_v16, %v1604_v15 }
 0x213   : > { %1001 = vst [vmem:[#allocation4 + $0xa8] sm:$0xff] %v969_v42 }
 0x214   : > { %v834_v46 = vpop.f32.mrf.mxu0 }
 0x215   : > { %v835_v0 = vadd.f32 %v9292_v28, %v834_v46  ;;  %v2070_v46 = vsel %vm9179_vm10, %v7252_v20, %v2069_v21 }
 0x217   : > { %873 = vmatmul.bf16.gmra.mxu0 %v8509_v43  ;;  %v928_v10 = vmax.f32 %v835_v0, 0.0  ;;  %v1613_v0 = vrot.slane %v1611_v32, 5  ;;  %v1383_v32 = vld [vmem:[#allocation2 + $0x74] sm:$0x1] }
 0x21a   : > { %v1032_v47 = vld [vmem:[#allocation4 + $0xa0] ss:$2 sm:$0xff]  ;;  %v1064_v48 = vld [vmem:[#allocation4 + $0xa1] ss:$2 sm:$0xff] }
 0x21b   : > { %v1085_v29 = vmax.f32 %v1032_v47, %v1064_v48  ;;  %v9360_v48 = vpop.f32.mrf.mxu2 }
 0x21c   : > { %v836_v52 = vpop.f32.mrf.mxu0 }
 0x21d   : > { %v1141_v53 = vpack.c.bf16 %v1085_v29, %v1085_v29  ;;  %v837_v19 = vadd.f32 %v9292_v28, %v836_v52  ;;  %v9362_v29 = vpop.f32.mrf.mxu1  ;;  %v1609_v52 = vrot.slane %v1608_v31, 4  ;;  %v1380_v31 = vld [vmem:[#allocation2 + $0x70] sm:$0xf] }
 0x21f   : > { %v1228_v56 = vshrl.u32 %v1141_v53, 16  ;;  %v1231_v59 = vshll.u32 %v1141_v53, 16  ;;  %v929_v42 = vmax.f32 %v837_v19, 0.0  ;;  %v1614_v5 = vsel %vm9183_vm11, %v1609_v52, %v1613_v0 }
 0x221   : > { %v1230_v57 = vrot.slane %v1228_v56, 7 }
 0x223   : > { %v1234_v63 = vrot.slane %v1230_v57, 4  ;;  %v1233_v2 = vor.u32 %v1231_v59, %v1230_v57 }
 0x224   : > { %v839_v4 = vpop.f32.mrf.mxu0 }
 0x225   : > { %v840_v7 = vadd.f32 %v9292_v28, %v839_v4  ;;  %v1375_v8 = vsel %vm9139_vm2, %v1233_v2, %v1374_v61  ;;  %v1378_v9 = vsel %vm9167_vm5, %v1234_v63, %v1377_v62  ;;  %v9366_v61 = vpop.f32.mrf.mxu3  ;;  %v2118_v62 = vunpack.c.l.b16 %v2070_v46 }
 0x226   : > { %1376 = vst [vmem:[#allocation2 + $0x68] sm:$0xf] %v1375_v8 }
 0x227   : > { %v930_v11 = vmax.f32 %v840_v7, 0.0  ;;  %878 = vmatmul.bf16.gmra.mxu0 %v8510_v1  ;;  %1379 = vst [vmem:[#allocation2 + $0x6c] sm:$0x1] %v1378_v9  ;;  %v1712_v9 = vunpack.c.l.b16 %v1614_v5 }
 0x229   : > { %v970_v18 = vmax.f32 %v928_v10, %v930_v11 }
 0x22b   : > { %1002 = vst [vmem:[#allocation4 + $0xb0] sm:$0xff] %v970_v18 }
 0x22c   : > { %v841_v25 = vpop.f32.mrf.mxu0 }
 0x22d   : > { %v842_v33 = vadd.f32 %v9292_v28, %v841_v25  ;;  %v8524_v34 = vld [vmem:[#allocation2 + $0x64] sm:$0xf0] }
 0x22e   : > { %v1987_v35 = vld [vmem:[#allocation2 + $0x68] sm:$0xe]  ;;  %v7201_v37 = vor.u32 %v8524_v34, %v7200_v26  ;;  %v1453_v38 = vld [vmem:[#allocation2 + $0x6c] sm:$0x1] }
 0x22f   : > { %v1421_v36 = vld [vmem:[#allocation2 + $0x68] sm:$0xf]  ;;  %v7253_v39 = vrot.slane %v1987_v35, 9  ;;  %v931_v43 = vmax.f32 %v842_v33, 0.0  ;;  %v2073_v47 = vrot.slane %v1453_v38, 5  ;;  %v1625_v57 = vshll.u32 %v1453_v38, 16 }
 0x230   : > { %v1616_v40 = vshrl.u32 %v1421_v36, 16  ;;  %v1619_v41 = vshll.u32 %v1421_v36, 16  ;;  %1960 = vmatmul.bf16.gmra.mxu2 %v7201_v37  ;;  %v8573_v36 = vld [vmem:[%s11077_s3 + $0x130] sm:$0xff] }
 0x231   : > { %v971_v59 = vmax.f32 %v929_v42, %v931_v43  ;;  %v2074_v60 = vsel %vm9179_vm10, %v7253_v39, %v2073_v47  ;;  %v1627_v7 = vrot.slane %v1625_v57, 5  ;;  %v8581_v37 = vld [vmem:[%s11077_s3 + $0x170] sm:$0xff]  ;;  %2801 = vmatpush.bf16.msrb.mxu2 %v8573_v36  ;;  %v8564_v57 = vld [vmem:[%s11077_s3 + $0xe8] sm:$0xff] }
 0x232   : > { %v1618_v53 = vrot.slane %v1616_v40, 4  ;;  %v1621_v56 = vrot.slane %v1619_v41, 5  ;;  %v2119_v63 = vunpack.c.l.b16 %v2074_v60  ;;  %v8565_v38 = vld [vmem:[%s11077_s3 + $0xf0] sm:$0xff]  ;;  %3075 = vmatpush.bf16.msrb.mxu3 %v8581_v37 }
 0x233   : > { %1003 = vst [vmem:[#allocation4 + $0xb8] sm:$0xff] %v971_v59  ;;  %v1951_v11 = vpop.f32.mrf.mxu2  ;;  %2383 = vmatpush.bf16.msrb.mxu1 %v8565_v38 }
 0x234   : > { %v1622_v1 = vor.u32 %v1621_v56, %v1618_v53  ;;  %v844_v2 = vpop.f32.mrf.mxu0  ;;  %v2129_v4 = vpack.c.b16 %v2119_v63, %v2118_v62  ;;  %v8572_v53 = vld [vmem:[%s11077_s3 + $0x128] sm:$0xff] }
 0x235   : > { %v845_v35 = vadd.f32 %v9292_v28, %v844_v2  ;;  %v8580_v56 = vld [vmem:[%s11077_s3 + $0x168] sm:$0xff]  ;;  %2802 = vmatpush.bf16.msrb.mxu2 %v8572_v53 }
 0x236   : > { %v1623_v6 = vrot.slane %v1622_v1, 4  ;;  %2221 = vmatmul.bf16.gmra.mxu3 %v2129_v4 }
 0x237   : > { %v932_v43 = vmax.f32 %v845_v35, 0.0  ;;  %3076 = vmatpush.bf16.msrb.mxu3 %v8580_v56  ;;  %2384 = vmatpush.bf16.msrb.mxu1 %v8564_v57 }
 0x238   : > { %v1628_v8 = vsel %vm9183_vm11, %v1623_v6, %v1627_v7 }
 0x239   : > { %v1713_v10 = vunpack.c.l.b16 %v1628_v8  ;;  %v2212_v19 = vpop.f32.mrf.mxu3 }
 0x23a   : > { %v1806_v12 = vpop.f32.mrf.mxu1  ;;  %v1034_v16 = vld [vmem:[#allocation4 + $0xb0] ss:$2 sm:$0xff]  ;;  %v1066_v18 = vld [vmem:[#allocation4 + $0xb1] ss:$2 sm:$0xff] }
 0x23b   : > { %v1952_v14 = vadd.f32 %v1951_v11, %v1806_v12  ;;  %v1723_v15 = vpack.c.b16 %v1713_v10, %v1712_v9  ;;  %v1086_v20 = vmax.f32 %v1034_v16, %v1066_v18  ;;  %v1386_v12 = vld [vmem:[#allocation2 + $0x78] sm:$0xf] }
 0x23c   : > { %v846_v22 = vpop.f32.mrf.mxu0 }
 0x23d   : > { %v9372_v21 = vadd.f32 %v2212_v19, %v1952_v14  ;;  %1815 = vmatmul.bf16.gmra.mxu1 %v1723_v15  ;;  %v1142_v23 = vpack.c.bf16 %v1086_v20, %v1086_v20  ;;  %v847_v52 = vadd.f32 %v9292_v28, %v846_v22  ;;  %v1389_v14 = vld [vmem:[#allocation2 + $0x7c] sm:$0x1] }
 0x23e   : > { %v8571_v19 = vld [vmem:[%s11077_s3 + $0x120] sm:$0xff] }
 0x23f   : > { %v1236_v24 = vshrl.u32 %v1142_v23, 16  ;;  %v1239_v26 = vshll.u32 %v1142_v23, 16  ;;  %v933_v62 = vmax.f32 %v847_v52, 0.0  ;;  %v8579_v20 = vld [vmem:[%s11077_s3 + $0x160] sm:$0xff]  ;;  %2803 = vmatpush.bf16.msrb.mxu2 %v8571_v19 }
 0x240   : > { %v8563_v22 = vld [vmem:[%s11077_s3 + $0xe0] sm:$0xff]  ;;  %3077 = vmatpush.bf16.msrb.mxu3 %v8579_v20 }
 0x241   : > { %v1238_v25 = vrot.slane %v1236_v24, 7  ;;  %2385 = vmatpush.bf16.msrb.mxu1 %v8563_v22  ;;  %v9434_v20 = vpop.f32.mrf.mxu3 }
 0x243   : > { %v1241_v33 = vor.u32 %v1239_v26, %v1238_v25  ;;  %v1242_v34 = vrot.slane %v1238_v25, 4 }
 0x244   : > { %v849_v39 = vpop.f32.mrf.mxu0 }
 0x245   : > { %v850_v40 = vadd.f32 %v9292_v28, %v849_v39  ;;  %v1381_v41 = vsel %vm9139_vm2, %v1241_v33, %v1380_v31  ;;  %v1384_v42 = vsel %vm9167_vm5, %v1242_v34, %v1383_v32 }
 0x246   : > { %1382 = vst [vmem:[#allocation2 + $0x70] sm:$0xf] %v1381_v41 }
 0x247   : > { %v934_v46 = vmax.f32 %v850_v40, 0.0  ;;  %1385 = vst [vmem:[#allocation2 + $0x74] sm:$0x1] %v1384_v42 }
 0x249   : > { %v972_v47 = vmax.f32 %v932_v43, %v934_v46  ;;  %v8570_v43 = vld [vmem:[%s11077_s3 + $0x118] sm:$0xff] }
 0x24a   : > { %v8578_v46 = vld [vmem:[%s11077_s3 + $0x158] sm:$0xff]  ;;  %2804 = vmatpush.bf16.msrb.mxu2 %v8570_v43 }
 0x24b   : > { %1004 = vst [vmem:[#allocation4 + $0xc0] sm:$0xff] %v972_v47  ;;  %v8562_v47 = vld [vmem:[%s11077_s3 + $0xd8] sm:$0xff]  ;;  %3078 = vmatpush.bf16.msrb.mxu3 %v8578_v46 }
 0x24c   : > { %v851_v59 = vpop.f32.mrf.mxu0  ;;  %2386 = vmatpush.bf16.msrb.mxu1 %v8562_v47 }
 0x24d   : > { %v852_v60 = vadd.f32 %v9292_v28, %v851_v59  ;;  %v1422_v11 = vld [vmem:[#allocation2 + $0x70] sm:$0xf] }
 0x24e   : > { %v1630_v24 = vshrl.u32 %v1422_v11, 16  ;;  %v1633_v25 = vshll.u32 %v1422_v11, 16  ;;  %v1454_v35 = vld [vmem:[#allocation2 + $0x74] sm:$0x1]  ;;  %v1988_v36 = vld [vmem:[#allocation2 + $0x70] sm:$0xe]  ;;  %v9430_v11 = vpop.f32.mrf.mxu1 }
 0x24f   : > { %v935_v63 = vmax.f32 %v852_v60, 0.0  ;;  %v7254_v41 = vrot.slane %v1988_v36, 9  ;;  %v2077_v42 = vrot.slane %v1454_v35, 5  ;;  %v7204_v53 = vld [vmem:[#allocation2 + $0x70] sm:$0xf]  ;;  %v1639_v57 = vshll.u32 %v1454_v35, 16 }
 0x250   : > { %v1632_v37 = vrot.slane %v1630_v24, 4  ;;  %v1635_v38 = vrot.slane %v1633_v25, 5 }
 0x251   : > { %v973_v0 = vmax.f32 %v933_v62, %v935_v63  ;;  %v1641_v24 = vrot.slane %v1639_v57, 5 }
 0x252   : > { %v1636_v56 = vor.u32 %v1635_v38, %v1632_v37 }
 0x253   : > { %1005 = vst [vmem:[#allocation4 + $0xc8] sm:$0xff] %v973_v0 }
 0x254   : > { %v854_v1 = vpop.f32.mrf.mxu0 }
 0x255   : > { %v855_v18 = vadd.f32 %v9292_v28, %v854_v1 }
 0x257   : > { %v936_v33 = vmax.f32 %v855_v18, 0.0 }
 0x25a   : > { %v1036_v2 = vld [vmem:[#allocation4 + $0xc0] ss:$2 sm:$0xff]  ;;  %v1068_v4 = vld [vmem:[#allocation4 + $0xc1] ss:$2 sm:$0xff] }
 0x25b   : > { %v1087_v5 = vmax.f32 %v1036_v2, %v1068_v4 }
 0x25c   : > { %v856_v6 = vpop.f32.mrf.mxu0 }
 0x25d   : > { %v1143_v7 = vpack.c.bf16 %v1087_v5, %v1087_v5  ;;  %v857_v40 = vadd.f32 %v9292_v28, %v856_v6 }
 0x25f   : > { %v1244_v8 = vshrl.u32 %v1143_v7, 16  ;;  %v1247_v10 = vshll.u32 %v1143_v7, 16  ;;  %v937_v6 = vmax.f32 %v857_v40, 0.0 }
 0x261   : > { %v1246_v9 = vrot.slane %v1244_v8, 7  ;;  %v2078_v8 = vsel %vm9179_vm10, %v7254_v41, %v2077_v42 }
 0x262   : > { %v2120_v22 = vunpack.c.l.b16 %v2078_v8 }
 0x263   : > { %v1249_v15 = vor.u32 %v1247_v10, %v1246_v9  ;;  %v1250_v16 = vrot.slane %v1246_v9, 4  ;;  %v9428_v10 = vpop.f32.mrf.mxu2 }
 0x264   : > { %v859_v23 = vpop.f32.mrf.mxu0 }
 0x265   : > { %v860_v26 = vadd.f32 %v9292_v28, %v859_v23  ;;  %v1387_v31 = vsel %vm9139_vm2, %v1249_v15, %v1386_v12  ;;  %v1390_v32 = vsel %vm9167_vm5, %v1250_v16, %v1389_v14  ;;  %v1637_v12 = vrot.slane %v1636_v56, 4 }
 0x266   : > { %1388 = vst [vmem:[#allocation2 + $0x78] sm:$0xf] %v1387_v31 }
 0x267   : > { %v938_v34 = vmax.f32 %v860_v26, 0.0  ;;  %1391 = vst [vmem:[#allocation2 + $0x7c] sm:$0x1] %v1390_v32  ;;  %v1642_v32 = vsel %vm9183_vm11, %v1637_v12, %v1641_v24 }
 0x268   : > { %v1714_v36 = vunpack.c.l.b16 %v1642_v32 }
 0x269   : > { %v974_v39 = vmax.f32 %v936_v33, %v938_v34 }
 0x26b   : > { %1006 = vst [vmem:[#allocation4 + $0xd0] sm:$0xff] %v974_v39 }
 0x26c   : > { %v861_v52 = vpop.f32.mrf.mxu0 }
 0x26d   : > { %v862_v59 = vadd.f32 %v9292_v28, %v861_v52  ;;  %v8525_v60 = vld [vmem:[#allocation2 + $0x74] sm:$0xf0] }
 0x26e   : > { %v1989_v62 = vld [vmem:[#allocation2 + $0x78] sm:$0xe]  ;;  %v7205_v0 = vor.u32 %v8525_v60, %v7204_v53  ;;  %v1455_v1 = vld [vmem:[#allocation2 + $0x7c] sm:$0x1] }
 0x26f   : > { %v1423_v63 = vld [vmem:[#allocation2 + $0x78] sm:$0xf]  ;;  %v7255_v2 = vrot.slane %v1989_v62, 9  ;;  %v939_v7 = vmax.f32 %v862_v59, 0.0  ;;  %v2081_v9 = vrot.slane %v1455_v1, 5  ;;  %v1653_v16 = vshll.u32 %v1455_v1, 16 }
 0x270   : > { %v1644_v4 = vshrl.u32 %v1423_v63, 16  ;;  %v1647_v5 = vshll.u32 %v1423_v63, 16  ;;  %1965 = vmatmul.bf16.gmra.mxu2 %v7205_v0  ;;  %v1392_v62 = vld [vmem:[#allocation2 + $0x80] sm:$0xf]  ;;  %v1395_v63 = vld [vmem:[#allocation2 + $0x84] sm:$0x1] }
 0x271   : > { %v975_v18 = vmax.f32 %v937_v6, %v939_v7  ;;  %v2082_v19 = vsel %vm9179_vm10, %v7255_v2, %v2081_v9  ;;  %v1655_v34 = vrot.slane %v1653_v16, 5  ;;  %v8561_v6 = vld [vmem:[%s11077_s3 + $0xd0] sm:$0xff] }
 0x272   : > { %v1646_v14 = vrot.slane %v1644_v4, 4  ;;  %v1649_v15 = vrot.slane %v1647_v5, 5  ;;  %v2121_v23 = vunpack.c.l.b16 %v2082_v19  ;;  %v8569_v4 = vld [vmem:[%s11077_s3 + $0x110] sm:$0xff]  ;;  %2387 = vmatpush.bf16.msrb.mxu1 %v8561_v6  ;;  %v8568_v19 = vld [vmem:[%s11077_s3 + $0x108] sm:$0xff] }
 0x273   : > { %1007 = vst [vmem:[#allocation4 + $0xd8] sm:$0xff] %v975_v18  ;;  %v1956_v38 = vpop.f32.mrf.mxu2  ;;  %v8577_v5 = vld [vmem:[%s11077_s3 + $0x150] sm:$0xff]  ;;  %2805 = vmatpush.bf16.msrb.mxu2 %v8569_v4 }
 0x274   : > { %v1650_v25 = vor.u32 %v1649_v15, %v1646_v14  ;;  %v864_v26 = vpop.f32.mrf.mxu0  ;;  %v2130_v31 = vpack.c.b16 %v2121_v23, %v2120_v22  ;;  %3079 = vmatpush.bf16.msrb.mxu3 %v8577_v5  ;;  %v8576_v22 = vld [vmem:[%s11077_s3 + $0x148] sm:$0xff] }
 0x275   : > { %v865_v2 = vadd.f32 %v9292_v28, %v864_v26  ;;  %v8560_v23 = vld [vmem:[%s11077_s3 + $0xc8] sm:$0xff] }
 0x276   : > { %v1651_v33 = vrot.slane %v1650_v25, 4  ;;  %2226 = vmatmul.bf16.gmra.mxu3 %v2130_v31  ;;  %2388 = vmatpush.bf16.msrb.mxu1 %v8560_v23 }
 0x277   : > { %v940_v14 = vmax.f32 %v865_v2, 0.0  ;;  %2806 = vmatpush.bf16.msrb.mxu2 %v8568_v19 }
 0x278   : > { %v1656_v35 = vsel %vm9183_vm11, %v1651_v33, %v1655_v34  ;;  %3080 = vmatpush.bf16.msrb.mxu3 %v8576_v22 }
 0x279   : > { %v1715_v37 = vunpack.c.l.b16 %v1656_v35  ;;  %v2217_v46 = vpop.f32.mrf.mxu3 }
 0x27a   : > { %v1811_v39 = vpop.f32.mrf.mxu1  ;;  %v1038_v42 = vld [vmem:[#allocation4 + $0xd0] ss:$2 sm:$0xff]  ;;  %v1070_v43 = vld [vmem:[#allocation4 + $0xd1] ss:$2 sm:$0xff] }
 0x27b   : > { %v1957_v40 = vadd.f32 %v1956_v38, %v1811_v39  ;;  %v1724_v41 = vpack.c.b16 %v1715_v37, %v1714_v36  ;;  %v1088_v47 = vmax.f32 %v1038_v42, %v1070_v43 }
 0x27c   : > { %v866_v53 = vpop.f32.mrf.mxu0 }
 0x27d   : > { %v9440_v52 = vadd.f32 %v2217_v46, %v1957_v40  ;;  %1820 = vmatmul.bf16.gmra.mxu1 %v1724_v41  ;;  %v1144_v56 = vpack.c.bf16 %v1088_v47, %v1088_v47  ;;  %v867_v18 = vadd.f32 %v9292_v28, %v866_v53  ;;  %v2447_v40 = vld [vmem:[#allocation2 + $0x8] sm:$0xf]  ;;  %v2449_v47 = vld [vmem:[#allocation2 + $0x10] sm:$0xf] }
 0x27e   : > { %v1398_v53 = vld [vmem:[#allocation2 + $0x88] sm:$0xf]  ;;  %v2494_v2 = vshrl.u32 %v2449_v47, 16  ;;  %v2497_v4 = vshll.u32 %v2449_v47, 16 }
 0x27f   : > { %v1252_v57 = vshrl.u32 %v1144_v56, 16  ;;  %v1255_v60 = vshll.u32 %v1144_v56, 16  ;;  %v941_v26 = vmax.f32 %v867_v18, 0.0  ;;  %v1401_v56 = vld [vmem:[#allocation2 + $0x8c] sm:$0x1]  ;;  %v8559_v18 = vld [vmem:[%s11077_s3 + $0xc0] sm:$0xff] }
 0x280   : > { %2389 = vmatpush.bf16.msrb.mxu1 %v8559_v18 }
 0x281   : > { %v1254_v59 = vrot.slane %v1252_v57, 7  ;;  %v2480_v57 = vshrl.u32 %v2447_v40, 16 }
 0x283   : > { %v1257_v0 = vor.u32 %v1255_v60, %v1254_v59  ;;  %v1258_v1 = vrot.slane %v1254_v59, 4 }
 0x284   : > { %v869_v7 = vpop.f32.mrf.mxu0 }
 0x285   : > { %v870_v8 = vadd.f32 %v9292_v28, %v869_v7  ;;  %v1393_v9 = vsel %vm9139_vm2, %v1257_v0, %v1392_v62  ;;  %v1396_v12 = vsel %vm9167_vm5, %v1258_v1, %v1395_v63  ;;  %v2483_v62 = vshll.u32 %v2447_v40, 16 }
 0x286   : > { %1394 = vst [vmem:[#allocation2 + $0x80] sm:$0xf] %v1393_v9 }
 0x287   : > { %v942_v15 = vmax.f32 %v870_v8, 0.0  ;;  %1397 = vst [vmem:[#allocation2 + $0x84] sm:$0x1] %v1396_v12  ;;  %v9474_v12 = vrot.slane %v2480_v57, 4 }
 0x289   : > { %v976_v16 = vmax.f32 %v940_v14, %v942_v15  ;;  %v8567_v15 = vld [vmem:[%s11077_s3 + $0x100] sm:$0xff] }
 0x28a   : > { %2807 = vmatpush.bf16.msrb.mxu2 %v8567_v15 }
 0x28b   : > { %1008 = vst [vmem:[#allocation4 + $0xe0] sm:$0xff] %v976_v16  ;;  %v8575_v16 = vld [vmem:[%s11077_s3 + $0x140] sm:$0xff] }
 0x28c   : > { %v871_v24 = vpop.f32.mrf.mxu0  ;;  %3081 = vmatpush.bf16.msrb.mxu3 %v8575_v16 }
 0x28d   : > { %v872_v25 = vadd.f32 %v9292_v28, %v871_v24  ;;  %v1424_v46 = vld [vmem:[#allocation2 + $0x80] sm:$0xf] }
 0x28e   : > { %v1658_v0 = vshrl.u32 %v1424_v46, 16  ;;  %v1661_v1 = vshll.u32 %v1424_v46, 16  ;;  %v1990_v9 = vld [vmem:[#allocation2 + $0x80] sm:$0xe]  ;;  %v1456_v22 = vld [vmem:[#allocation2 + $0x84] sm:$0x1] }
 0x28f   : > { %v943_v31 = vmax.f32 %v872_v25, 0.0  ;;  %v8606_v25 = vld [vmem:[%s11077_s3 + $0x1f8] sm:$0xff]  ;;  %v7208_v40 = vld [vmem:[#allocation2 + $0x80] sm:$0xf] }
 0x290   : > { %v1660_v23 = vrot.slane %v1658_v0, 4  ;;  %v1663_v24 = vrot.slane %v1661_v1, 5  ;;  %3687 = vmatpush.bf16.msra.mxu2 %v8606_v25  ;;  %v9497_v46 = vld [vmem:[#allocation2 + $0x14] sm:$0x1] }
 0x291   : > { %v977_v32 = vmax.f32 %v941_v26, %v943_v31  ;;  %v8614_v26 = vld [vmem:[%s11077_s3 + $0x238] sm:$0xff] }
 0x292   : > { %3961 = vmatpush.bf16.msra.mxu3 %v8614_v26 }
 0x293   : > { %1009 = vst [vmem:[#allocation4 + $0xe8] sm:$0xff] %v977_v32  ;;  %v2485_v32 = vrot.slane %v2483_v62, 5 }
 0x294   : > { %v874_v33 = vpop.f32.mrf.mxu0 }
 0x295   : > { %v875_v43 = vadd.f32 %v9292_v28, %v874_v33  ;;  %v2496_v33 = vrot.slane %v2494_v2, 4 }
 0x297   : > { %v944_v5 = vmax.f32 %v875_v43, 0.0  ;;  %v9495_v43 = vld [vmem:[#allocation2 + $0xc] sm:$0x1] }
 0x29a   : > { %v1040_v34 = vld [vmem:[#allocation4 + $0xe0] ss:$2 sm:$0xff]  ;;  %v1072_v35 = vld [vmem:[#allocation4 + $0xe1] ss:$2 sm:$0xff] }
 0x29b   : > { %v1089_v36 = vmax.f32 %v1040_v34, %v1072_v35  ;;  %v2499_v34 = vrot.slane %v2497_v4, 5  ;;  %v7256_v35 = vrot.slane %v1990_v9, 9 }
 0x29c   : > { %v876_v37 = vpop.f32.mrf.mxu0 }
 0x29d   : > { %v1145_v38 = vpack.c.bf16 %v1089_v36, %v1089_v36  ;;  %v877_v19 = vadd.f32 %v9292_v28, %v876_v37  ;;  %v2085_v36 = vrot.slane %v1456_v22, 5  ;;  %v8598_v37 = vld [vmem:[%s11077_s3 + $0x1b8] sm:$0xff] }
 0x29e   : > { %3269 = vmatpush.bf16.msra.mxu1 %v8598_v37 }
 0x29f   : > { %v1260_v39 = vshrl.u32 %v1145_v38, 16  ;;  %v1263_v42 = vshll.u32 %v1145_v38, 16  ;;  %v945_v38 = vmax.f32 %v877_v19, 0.0  ;;  %v2489_v19 = vshll.u32 %v9495_v43, 16 }
 0x2a1   : > { %v1262_v41 = vrot.slane %v1260_v39, 7 }
 0x2a3   : > { %v1265_v59 = vor.u32 %v1263_v42, %v1262_v41  ;;  %v1266_v60 = vrot.slane %v1262_v41, 4  ;;  %v1664_v41 = vor.u32 %v1663_v24, %v1660_v23  ;;  %v1667_v42 = vshll.u32 %v1456_v22, 16  ;;  %v9511_v23 = vpop.f32.mrf.mxu3 }
 0x2a4   : > { %v879_v63 = vpop.f32.mrf.mxu0 }
 0x2a5   : > { %v880_v6 = vadd.f32 %v9292_v28, %v879_v63  ;;  %v1399_v7 = vsel %vm9139_vm2, %v1265_v59, %v1398_v53  ;;  %v1402_v8 = vsel %vm9167_vm5, %v1266_v60, %v1401_v56  ;;  %v2486_v59 = vor.u32 %v2485_v32, %v9474_v12 }
 0x2a6   : > { %1400 = vst [vmem:[#allocation2 + $0x88] sm:$0xf] %v1399_v7  ;;  %v2500_v60 = vor.u32 %v2499_v34, %v2496_v33  ;;  %v2503_v7 = vshll.u32 %v9497_v46, 16  ;;  %v1665_v9 = vrot.slane %v1664_v41, 4  ;;  %v1669_v26 = vrot.slane %v1667_v42, 5 }
 0x2a7   : > { %v946_v14 = vmax.f32 %v880_v6, 0.0  ;;  %1403 = vst [vmem:[#allocation2 + $0x8c] sm:$0x1] %v1402_v8  ;;  %v9506_v8 = vpop.f32.mrf.mxu1  ;;  %v2487_v32 = vrot.slane %v2486_v59, 4  ;;  %v2491_v41 = vrot.slane %v2489_v19, 5 }
 0x2a8   : > { %v2501_v22 = vrot.slane %v2500_v60, 4  ;;  %v2505_v33 = vrot.slane %v2503_v7, 5  ;;  %v2865_v60 = vld [vmem:[#allocation2 + $0x8] sm:$0xe] }
 0x2a9   : > { %v978_v31 = vmax.f32 %v944_v5, %v946_v14  ;;  %v2086_v5 = vsel %vm9179_vm10, %v7256_v35, %v2085_v36  ;;  %v1670_v35 = vsel %vm9183_vm11, %v1665_v9, %v1669_v26  ;;  %v7434_v19 = vrot.slane %v2865_v60, 9  ;;  %v1407_v60 = vld [vmem:[#allocation2 + $0x94] sm:$0x1] }
 0x2aa   : > { %v2122_v24 = vunpack.c.l.b16 %v2086_v5  ;;  %v2506_v42 = vsel %vm9183_vm11, %v2501_v22, %v2505_v33  ;;  %v2919_v5 = vrot.slane %v9497_v46, 5  ;;  %v2915_v22 = vrot.slane %v9495_v43, 5  ;;  %v8597_v46 = vld [vmem:[%s11077_s3 + $0x1b0] sm:$0xff]  ;;  %v2454_v43 = vld [vmem:[#allocation2 + $0x24] sm:$0x1] }
 0x2ab   : > { %1010 = vst [vmem:[#allocation4 + $0xf0] sm:$0xff] %v978_v31  ;;  %3270 = vmatpush.bf16.msra.mxu1 %v8597_v46 }
 0x2ac   : > { %v881_v39 = vpop.f32.mrf.mxu0 }
 0x2ad   : > { %v882_v47 = vadd.f32 %v9292_v28, %v881_v39  ;;  %v8526_v53 = vld [vmem:[#allocation2 + $0x84] sm:$0xf0]  ;;  %v9504_v28 = vpop.f32.mrf.mxu2  ;;  %v2866_v39 = vld [vmem:[#allocation2 + $0x10] sm:$0xe] }
 0x2ae   : > { %v1991_v56 = vld [vmem:[#allocation2 + $0x88] sm:$0xe]  ;;  %v7209_v62 = vor.u32 %v8526_v53, %v7208_v40  ;;  %v1457_v63 = vld [vmem:[#allocation2 + $0x8c] sm:$0x1] }
 0x2af   : > { %v1425_v57 = vld [vmem:[#allocation2 + $0x88] sm:$0xf]  ;;  %v7257_v0 = vrot.slane %v1991_v56, 9  ;;  %v947_v4 = vmax.f32 %v882_v47, 0.0  ;;  %v2089_v6 = vrot.slane %v1457_v63, 5  ;;  %v1681_v15 = vshll.u32 %v1457_v63, 16 }
 0x2b0   : > { %v1672_v1 = vshrl.u32 %v1425_v57, 16  ;;  %v1675_v2 = vshll.u32 %v1425_v57, 16  ;;  %1970 = vmatmul.bf16.gmra.mxu2 %v7209_v62  ;;  %v2451_v47 = vld [vmem:[#allocation2 + $0x18] sm:$0xf]  ;;  %v8605_v53 = vld [vmem:[%s11077_s3 + $0x1f0] sm:$0xff]  ;;  %v1716_v57 = vunpack.c.l.b16 %v1670_v35 }
 0x2b1   : > { %v979_v16 = vmax.f32 %v945_v38, %v947_v4  ;;  %v2090_v18 = vsel %vm9179_vm10, %v7257_v0, %v2089_v6  ;;  %v1683_v37 = vrot.slane %v1681_v15, 5  ;;  %v2453_v38 = vld [vmem:[#allocation2 + $0x20] sm:$0xf]  ;;  %v8613_v56 = vld [vmem:[%s11077_s3 + $0x230] sm:$0xff]  ;;  %v7435_v4 = vrot.slane %v2866_v39, 9  ;;  %3688 = vmatpush.bf16.msra.mxu2 %v8605_v53 }
 0x2b2   : > { %v1674_v12 = vrot.slane %v1672_v1, 4  ;;  %v1677_v14 = vrot.slane %v1675_v2, 5  ;;  %v2123_v25 = vunpack.c.l.b16 %v2090_v18  ;;  %v2522_v62 = vshrl.u32 %v2453_v38, 16  ;;  %3962 = vmatpush.bf16.msra.mxu3 %v8613_v56 }
 0x2b3   : > { %1011 = vst [vmem:[#allocation4 + $0xf8] sm:$0xff] %v979_v16  ;;  %v2525_v63 = vshll.u32 %v2453_v38, 16  ;;  %v2492_v2 = vsel %vm9183_vm11, %v2487_v32, %v2491_v41  ;;  %v2508_v9 = vshrl.u32 %v2451_v47, 16  ;;  %v2721_v18 = vunpack.c.l.b16 %v2506_v42 }
 0x2b4   : > { %v1678_v31 = vor.u32 %v1677_v14, %v1674_v12  ;;  %v2131_v34 = vpack.c.b16 %v2123_v25, %v2122_v24  ;;  %v2511_v12 = vshll.u32 %v2451_v47, 16  ;;  %v2524_v26 = vrot.slane %v2522_v62, 4  ;;  %v2452_v47 = vld [vmem:[#allocation2 + $0x1c] sm:$0x1] }
 0x2b5   : > { %v1961_v0 = vpop.f32.mrf.mxu2  ;;  %v2720_v32 = vunpack.c.l.b16 %v2492_v2  ;;  %v2510_v35 = vrot.slane %v2508_v9, 4  ;;  %v8551_v9 = vld [vmem:[#allocation2 + $0xc] sm:$0xf0] }
 0x2b6   : > { %v1679_v36 = vrot.slane %v1678_v31, 4  ;;  %2231 = vmatmul.bf16.gmra.mxu3 %v2131_v34  ;;  %v2527_v31 = vrot.slane %v2525_v63, 5  ;;  %v2920_v34 = vsel %vm9179_vm10, %v7435_v4, %v2919_v5  ;;  %v2457_v5 = vld [vmem:[#allocation2 + $0x30] sm:$0xf] }
 0x2b7   : > { %v2995_v42 = vunpack.c.l.b16 %v2920_v34 }
 0x2b8   : > { %v1684_v40 = vsel %vm9183_vm11, %v1679_v36, %v1683_v37  ;;  %v2513_v36 = vrot.slane %v2511_v12, 5  ;;  %v2736_v37 = vpack.c.b16 %v2721_v18, %v2720_v32  ;;  %v2528_v41 = vor.u32 %v2527_v31, %v2524_v26  ;;  %v8604_v18 = vld [vmem:[%s11077_s3 + $0x1e8] sm:$0xff]  ;;  %v7324_v26 = vld [vmem:[#allocation2 + $0x8] sm:$0xf]  ;;  %v2867_v31 = vld [vmem:[#allocation2 + $0x18] sm:$0xe] }
 0x2b9   : > { %v1717_v59 = vunpack.c.l.b16 %v1684_v40  ;;  %v2222_v16 = vpop.f32.mrf.mxu3  ;;  %v2916_v40 = vsel %vm9179_vm10, %v7434_v19, %v2915_v22  ;;  %v8612_v19 = vld [vmem:[%s11077_s3 + $0x228] sm:$0xff]  ;;  %v2550_v22 = vshrl.u32 %v2457_v5, 16  ;;  %3689 = vmatpush.bf16.msra.mxu2 %v8604_v18  ;;  %v2870_v18 = vld [vmem:[#allocation2 + $0x30] sm:$0xe] }
 0x2ba   : > { %v1816_v1 = vpop.f32.mrf.mxu1  ;;  %v1042_v14 = vld [vmem:[#allocation4 + $0xf0] ss:$2 sm:$0xff]  ;;  %v1074_v15 = vld [vmem:[#allocation4 + $0xf1] ss:$2 sm:$0xff]  ;;  %v2514_v56 = vor.u32 %v2513_v36, %v2510_v35  ;;  %v2994_v62 = vunpack.c.l.b16 %v2916_v40  ;;  %v2529_v2 = vrot.slane %v2528_v41, 4  ;;  %3963 = vmatpush.bf16.msra.mxu3 %v8612_v19  ;;  %v2927_v36 = vrot.slane %v2454_v43, 5 }
 0x2bb   : > { %v1962_v6 = vadd.f32 %v1961_v0, %v1816_v1  ;;  %v1725_v7 = vpack.c.b16 %v1717_v59, %v1716_v57  ;;  %v1090_v24 = vmax.f32 %v1042_v14, %v1074_v15  ;;  %v2531_v57 = vshll.u32 %v2454_v43, 16  ;;  %v1404_v59 = vld [vmem:[#allocation2 + $0x90] sm:$0xf]  ;;  %v2455_v15 = vld [vmem:[#allocation2 + $0x28] sm:$0xf] }
 0x2bc   : > { %v2517_v1 = vshll.u32 %v2452_v47, 16  ;;  %v3010_v4 = vpack.c.b16 %v2995_v42, %v2994_v62  ;;  %v2515_v12 = vrot.slane %v2514_v56, 4  ;;  %v2536_v46 = vshrl.u32 %v2455_v15, 16  ;;  %v8596_v42 = vld [vmem:[%s11077_s3 + $0x1a8] sm:$0xff]  ;;  %v2458_v62 = vld [vmem:[#allocation2 + $0x34] sm:$0x1] }
 0x2bd   : > { %v9529_v25 = vadd.f32 %v2222_v16, %v1962_v6  ;;  %1825 = vmatmul.bf16.gmra.mxu1 %v1725_v7  ;;  %v1146_v33 = vpack.c.bf16 %v1090_v24, %v1090_v24  ;;  %v2533_v14 = vrot.slane %v2531_v57, 5  ;;  %v2868_v16 = vld [vmem:[#allocation2 + $0x20] sm:$0xe]  ;;  %v2553_v24 = vshll.u32 %v2457_v5, 16  ;;  %v2459_v19 = vld [vmem:[#allocation2 + $0x38] sm:$0xf] }
 0x2be   : > { %v2519_v3 = vrot.slane %v2517_v1, 5  ;;  %v2539_v32 = vshll.u32 %v2455_v15, 16  ;;  %v7437_v35 = vrot.slane %v2868_v16, 9  ;;  %v2552_v40 = vrot.slane %v2550_v22, 4  ;;  %3271 = vmatpush.bf16.msra.mxu1 %v8596_v42  ;;  %v8611_v42 = vld [vmem:[%s11077_s3 + $0x220] sm:$0xff] }
 0x2bf   : > { %v1268_v38 = vshrl.u32 %v1146_v33, 16  ;;  %v1271_v39 = vshll.u32 %v1146_v33, 16  ;;  %v2534_v30 = vsel %vm9183_vm11, %v2529_v2, %v2533_v14  ;;  %v7325_v33 = vor.u32 %v8551_v9, %v7324_v26  ;;  %v8552_v14 = vld [vmem:[#allocation2 + $0x1c] sm:$0xf0]  ;;  %3964 = vmatpush.bf16.msra.mxu3 %v8611_v42 }
 0x2c0   : > { %2808 = vmatmul.bf16.vlgmr.msrb.gmra.mxu2 %v2736_v37  ;;  %v2520_v34 = vsel %vm9183_vm11, %v2515_v12, %v2519_v3  ;;  %v2723_v37 = vunpack.c.l.b16 %v2534_v30  ;;  %v2555_v41 = vrot.slane %v2553_v24, 5  ;;  %v2538_v56 = vrot.slane %v2536_v46, 4  ;;  %v2461_v12 = vld [vmem:[#allocation2 + $0x40] sm:$0xf]  ;;  %v8603_v3 = vld [vmem:[%s11077_s3 + $0x1e0] sm:$0xff] }
 0x2c1   : > { %v1270_v53 = vrot.slane %v1268_v38, 7  ;;  %v7436_v38 = vrot.slane %v2867_v31, 9  ;;  %v2541_v57 = vrot.slane %v2539_v32, 5  ;;  %v2559_v2 = vshll.u32 %v2458_v62, 16  ;;  %v7328_v30 = vld [vmem:[#allocation2 + $0x18] sm:$0xf]  ;;  %3690 = vmatpush.bf16.msra.mxu2 %v8603_v3 }
 0x2c2   : > { %v2578_v24 = vshrl.u32 %v2461_v12, 16  ;;  %v2581_v26 = vshll.u32 %v2461_v12, 16  ;;  %v7329_v31 = vor.u32 %v8552_v14, %v7328_v30  ;;  %v2869_v32 = vld [vmem:[#allocation2 + $0x28] sm:$0xe]  ;;  %v2465_v12 = vld [vmem:[#allocation2 + $0x60] sm:$0xf] }
 0x2c3   : > { %v1273_v63 = vor.u32 %v1271_v39, %v1270_v53  ;;  %v1274_v0 = vrot.slane %v1270_v53, 4  ;;  %v2923_v39 = vrot.slane %v2452_v47, 5  ;;  %v2722_v53 = vunpack.c.l.b16 %v2520_v34  ;;  %v8553_v14 = vld [vmem:[#allocation2 + $0x2c] sm:$0xf0] }
 0x2c4   : > { %v2556_v47 = vor.u32 %v2555_v41, %v2552_v40  ;;  %v2542_v1 = vor.u32 %v2541_v57, %v2538_v56  ;;  %v2561_v15 = vrot.slane %v2559_v2, 5  ;;  %v2935_v34 = vrot.slane %v2458_v62, 5  ;;  %v8602_v3 = vld [vmem:[%s11077_s3 + $0x1d8] sm:$0xff] }
 0x2c5   : > { %v1405_v6 = vsel %vm9139_vm2, %v1273_v63, %v1404_v59  ;;  %v1408_v7 = vsel %vm9167_vm5, %v1274_v0, %v1407_v60  ;;  %v2928_v59 = vsel %vm9179_vm10, %v7437_v35, %v2927_v36  ;;  %v2737_v60 = vpack.c.b16 %v2723_v37, %v2722_v53  ;;  %v2456_v63 = vld [vmem:[#allocation2 + $0x2c] sm:$0x1]  ;;  %v8595_v53 = vld [vmem:[%s11077_s3 + $0x1a0] sm:$0xff]  ;;  %v8610_v30 = vld [vmem:[%s11077_s3 + $0x218] sm:$0xff]  ;;  %3691 = vmatpush.bf16.msra.mxu2 %v8602_v3 }
 0x2c6   : > { %1406 = vst [vmem:[#allocation2 + $0x90] sm:$0xf] %v1405_v6  ;;  %3082 = vmatmul.bf16.vlgmr.msrb.gmra.mxu3 %v3010_v4  ;;  %v2924_v43 = vsel %vm9179_vm10, %v7436_v38, %v2923_v39  ;;  %v2997_v0 = vunpack.c.l.b16 %v2928_v59  ;;  %v2545_v5 = vshll.u32 %v2456_v63, 16  ;;  %v2557_v6 = vrot.slane %v2556_v47, 4  ;;  %3272 = vmatpush.bf16.msra.mxu1 %v8595_v53  ;;  %v8554_v3 = vld [vmem:[#allocation2 + $0x3c] sm:$0xf0]  ;;  %vm4328_vm2 = vmor %vm4326_vm0, %vm4327_vm1 }
 0x2c7   : > { %1409 = vst [vmem:[#allocation2 + $0x94] sm:$0x1] %v1408_v7  ;;  %v2996_v4 = vunpack.c.l.b16 %v2924_v43  ;;  %v2543_v9 = vrot.slane %v2542_v1, 4  ;;  %v2564_v35 = vshrl.u32 %v2459_v19, 16  ;;  %v2567_v36 = vshll.u32 %v2459_v19, 16  ;;  %3965 = vmatpush.bf16.msra.mxu3 %v8610_v30  ;;  %vm4330_vm6 = vmor %vm4328_vm2, %vm4329_vm4 }
 0x2c8   : > { %v2547_v16 = vrot.slane %v2545_v5, 5  ;;  %v2562_v22 = vsel %vm9183_vm11, %v2557_v6, %v2561_v15  ;;  %v7438_v38 = vrot.slane %v2869_v32, 9  ;;  %v2931_v39 = vrot.slane %v2456_v63, 5  ;;  %v2462_v43 = vld [vmem:[#allocation2 + $0x44] sm:$0x1] }
 0x2c9   : > { %v3011_v7 = vpack.c.b16 %v2997_v0, %v2996_v4  ;;  %v2725_v37 = vunpack.c.l.b16 %v2562_v22  ;;  %v2580_v40 = vrot.slane %v2578_v24, 4  ;;  %v2583_v41 = vrot.slane %v2581_v26, 5  ;;  %v2460_v1 = vld [vmem:[#allocation2 + $0x3c] sm:$0x1]  ;;  %v2872_v19 = vld [vmem:[#allocation2 + $0x40] sm:$0xe] }
 0x2ca   : > { %v2548_v46 = vsel %vm9183_vm11, %v2543_v9, %v2547_v16  ;;  %v2566_v59 = vrot.slane %v2564_v35, 4  ;;  %v2932_v63 = vsel %vm9179_vm10, %v7438_v38, %v2931_v39  ;;  %v2587_v4 = vshll.u32 %v2462_v43, 16  ;;  %v2871_v32 = vld [vmem:[#allocation2 + $0x38] sm:$0xe] }
 0x2cb   : > { %v2724_v56 = vunpack.c.l.b16 %v2548_v46  ;;  %v2584_v47 = vor.u32 %v2583_v41, %v2580_v40  ;;  %v2998_v5 = vunpack.c.l.b16 %v2932_v63  ;;  %v2573_v6 = vshll.u32 %v2460_v1, 16  ;;  %v7332_v46 = vld [vmem:[#allocation2 + $0x28] sm:$0xf] }
 0x2cc   : > { %v2589_v16 = vrot.slane %v2587_v4, 5  ;;  %v2606_v26 = vshrl.u32 %v2465_v12, 16  ;;  %v7333_v35 = vor.u32 %v8553_v14, %v7332_v46  ;;  %v2943_v38 = vrot.slane %v2462_v43, 5  ;;  %v9595_v4 = vpop.f32.mrf.mxu1  ;;  %v8609_v46 = vld [vmem:[%s11077_s3 + $0x210] sm:$0xff] }
 0x2cd   : > { %2390 = vmatmul.bf16.vlgmr.msrb.gmra.mxu1 %v7325_v33  ;;  %v7439_v33 = vrot.slane %v2870_v18, 9  ;;  %v2738_v62 = vpack.c.b16 %v2725_v37, %v2724_v56  ;;  %v2463_v18 = vld [vmem:[#allocation2 + $0x58] sm:$0xf]  ;;  %v2575_v22 = vrot.slane %v2573_v6, 5  ;;  %v7441_v37 = vrot.slane %v2872_v19, 9  ;;  %v8594_v56 = vld [vmem:[%s11077_s3 + $0x198] sm:$0xff]  ;;  %3966 = vmatpush.bf16.msra.mxu3 %v8609_v46 }
 0x2ce   : > { %v7440_v40 = vrot.slane %v2871_v32, 9  ;;  %v2939_v41 = vrot.slane %v2460_v1, 5  ;;  %v2608_v42 = vrot.slane %v2606_v26, 4  ;;  %3273 = vmatpush.bf16.msra.mxu1 %v8594_v56  ;;  %v2469_v19 = vld [vmem:[#allocation2 + $0x70] sm:$0xf] }
 0x2cf   : > { %v2936_v57 = vsel %vm9179_vm10, %v7439_v33, %v2935_v34  ;;  %v2592_v33 = vshrl.u32 %v2463_v18, 16  ;;  %v2595_v34 = vshll.u32 %v2463_v18, 16  ;;  %v2467_v26 = vld [vmem:[#allocation2 + $0x68] sm:$0xf]  ;;  %v7336_v32 = vld [vmem:[#allocation2 + $0x38] sm:$0xf] }
 0x2d0   : > { %2813 = vmatmul.bf16.gmra.mxu2 %v2737_v60  ;;  %v2569_v60 = vrot.slane %v2567_v36, 5  ;;  %v2999_v0 = vunpack.c.l.b16 %v2936_v57  ;;  %v2940_v43 = vsel %vm9179_vm10, %v7440_v40, %v2939_v41  ;;  %v2620_v56 = vshrl.u32 %v2467_v26, 16 }
 0x2d1   : > { %vm4331_vm5 = vsmask.f32 7448 }
 0x2d2   : > { %v2570_v2 = vor.u32 %v2569_v60, %v2566_v59  ;;  %v3012_v9 = vpack.c.b16 %v2999_v0, %v2998_v5  ;;  %v2594_v59 = vrot.slane %v2592_v33, 4  ;;  %v2597_v60 = vrot.slane %v2595_v34, 5  ;;  %v2464_v0 = vld [vmem:[#allocation2 + $0x5c] sm:$0x1]  ;;  %v2873_v34 = vld [vmem:[#allocation2 + $0x58] sm:$0xe]  ;;  %vm9856_vm7 = vmor %vm4330_vm6, %vm4331_vm5 }
 0x2d3   : > { %v2601_v14 = vshll.u32 %v2464_v0, 16 }
 0x2d4   : > { %v2571_v15 = vrot.slane %v2570_v2, 4  ;;  %v9593_v2 = vpop.f32.mrf.mxu2  ;;  %v2598_v6 = vor.u32 %v2597_v60, %v2594_v59 }
 0x2d6   : > { %3087 = vmatmul.bf16.gmra.mxu3 %v3011_v7  ;;  %v2585_v7 = vrot.slane %v2584_v47, 4  ;;  %v2576_v36 = vsel %vm9183_vm11, %v2571_v15, %v2575_v22  ;;  %v2466_v47 = vld [vmem:[#allocation2 + $0x64] sm:$0x1]  ;;  %v2599_v18 = vrot.slane %v2598_v6, 4  ;;  %v2874_v22 = vld [vmem:[#allocation2 + $0x60] sm:$0xe] }
 0x2d7   : > { %v2726_v57 = vunpack.c.l.b16 %v2576_v36  ;;  %v2637_v36 = vshll.u32 %v2469_v19, 16  ;;  %v7443_v41 = vrot.slane %v2874_v22, 9  ;;  %v8593_v6 = vld [vmem:[%s11077_s3 + $0x190] sm:$0xff] }
 0x2d8   : > { %v2590_v24 = vsel %vm9183_vm11, %v2585_v7, %v2589_v16  ;;  %v2615_v7 = vshll.u32 %v2466_v47, 16  ;;  %3274 = vmatpush.bf16.msra.mxu1 %v8593_v6 }
 0x2d9   : > { %v2727_v39 = vunpack.c.l.b16 %v2590_v24  ;;  %v2603_v24 = vrot.slane %v2601_v14, 5 }
 0x2da   : > { %v2617_v30 = vrot.slane %v2615_v7, 5 }
 0x2db   : > { %v2739_v63 = vpack.c.b16 %v2727_v39, %v2726_v57  ;;  %v7337_v39 = vor.u32 %v8554_v3, %v7336_v32  ;;  %v2604_v40 = vsel %vm9183_vm11, %v2599_v18, %v2603_v24  ;;  %v2623_v57 = vshll.u32 %v2467_v26, 16  ;;  %v2468_v3 = vld [vmem:[#allocation2 + $0x6c] sm:$0x1]  ;;  %v2473_v32 = vld [vmem:[#allocation2 + $0x80] sm:$0xf] }
 0x2dc   : > { %v2728_v7 = vunpack.c.l.b16 %v2604_v40  ;;  %v2629_v26 = vshll.u32 %v2468_v3, 16 }
 0x2dd   : > { %2395 = vmatmul.bf16.gmra.mxu1 %v7329_v31  ;;  %v2609_v31 = vshll.u32 %v2465_v12, 16  ;;  %v3000_v12 = vunpack.c.l.b16 %v2940_v43  ;;  %v2947_v43 = vrot.slane %v2464_v0, 5  ;;  %v2625_v14 = vrot.slane %v2623_v57, 5  ;;  %v2875_v57 = vld [vmem:[#allocation2 + $0x68] sm:$0xe] }
 0x2de   : > { %v2631_v40 = vrot.slane %v2629_v26, 5  ;;  %v2472_v26 = vld [vmem:[#allocation2 + $0x7c] sm:$0x1] }
 0x2df   : > { %v2611_v53 = vrot.slane %v2609_v31, 5  ;;  %v8601_v31 = vld [vmem:[%s11077_s3 + $0x1d0] sm:$0xff] }
 0x2e0   : > { %2818 = vmatmul.bf16.gmra.mxu2 %v2738_v62  ;;  %v2944_v62 = vsel %vm9179_vm10, %v7441_v37, %v2943_v38 }
 0x2e1   : > { %v2612_v1 = vor.u32 %v2611_v53, %v2608_v42  ;;  %v3001_v5 = vunpack.c.l.b16 %v2944_v62  ;;  %3692 = vmatpush.bf16.msra.mxu2 %v8601_v31  ;;  %v2951_v53 = vrot.slane %v2466_v47, 5  ;;  %v7442_v62 = vrot.slane %v2873_v34, 9 }
 0x2e2   : > { %v2622_v47 = vrot.slane %v2620_v56, 4  ;;  %v7340_v56 = vld [vmem:[#allocation2 + $0x58] sm:$0xf] }
 0x2e3   : > { %v2613_v15 = vrot.slane %v2612_v1, 4  ;;  %v3013_v16 = vpack.c.b16 %v3001_v5, %v3000_v12  ;;  %v2639_v5 = vrot.slane %v2637_v36, 5  ;;  %v2952_v12 = vsel %vm9179_vm10, %v7443_v41, %v2951_v53  ;;  %v2471_v36 = vld [vmem:[#allocation2 + $0x78] sm:$0xf] }
 0x2e4   : > { %v2948_v18 = vsel %vm9179_vm10, %v7442_v62, %v2947_v43  ;;  %v3003_v0 = vunpack.c.l.b16 %v2952_v12  ;;  %v2665_v53 = vshll.u32 %v2473_v32, 16  ;;  %v2955_v12 = vrot.slane %v2468_v3, 5 }
 0x2e5   : > { %v2618_v33 = vsel %vm9183_vm11, %v2613_v15, %v2617_v30  ;;  %v2626_v30 = vor.u32 %v2625_v14, %v2622_v47  ;;  %v3002_v24 = vunpack.c.l.b16 %v2948_v18 }
 0x2e6   : > { %3092 = vmatmul.bf16.gmra.mxu3 %v3012_v9  ;;  %v9597_v9 = vpop.f32.mrf.mxu3  ;;  %v2729_v60 = vunpack.c.l.b16 %v2618_v33  ;;  %v8555_v33 = vld [vmem:[#allocation2 + $0x5c] sm:$0xf0]  ;;  %v2667_v14 = vrot.slane %v2665_v53, 5  ;;  %v2475_v53 = vld [vmem:[#allocation2 + $0x88] sm:$0xf] }
 0x2e7   : > { %v3014_v46 = vpack.c.b16 %v3003_v0, %v3002_v24  ;;  %v2627_v34 = vrot.slane %v2626_v30, 4  ;;  %v7341_v62 = vor.u32 %v8555_v33, %v7340_v56  ;;  %v2474_v24 = vld [vmem:[#allocation2 + $0x84] sm:$0x1]  ;;  %v8599_v56 = vld [vmem:[%s11077_s3 + $0x1c0] sm:$0xff] }
 0x2e8   : > { %v2740_v15 = vpack.c.b16 %v2729_v60, %v2728_v7  ;;  %v2651_v60 = vshll.u32 %v2471_v36, 16  ;;  %v7444_v7 = vrot.slane %v2875_v57, 9  ;;  %v7344_v57 = vld [vmem:[#allocation2 + $0x68] sm:$0xf] }
 0x2e9   : > { %v2632_v43 = vsel %vm9183_vm11, %v2627_v34, %v2631_v40  ;;  %v2657_v34 = vshll.u32 %v2472_v26, 16 }
 0x2ea   : > { %v2730_v18 = vunpack.c.l.b16 %v2632_v43  ;;  %v2653_v0 = vrot.slane %v2651_v60, 5 }
 0x2ed   : > { %2400 = vmatmul.bf16.gmra.mxu1 %v7333_v35  ;;  %v2634_v35 = vshrl.u32 %v2469_v19, 16 }
 0x2ef   : > { %v2636_v1 = vrot.slane %v2634_v35, 4 }
 0x2f0   : > { %2823 = vmatmul.bf16.gmra.mxu2 %v2739_v63 }
 0x2f1   : > { %v2640_v19 = vor.u32 %v2639_v5, %v2636_v1 }
 0x2f3   : > { %v1966_v37 = vpop.f32.mrf.mxu2  ;;  %v2641_v31 = vrot.slane %v2640_v19, 4 }
 0x2f6   : > { %3097 = vmatmul.bf16.gmra.mxu3 %v3013_v16  ;;  %v2470_v16 = vld [vmem:[#allocation2 + $0x74] sm:$0x1] }
 0x2f7   : > { %v2643_v22 = vshll.u32 %v2470_v16, 16  ;;  %v2959_v5 = vrot.slane %v2470_v16, 5  ;;  %v2956_v16 = vsel %vm9179_vm10, %v7444_v7, %v2955_v12  ;;  %v2967_v7 = vrot.slane %v2474_v24, 5 }
 0x2f8   : > { %v3004_v33 = vunpack.c.l.b16 %v2956_v16  ;;  %v2676_v12 = vshrl.u32 %v2475_v53, 16 }
 0x2f9   : > { %v2227_v59 = vpop.f32.mrf.mxu3  ;;  %v2645_v35 = vrot.slane %v2643_v22, 5 }
 0x2fa   : > { %v1821_v38 = vpop.f32.mrf.mxu1 }
 0x2fb   : > { %v1967_v42 = vadd.f32 %v1966_v37, %v1821_v38  ;;  %v2876_v37 = vld [vmem:[#allocation2 + $0x70] sm:$0xe]  ;;  %v8600_v38 = vld [vmem:[%s11077_s3 + $0x1c8] sm:$0xff]  ;;  %v2646_v41 = vsel %vm9183_vm11, %v2641_v31, %v2645_v35 }
 0x2fc   : > { %3693 = vmatpush.bf16.msra.mxu2 %v8600_v38  ;;  %v7445_v1 = vrot.slane %v2876_v37, 9  ;;  %v2731_v6 = vunpack.c.l.b16 %v2646_v41  ;;  %v2477_v38 = vld [vmem:[#allocation2 + $0x90] sm:$0xf]  ;;  %v2659_v41 = vrot.slane %v2657_v34, 5 }
 0x2fd   : > { %v9609_v63 = vadd.f32 %v2227_v59, %v1967_v42  ;;  %2405 = vmatmul.bf16.gmra.mxu1 %v7337_v39  ;;  %v8608_v39 = vld [vmem:[%s11077_s3 + $0x208] sm:$0xff]  ;;  %v2662_v42 = vshrl.u32 %v2473_v32, 16  ;;  %v2648_v59 = vshrl.u32 %v2471_v36, 16  ;;  %v2671_v32 = vshll.u32 %v2474_v24, 16 }
 0x2fe   : > { %3967 = vmatpush.bf16.msra.mxu3 %v8608_v39  ;;  %v2960_v30 = vsel %vm9179_vm10, %v7445_v1, %v2959_v5  ;;  %v2741_v22 = vpack.c.b16 %v2731_v6, %v2730_v18  ;;  %v8556_v39 = vld [vmem:[#allocation2 + $0x6c] sm:$0xf0]  ;;  %v2690_v60 = vshrl.u32 %v2477_v38, 16  ;;  %v2877_v5 = vld [vmem:[#allocation2 + $0x78] sm:$0xe]  ;;  %v2963_v18 = vrot.slane %v2472_v26, 5 }
 0x2ff   : > { %v2664_v47 = vrot.slane %v2662_v42, 4  ;;  %v2650_v19 = vrot.slane %v2648_v59, 4  ;;  %v3005_v31 = vunpack.c.l.b16 %v2960_v30  ;;  %v2673_v40 = vrot.slane %v2671_v32, 5  ;;  %v2878_v42 = vld [vmem:[#allocation2 + $0x80] sm:$0xe]  ;;  %v8607_v30 = vld [vmem:[%s11077_s3 + $0x200] sm:$0xff] }
 0x300   : > { %2828 = vmatmul.bf16.gmra.mxu2 %v2740_v15  ;;  %v8592_v15 = vld [vmem:[%s11077_s3 + $0x188] sm:$0xff]  ;;  %v7345_v43 = vor.u32 %v8556_v39, %v7344_v57  ;;  %v7447_v6 = vrot.slane %v2878_v42, 9  ;;  %v2478_v26 = vld [vmem:[#allocation2 + $0x94] sm:$0x1]  ;;  %v3334_v57 = vld [vmem:[#allocation2 + $0x10] sm:$0xf] }
 0x301   : > { %3275 = vmatpush.bf16.msra.mxu1 %v8592_v15  ;;  %v2668_v3 = vor.u32 %v2667_v14, %v2664_v47  ;;  %v3015_v36 = vpack.c.b16 %v3005_v31, %v3004_v33  ;;  %3694 = vmatpush.bf16.msra.mxu2 %v8599_v56  ;;  %v2679_v47 = vshll.u32 %v2475_v53, 16  ;;  %v7446_v15 = vrot.slane %v2877_v5, 9  ;;  %v3336_v53 = vld [vmem:[#allocation2 + $0x18] sm:$0xf] }
 0x302   : > { %v2968_v24 = vsel %vm9179_vm10, %v7447_v6, %v2967_v7  ;;  %3968 = vmatpush.bf16.msra.mxu3 %v8607_v30  ;;  %v2699_v34 = vshll.u32 %v2478_v26, 16  ;;  %v3384_v5 = vshll.u32 %v3336_v53, 16  ;;  %v7348_v6 = vld [vmem:[#allocation2 + $0x78] sm:$0xf]  ;;  %v2879_v7 = vld [vmem:[#allocation2 + $0x88] sm:$0xe]  ;;  %v9656_v30 = vpop.f32.mrf.mxu2 }
 0x303   : > { %v2669_v35 = vrot.slane %v2668_v3, 4  ;;  %v2678_v3 = vrot.slane %v2676_v12, 4  ;;  %v2681_v31 = vrot.slane %v2679_v47, 5  ;;  %v2964_v32 = vsel %vm9179_vm10, %v7446_v15, %v2963_v18 }
 0x304   : > { %v3367_v12 = vshrl.u32 %v3334_v57, 16  ;;  %v3370_v47 = vshll.u32 %v3334_v57, 16 }
 0x305   : > { %v2674_v59 = vsel %vm9183_vm11, %v2669_v35, %v2673_v40  ;;  %v3007_v35 = vunpack.c.l.b16 %v2968_v24 }
 0x306   : > { %3102 = vmatmul.bf16.gmra.mxu3 %v3014_v46  ;;  %v2654_v46 = vor.u32 %v2653_v0, %v2650_v19  ;;  %v2733_v14 = vunpack.c.l.b16 %v2674_v59  ;;  %v2692_v19 = vrot.slane %v2690_v60, 4  ;;  %v8557_v59 = vld [vmem:[#allocation2 + $0x7c] sm:$0xf0]  ;;  %v2880_v60 = vld [vmem:[#allocation2 + $0x90] sm:$0xe] }
 0x307   : > { %v7449_v18 = vrot.slane %v2880_v60, 9 }
 0x308   : > { %v2655_v37 = vrot.slane %v2654_v46, 4 }
 0x30a   : > { %v2660_v1 = vsel %vm9183_vm11, %v2655_v37, %v2659_v41  ;;  %v2682_v37 = vor.u32 %v2681_v31, %v2678_v3  ;;  %v2701_v41 = vrot.slane %v2699_v34, 5  ;;  %v3386_v3 = vrot.slane %v3384_v5, 5  ;;  %v3338_v5 = vld [vmem:[#allocation2 + $0x20] sm:$0xf] }
 0x30b   : > { %v2732_v16 = vunpack.c.l.b16 %v2660_v1  ;;  %v3381_v1 = vshrl.u32 %v3336_v53, 16 }
 0x30c   : > { %v2683_v56 = vrot.slane %v2682_v37, 4 }
 0x30d   : > { %2410 = vmatmul.bf16.gmra.mxu1 %v7341_v62  ;;  %v2693_v62 = vshll.u32 %v2477_v38, 16  ;;  %v2742_v46 = vpack.c.b16 %v2733_v14, %v2732_v16  ;;  %v3006_v38 = vunpack.c.l.b16 %v2964_v32  ;;  %v7349_v14 = vor.u32 %v8557_v59, %v7348_v6  ;;  %v8558_v6 = vld [vmem:[#allocation2 + $0x8c] sm:$0xf0] }
 0x30e   : > { %v3383_v24 = vrot.slane %v3381_v1, 4  ;;  %v3372_v32 = vrot.slane %v3370_v47, 5 }
 0x30f   : > { %v2695_v0 = vrot.slane %v2693_v62, 5  ;;  %v3016_v42 = vpack.c.b16 %v3007_v35, %v3006_v38  ;;  %v3337_v35 = vld [vmem:[#allocation2 + $0x1c] sm:$0x1] }
 0x310   : > { %2833 = vmatmul.bf16.gmra.mxu2 %v2741_v22  ;;  %v8591_v22 = vld [vmem:[%s11077_s3 + $0x180] sm:$0xff]  ;;  %v3387_v38 = vor.u32 %v3386_v3, %v3383_v24  ;;  %v3398_v24 = vshll.u32 %v3338_v5, 16 }
 0x311   : > { %3276 = vmatpush.bf16.msra.mxu1 %v8591_v22  ;;  %v2696_v33 = vor.u32 %v2695_v0, %v2692_v19  ;;  %v2975_v19 = vrot.slane %v2478_v26, 5  ;;  %v7448_v22 = vrot.slane %v2879_v7, 9  ;;  %v3335_v26 = vld [vmem:[#allocation2 + $0x14] sm:$0x1] }
 0x312   : > { %v3388_v59 = vrot.slane %v3387_v38, 4 }
 0x313   : > { %v2697_v40 = vrot.slane %v2696_v33, 4  ;;  %v2976_v33 = vsel %vm9179_vm10, %v7449_v18, %v2975_v19 }
 0x316   : > { %3107 = vmatmul.bf16.gmra.mxu3 %v3015_v36  ;;  %v2476_v36 = vld [vmem:[#allocation2 + $0x8c] sm:$0x1] }
 0x317   : > { %v2685_v39 = vshll.u32 %v2476_v36, 16  ;;  %v2971_v16 = vrot.slane %v2476_v36, 5 }
 0x319   : > { %v2687_v62 = vrot.slane %v2685_v39, 5  ;;  %v2972_v37 = vsel %vm9179_vm10, %v7448_v22, %v2971_v16  ;;  %v9662_v39 = vpop.f32.mrf.mxu1  ;;  %v3395_v16 = vshrl.u32 %v3338_v5, 16 }
 0x31a   : > { %v3008_v53 = vunpack.c.l.b16 %v2972_v37 }
 0x31b   : > { %v2688_v15 = vsel %vm9183_vm11, %v2683_v56, %v2687_v62  ;;  %v3376_v56 = vshll.u32 %v3335_v26, 16 }
 0x31c   : > { %v2734_v31 = vunpack.c.l.b16 %v2688_v15 }
 0x31d   : > { %2415 = vmatmul.bf16.gmra.mxu1 %v7345_v43  ;;  %v2702_v43 = vsel %vm9183_vm11, %v2697_v40, %v2701_v41  ;;  %v3009_v40 = vunpack.c.l.b16 %v2976_v33  ;;  %v9664_v41 = vpop.f32.mrf.mxu3  ;;  %v3378_v7 = vrot.slane %v3376_v56, 5  ;;  %v3806_v33 = vrot.slane %v3337_v35, 5 }
 0x31e   : > { %v2735_v0 = vunpack.c.l.b16 %v2702_v43  ;;  %v3340_v43 = vld [vmem:[#allocation2 + $0x28] sm:$0xf] }
 0x31f   : > { %v3017_v60 = vpack.c.b16 %v3009_v40, %v3008_v53  ;;  %v3409_v15 = vshrl.u32 %v3340_v43, 16  ;;  %v3412_v18 = vshll.u32 %v3340_v43, 16  ;;  %v3341_v43 = vld [vmem:[#allocation2 + $0x2c] sm:$0x1] }
 0x320   : > { %2838 = vmatmul.bf16.gmra.mxu2 %v2742_v46  ;;  %v3369_v46 = vrot.slane %v3367_v12, 4  ;;  %v2743_v34 = vpack.c.b16 %v2735_v0, %v2734_v31  ;;  %v3753_v12 = vld [vmem:[#allocation2 + $0x18] sm:$0xe]  ;;  %v7352_v0 = vld [vmem:[#allocation2 + $0x88] sm:$0xf] }
 0x321   : > { %v3414_v53 = vrot.slane %v3412_v18, 5 }
 0x322   : > { %v3373_v36 = vor.u32 %v3372_v32, %v3369_v46  ;;  %v7353_v46 = vor.u32 %v8558_v6, %v7352_v0  ;;  %v7627_v32 = vrot.slane %v3753_v12, 9 }
 0x324   : > { %v3374_v62 = vrot.slane %v3373_v36, 4  ;;  %v3802_v36 = vrot.slane %v3335_v26, 5 }
 0x326   : > { %3112 = vmatmul.bf16.gmra.mxu3 %v3016_v42  ;;  %v3390_v42 = vshll.u32 %v3337_v35, 16  ;;  %v3379_v22 = vsel %vm9183_vm11, %v3374_v62, %v3378_v7  ;;  %v3807_v62 = vsel %vm9179_vm10, %v7627_v32, %v3806_v33  ;;  %v3755_v32 = vld [vmem:[#allocation2 + $0x28] sm:$0xe] }
 0x327   : > { %v3607_v56 = vunpack.c.l.b16 %v3379_v22  ;;  %v3882_v7 = vunpack.c.l.b16 %v3807_v62  ;;  %v7629_v62 = vrot.slane %v3755_v32, 9 }
 0x328   : > { %v3392_v1 = vrot.slane %v3390_v42, 5  ;;  %v3411_v42 = vrot.slane %v3409_v15, 4 }
 0x32a   : > { %v3393_v47 = vsel %vm9183_vm11, %v3388_v59, %v3392_v1  ;;  %v3397_v59 = vrot.slane %v3395_v16, 4  ;;  %v3339_v1 = vld [vmem:[#allocation2 + $0x24] sm:$0x1]  ;;  %v3415_v5 = vor.u32 %v3414_v53, %v3411_v42 }
 0x32b   : > { %v3404_v18 = vshll.u32 %v3339_v1, 16 }
 0x32c   : > { %v3416_v22 = vrot.slane %v3415_v5, 4  ;;  %v3814_v5 = vrot.slane %v3341_v43, 5 }
 0x32d   : > { %2420 = vmatmul.bf16.gmra.mxu1 %v7349_v14  ;;  %v3752_v14 = vld [vmem:[#allocation2 + $0x10] sm:$0xe]  ;;  %v3406_v33 = vrot.slane %v3404_v18, 5 }
 0x32e   : > { %v7626_v37 = vrot.slane %v3752_v14, 9  ;;  %v3418_v14 = vshll.u32 %v3341_v43, 16 }
 0x330   : > { %2843 = vmatmul.bf16.gmra.mxu2 %v2743_v34  ;;  %v3608_v34 = vunpack.c.l.b16 %v3393_v47  ;;  %v3803_v35 = vsel %vm9179_vm10, %v7626_v37, %v3802_v36  ;;  %v7516_v37 = vld [vmem:[#allocation2 + $0x10] sm:$0xf]  ;;  %v3754_v36 = vld [vmem:[#allocation2 + $0x20] sm:$0xe] }
 0x331   : > { %v3881_v15 = vunpack.c.l.b16 %v3803_v35 }
 0x333   : > { %v1971_v57 = vpop.f32.mrf.mxu2  ;;  %v3897_v16 = vpack.c.b16 %v3882_v7, %v3881_v15 }
 0x336   : > { %3117 = vmatmul.bf16.gmra.mxu3 %v3017_v60  ;;  %v3400_v60 = vrot.slane %v3398_v24, 5 }
 0x338   : > { %v3401_v12 = vor.u32 %v3400_v60, %v3397_v59 }
 0x339   : > { %v2232_v31 = vpop.f32.mrf.mxu3 }
 0x33a   : > { %v1826_v19 = vpop.f32.mrf.mxu1  ;;  %v3402_v24 = vrot.slane %v3401_v12, 4 }
 0x33b   : > { %v1972_v3 = vadd.f32 %v1971_v57, %v1826_v19  ;;  %v1973_v40 = vpop.f32.mrf.mxu2  ;;  %v3623_v57 = vpack.c.b16 %v3608_v34, %v3607_v56  ;;  %v3342_v34 = vld [vmem:[#allocation2 + $0x30] sm:$0xf] }
 0x33c   : > { %v3407_v60 = vsel %vm9183_vm11, %v3402_v24, %v3406_v33  ;;  %v3426_v7 = vshll.u32 %v3342_v34, 16 }
 0x33d   : > { %v9670_v38 = vadd.f32 %v2232_v31, %v1972_v3  ;;  %2425 = vmatmul.bf16.gmra.mxu1 %v7353_v46  ;;  %v3344_v3 = vld [vmem:[#allocation2 + $0x38] sm:$0xf]  ;;  %v3420_v46 = vrot.slane %v3418_v14, 5  ;;  %v1939_v14 = vadd.f32 %v9274_v27, %v9276_v51  ;;  %v8750_v27 = vld [vmem:[%s11081_s7 + $0x1f4] sm:$0xf0] }
 0x33e   : > { %v8583_v31 = vld [vmem:[#allocation2 + $0x14] sm:$0xf0]  ;;  %v3437_v42 = vshrl.u32 %v3344_v3, 16  ;;  %v3440_v53 = vshll.u32 %v3344_v3, 16  ;;  %v3609_v3 = vunpack.c.l.b16 %v3407_v60 }
 0x33f   : > { %v7517_v59 = vor.u32 %v8583_v31, %v7516_v37  ;;  %v3428_v31 = vrot.slane %v3426_v7, 5  ;;  %v2238_v32 = vadd.f32 %v9280_v58, %v1939_v14  ;;  %v3346_v7 = vld [vmem:[#allocation2 + $0x40] sm:$0xf] }
 0x340   : > { %3695 = vmatmul.bf16.vlgmr.msra.gmra.mxu2 %v3623_v57 }
 0x341   : > { %v2234_v47 = vpop.f32.mrf.mxu3 }
 0x342   : > { %v1828_v6 = vpop.f32.mrf.mxu1 }
 0x343   : > { %v1974_v26 = vadd.f32 %v1973_v40, %v1828_v6  ;;  %v2809_v0 = vpop.f32.mrf.mxu2  ;;  %v3421_v40 = vsel %vm9183_vm11, %v3416_v22, %v3420_v46  ;;  %v3423_v6 = vshrl.u32 %v3342_v34, 16  ;;  %v3439_v22 = vrot.slane %v3437_v42, 4 }
 0x344   : > { %v3610_v12 = vunpack.c.l.b16 %v3421_v40 }
 0x345   : > { %v9676_v19 = vadd.f32 %v2234_v47, %v1974_v26  ;;  %v7628_v26 = vrot.slane %v3754_v36, 9  ;;  %v3810_v47 = vrot.slane %v3339_v1, 5  ;;  %v3425_v43 = vrot.slane %v3423_v6, 4  ;;  %v8404_v1 = vld [vmem:[%s11081_s7 + $0x1f0] sm:$0xf] }
 0x346   : > { %3969 = vmatmul.bf16.vlgmr.msra.gmra.mxu3 %v3897_v16  ;;  %v3442_v16 = vrot.slane %v3440_v53, 5  ;;  %v3624_v51 = vpack.c.b16 %v3610_v12, %v3609_v3  ;;  %v8405_v46 = vor.u32 %v8750_v27, %v8404_v1  ;;  %v3343_v36 = vld [vmem:[#allocation2 + $0x34] sm:$0x1]  ;;  %v3348_v6 = vld [vmem:[#allocation2 + $0x48] sm:$0xf]  ;;  %v3454_v1 = vshll.u32 %v3346_v7, 16 }
 0x347   : > { %v3811_v33 = vsel %vm9179_vm10, %v7628_v26, %v3810_v47  ;;  %v8584_v26 = vld [vmem:[#allocation2 + $0x24] sm:$0xf0]  ;;  %v3468_v3 = vshll.u32 %v3348_v6, 16 }
 0x348   : > { %v3443_v34 = vor.u32 %v3442_v16, %v3439_v22  ;;  %6659 = vmatpush.bf16.msrb.mxu0 %v8405_v46  ;;  %v3883_v60 = vunpack.c.l.b16 %v3811_v33  ;;  %v3757_v22 = vld [vmem:[#allocation2 + $0x38] sm:$0xe]  ;;  %v3465_v16 = vshrl.u32 %v3348_v6, 16  ;;  %v3456_v6 = vrot.slane %v3454_v1, 5 }
 0x349   : > { %v3083_v35 = vpop.f32.mrf.mxu3 }
 0x34a   : > { %v2391_v56 = vpop.f32.mrf.mxu1 }
 0x34b   : > { %v2431_v57 = vadd.f32 %v2391_v56, %v9258_v50  ;;  %v2811_v18 = vpop.f32.mrf.mxu2  ;;  %v3815_v50 = vsel %vm9179_vm10, %v7629_v62, %v3814_v5  ;;  %v3429_v56 = vor.u32 %v3428_v31, %v3425_v43  ;;  %v3444_v5 = vrot.slane %v3443_v34, 4 }
 0x34c   : > { %v3884_v40 = vunpack.c.l.b16 %v3815_v50  ;;  %v7520_v50 = vld [vmem:[#allocation2 + $0x20] sm:$0xf]  ;;  %v3451_v31 = vshrl.u32 %v3346_v7, 16 }
 0x34d   : > { %v2849_v15 = vadd.f32 %v2809_v0, %v2431_v57  ;;  %3277 = vmatmul.bf16.vlgmr.msra.gmra.mxu1 %v7517_v59  ;;  %v3345_v0 = vld [vmem:[#allocation2 + $0x3c] sm:$0x1]  ;;  %v3430_v47 = vrot.slane %v3429_v56, 4  ;;  %v3467_v56 = vrot.slane %v3465_v16, 4 }
 0x34e   : > { %v3446_v59 = vshll.u32 %v3345_v0, 16  ;;  %v3898_v58 = vpack.c.b16 %v3884_v40, %v3883_v60  ;;  %v3822_v40 = vrot.slane %v3345_v0, 5  ;;  %v1944_v60 = vadd.f32 %v9315_v44, %v9317_v45 }
 0x34f   : > { %v9685_v24 = vadd.f32 %v3083_v35, %v2849_v15  ;;  %v3432_v35 = vshll.u32 %v3343_v36, 16  ;;  %v3756_v15 = vld [vmem:[#allocation2 + $0x30] sm:$0xe] }
 0x350   : > { %3700 = vmatmul.bf16.gmra.mxu2 %v3624_v51  ;;  %v3448_v14 = vrot.slane %v3446_v59, 5  ;;  %v7521_v51 = vor.u32 %v8584_v26, %v7520_v50  ;;  %v7630_v46 = vrot.slane %v3756_v15, 9  ;;  %v3470_v59 = vrot.slane %v3468_v3, 5 }
 0x351   : > { %v3085_v53 = vpop.f32.mrf.mxu3  ;;  %v3434_v43 = vrot.slane %v3432_v35, 5 }
 0x352   : > { %v2393_v37 = vpop.f32.mrf.mxu1  ;;  %v3471_v45 = vor.u32 %v3470_v59, %v3467_v56 }
 0x353   : > { %v2432_v42 = vadd.f32 %v2393_v37, %v2238_v32  ;;  %v2814_v57 = vpop.f32.mrf.mxu2  ;;  %v3435_v34 = vsel %vm9183_vm11, %v3430_v47, %v3434_v43  ;;  %v7631_v37 = vrot.slane %v3757_v22, 9  ;;  %v3349_v47 = vld [vmem:[#allocation2 + $0x4c] sm:$0x1] }
 0x355   : > { %v2850_v62 = vadd.f32 %v2811_v18, %v2432_v42  ;;  %v3449_v18 = vsel %vm9183_vm11, %v3444_v5, %v3448_v14  ;;  %v3453_v5 = vrot.slane %v3451_v31, 4  ;;  %v3823_v7 = vsel %vm9179_vm10, %v7631_v37, %v3822_v40  ;;  %v3758_v37 = vld [vmem:[#allocation2 + $0x40] sm:$0xe]  ;;  %v3759_v40 = vld [vmem:[#allocation2 + $0x48] sm:$0xe] }
 0x356   : > { %3974 = vmatmul.bf16.gmra.mxu3 %v3898_v58  ;;  %v3612_v42 = vunpack.c.l.b16 %v3449_v18  ;;  %v3611_v58 = vunpack.c.l.b16 %v3435_v34  ;;  %v2240_v14 = vadd.f32 %v9321_v54, %v1944_v60  ;;  %v3886_v22 = vunpack.c.l.b16 %v3823_v7 }
 0x357   : > { %v9698_v12 = vadd.f32 %v3085_v53, %v2850_v62  ;;  %v3818_v53 = vrot.slane %v3343_v36, 5  ;;  %v3347_v36 = vld [vmem:[#allocation2 + $0x44] sm:$0x1]  ;;  %v3457_v44 = vor.u32 %v3456_v6, %v3453_v5  ;;  %v7632_v6 = vrot.slane %v3758_v37, 9 }
 0x358   : > { %v3625_v26 = vpack.c.b16 %v3612_v42, %v3611_v58  ;;  %v3460_v50 = vshll.u32 %v3347_v36, 16  ;;  %v3350_v42 = vld [vmem:[#allocation2 + $0x60] sm:$0xf]  ;;  %v7633_v58 = vrot.slane %v3759_v40, 9  ;;  %v3830_v7 = vrot.slane %v3349_v47, 5 }
 0x359   : > { %v3088_v33 = vpop.f32.mrf.mxu3  ;;  %v3819_v0 = vsel %vm9179_vm10, %v7630_v46, %v3818_v53  ;;  %v3458_v1 = vrot.slane %v3457_v44, 4  ;;  %v7524_v53 = vld [vmem:[#allocation2 + $0x30] sm:$0xf]  ;;  %v3479_v44 = vshrl.u32 %v3350_v42, 16 }
 0x35a   : > { %v2396_v27 = vpop.f32.mrf.mxu1  ;;  %v3885_v43 = vunpack.c.l.b16 %v3819_v0  ;;  %v3462_v54 = vrot.slane %v3460_v50, 5 }
 0x35b   : > { %v2433_v32 = vadd.f32 %v2396_v27, %v9287_v17  ;;  %v2816_v35 = vpop.f32.mrf.mxu2  ;;  %v3472_v27 = vrot.slane %v3471_v45, 4  ;;  %v3482_v45 = vshll.u32 %v3350_v42, 16 }
 0x35c   : > { %v3899_v46 = vpack.c.b16 %v3886_v22, %v3885_v43  ;;  %v3463_v56 = vsel %vm9183_vm11, %v3458_v1, %v3462_v54  ;;  %v1949_v22 = vadd.f32 %v9360_v48, %v9362_v29 }
 0x35d   : > { %v2851_v62 = vadd.f32 %v2814_v57, %v2433_v32  ;;  %3282 = vmatmul.bf16.gmra.mxu1 %v7521_v51  ;;  %v3474_v57 = vshll.u32 %v3349_v47, 16  ;;  %v8585_v32 = vld [vmem:[#allocation2 + $0x34] sm:$0xf0]  ;;  %v3484_v1 = vrot.slane %v3482_v45, 5  ;;  %v3760_v45 = vld [vmem:[#allocation2 + $0x60] sm:$0xe] }
 0x35e   : > { %v7525_v5 = vor.u32 %v8585_v32, %v7524_v53 }
 0x35f   : > { %v9707_v17 = vadd.f32 %v3088_v33, %v2851_v62  ;;  %v3476_v51 = vrot.slane %v3474_v57, 5  ;;  %v3352_v33 = vld [vmem:[#allocation2 + $0x68] sm:$0xf]  ;;  %v3613_v57 = vunpack.c.l.b16 %v3463_v56 }
 0x360   : > { %3705 = vmatmul.bf16.gmra.mxu2 %v3625_v26  ;;  %v3493_v60 = vshrl.u32 %v3352_v33, 16  ;;  %v3496_v62 = vshll.u32 %v3352_v33, 16  ;;  %v3351_v33 = vld [vmem:[#allocation2 + $0x64] sm:$0x1] }
 0x361   : > { %v3090_v3 = vpop.f32.mrf.mxu3  ;;  %v3477_v59 = vsel %vm9183_vm11, %v3472_v27, %v3476_v51  ;;  %v3353_v51 = vld [vmem:[#allocation2 + $0x6c] sm:$0x1] }
 0x362   : > { %v2398_v15 = vpop.f32.mrf.mxu1  ;;  %v3495_v50 = vrot.slane %v3493_v60, 4  ;;  %v3498_v43 = vrot.slane %v3496_v62, 5  ;;  %v3502_v42 = vshll.u32 %v3353_v51, 16 }
 0x363   : > { %v2434_v16 = vadd.f32 %v2398_v15, %v2240_v14  ;;  %v2819_v31 = vpop.f32.mrf.mxu2  ;;  %v3826_v14 = vrot.slane %v3347_v36, 5  ;;  %v3614_v15 = vunpack.c.l.b16 %v3477_v59  ;;  %v3481_v36 = vrot.slane %v3479_v44, 4 }
 0x364   : > { %v3499_v48 = vor.u32 %v3498_v43, %v3495_v50  ;;  %v3488_v59 = vshll.u32 %v3351_v33, 16 }
 0x365   : > { %v2852_v18 = vadd.f32 %v2816_v35, %v2434_v16  ;;  %v3626_v27 = vpack.c.b16 %v3614_v15, %v3613_v57  ;;  %v3485_v40 = vor.u32 %v3484_v1, %v3481_v36  ;;  %v3838_v1 = vrot.slane %v3353_v51, 5 }
 0x366   : > { %3979 = vmatmul.bf16.gmra.mxu3 %v3899_v46  ;;  %v2242_v46 = vadd.f32 %v9366_v61, %v1949_v22  ;;  %v3500_v60 = vrot.slane %v3499_v48, 4  ;;  %v7528_v61 = vld [vmem:[#allocation2 + $0x40] sm:$0xf]  ;;  %v3834_v48 = vrot.slane %v3351_v33, 5 }
 0x367   : > { %v9714_v34 = vadd.f32 %v3090_v3, %v2852_v18  ;;  %v3831_v18 = vsel %vm9179_vm10, %v7633_v58, %v3830_v7  ;;  %v3486_v58 = vrot.slane %v3485_v40, 4  ;;  %v3504_v7 = vrot.slane %v3502_v42, 5 }
 0x368   : > { %v3888_v32 = vunpack.c.l.b16 %v3831_v18 }
 0x369   : > { %v3093_v0 = vpop.f32.mrf.mxu3  ;;  %v3505_v44 = vsel %vm9183_vm11, %v3500_v60, %v3504_v7  ;;  %v3357_v60 = vld [vmem:[#allocation2 + $0x7c] sm:$0x1] }
 0x36a   : > { %v2401_v35 = vpop.f32.mrf.mxu1  ;;  %v3530_v7 = vshll.u32 %v3357_v60, 16 }
 0x36b   : > { %v2435_v26 = vadd.f32 %v2401_v35, %v9328_v13  ;;  %v2821_v3 = vpop.f32.mrf.mxu2  ;;  %v3827_v13 = vsel %vm9179_vm10, %v7632_v6, %v3826_v14  ;;  %v8586_v35 = vld [vmem:[#allocation2 + $0x44] sm:$0xf0]  ;;  %v3490_v14 = vrot.slane %v3488_v59, 5 }
 0x36d   : > { %v2853_v16 = vadd.f32 %v2819_v31, %v2435_v26  ;;  %3287 = vmatmul.bf16.gmra.mxu1 %v7525_v5  ;;  %v3887_v31 = vunpack.c.l.b16 %v3827_v13  ;;  %v3356_v5 = vld [vmem:[#allocation2 + $0x78] sm:$0xf]  ;;  %v3354_v26 = vld [vmem:[#allocation2 + $0x70] sm:$0xf]  ;;  %v3491_v13 = vsel %vm9183_vm11, %v3486_v58, %v3490_v14 }
 0x36e   : > { %v3521_v57 = vshrl.u32 %v3356_v5, 16  ;;  %v3524_v15 = vshll.u32 %v3356_v5, 16  ;;  %v3510_v50 = vshll.u32 %v3354_v26, 16  ;;  %v3615_v40 = vunpack.c.l.b16 %v3491_v13  ;;  %v7532_v13 = vld [vmem:[#allocation2 + $0x60] sm:$0xf] }
 0x36f   : > { %v9725_v47 = vadd.f32 %v3093_v0, %v2853_v16  ;;  %v3900_v62 = vpack.c.b16 %v3888_v32, %v3887_v31  ;;  %v3761_v0 = vld [vmem:[#allocation2 + $0x68] sm:$0xe]  ;;  %v7529_v16 = vor.u32 %v8586_v35, %v7528_v61 }
 0x370   : > { %3710 = vmatmul.bf16.gmra.mxu2 %v3626_v27  ;;  %v7635_v36 = vrot.slane %v3761_v0, 9  ;;  %v3616_v27 = vunpack.c.l.b16 %v3505_v44 }
 0x371   : > { %v3095_v37 = vpop.f32.mrf.mxu3 }
 0x372   : > { %v2403_v29 = vpop.f32.mrf.mxu1  ;;  %v3839_v59 = vsel %vm9179_vm10, %v7635_v36, %v3838_v1  ;;  %v3627_v51 = vpack.c.b16 %v3616_v27, %v3615_v40  ;;  %v3762_v1 = vld [vmem:[#allocation2 + $0x70] sm:$0xe]  ;;  %v3846_v40 = vrot.slane %v3357_v60, 5  ;;  %v8396_v60 = vld [vmem:[%s11081_s7 + $0x1e0] sm:$0xf] }
 0x373   : > { %v2436_v54 = vadd.f32 %v2403_v29, %v2242_v46  ;;  %v2824_v56 = vpop.f32.mrf.mxu2  ;;  %v7634_v46 = vrot.slane %v3760_v45, 9  ;;  %v1954_v29 = vadd.f32 %v9428_v10, %v9430_v11  ;;  %v3355_v11 = vld [vmem:[#allocation2 + $0x74] sm:$0x1]  ;;  %v3890_v35 = vunpack.c.l.b16 %v3839_v59 }
 0x374   : > { %v3516_v0 = vshll.u32 %v3355_v11, 16 }
 0x375   : > { %v2854_v53 = vadd.f32 %v2821_v3, %v2436_v54  ;;  %v3507_v3 = vshrl.u32 %v3354_v26, 16  ;;  %v3523_v54 = vrot.slane %v3521_v57, 4  ;;  %v2244_v33 = vadd.f32 %v9434_v20, %v1954_v29  ;;  %v3360_v20 = vld [vmem:[#allocation2 + $0x88] sm:$0xf] }
 0x376   : > { %3984 = vmatmul.bf16.gmra.mxu3 %v3900_v62  ;;  %v3835_v10 = vsel %vm9179_vm10, %v7634_v46, %v3834_v48  ;;  %v3549_v27 = vshrl.u32 %v3360_v20, 16  ;;  %v3552_v46 = vshll.u32 %v3360_v20, 16 }
 0x377   : > { %v9730_v6 = vadd.f32 %v3095_v37, %v2854_v53  ;;  %v3526_v37 = vrot.slane %v3524_v15, 5  ;;  %v3509_v42 = vrot.slane %v3507_v3, 4  ;;  %v3889_v26 = vunpack.c.l.b16 %v3835_v10 }
 0x378   : > { %v3532_v3 = vrot.slane %v3530_v7, 5 }
 0x379   : > { %v3098_v18 = vpop.f32.mrf.mxu3  ;;  %v3901_v57 = vpack.c.b16 %v3890_v35, %v3889_v26  ;;  %v3554_v35 = vrot.slane %v3552_v46, 5  ;;  %v8748_v26 = vld [vmem:[%s11081_s7 + $0x1e4] sm:$0xf0]  ;;  %v3364_v46 = vld [vmem:[#allocation2 + $0x98] sm:$0xf] }
 0x37a   : > { %v2406_v22 = vpop.f32.mrf.mxu1 }
 0x37b   : > { %v2437_v43 = vadd.f32 %v2406_v22, %v9372_v21  ;;  %v2826_v32 = vpop.f32.mrf.mxu2  ;;  %v3512_v21 = vrot.slane %v3510_v50, 5  ;;  %v3763_v50 = vld [vmem:[#allocation2 + $0x78] sm:$0xe] }
 0x37d   : > { %v2855_v31 = vadd.f32 %v2824_v56, %v2437_v43  ;;  %3292 = vmatmul.bf16.gmra.mxu1 %v7529_v16  ;;  %v3527_v56 = vor.u32 %v3526_v37, %v3523_v54  ;;  %v3513_v5 = vor.u32 %v3512_v21, %v3509_v42  ;;  %v8587_v16 = vld [vmem:[#allocation2 + $0x64] sm:$0xf0]  ;;  %v3518_v43 = vrot.slane %v3516_v0, 5 }
 0x37e   : > { %v7533_v29 = vor.u32 %v8587_v16, %v7532_v13 }
 0x37f   : > { %v9739_v53 = vadd.f32 %v3098_v18, %v2855_v31  ;;  %v3528_v45 = vrot.slane %v3527_v56, 4  ;;  %v3514_v15 = vrot.slane %v3513_v5, 4  ;;  %v3358_v18 = vld [vmem:[#allocation2 + $0x80] sm:$0xf]  ;;  %v3842_v56 = vrot.slane %v3355_v11, 5 }
 0x380   : > { %3715 = vmatmul.bf16.gmra.mxu2 %v3627_v51  ;;  %v3535_v42 = vshrl.u32 %v3358_v18, 16  ;;  %v3538_v21 = vshll.u32 %v3358_v18, 16  ;;  %v7636_v51 = vrot.slane %v3762_v1, 9  ;;  %v3361_v11 = vld [vmem:[#allocation2 + $0x8c] sm:$0x1] }
 0x381   : > { %v3100_v58 = vpop.f32.mrf.mxu3  ;;  %v3533_v36 = vsel %vm9183_vm11, %v3528_v45, %v3532_v3  ;;  %v3519_v31 = vsel %vm9183_vm11, %v3514_v15, %v3518_v43  ;;  %v3359_v45 = vld [vmem:[#allocation2 + $0x84] sm:$0x1]  ;;  %v3362_v1 = vld [vmem:[#allocation2 + $0x90] sm:$0xf] }
 0x382   : > { %v2408_v62 = vpop.f32.mrf.mxu1  ;;  %v3618_v59 = vunpack.c.l.b16 %v3533_v36  ;;  %v3617_v5 = vunpack.c.l.b16 %v3519_v31  ;;  %v3540_v7 = vrot.slane %v3538_v21, 5  ;;  %v3544_v18 = vshll.u32 %v3359_v45, 16  ;;  %v3764_v21 = vld [vmem:[#allocation2 + $0x80] sm:$0xe] }
 0x383   : > { %v2438_v61 = vadd.f32 %v2408_v62, %v2244_v33  ;;  %v2829_v44 = vpop.f32.mrf.mxu2  ;;  %v3551_v62 = vrot.slane %v3549_v27, 4 }
 0x384   : > { %v3628_v0 = vpack.c.b16 %v3618_v59, %v3617_v5  ;;  %v3566_v59 = vshll.u32 %v3362_v1, 16 }
 0x385   : > { %v2856_v14 = vadd.f32 %v2826_v32, %v2438_v61  ;;  %v7637_v32 = vrot.slane %v3763_v50, 9  ;;  %v3558_v50 = vshll.u32 %v3361_v11, 16 }
 0x386   : > { %3989 = vmatmul.bf16.gmra.mxu3 %v3901_v57  ;;  %v3555_v57 = vor.u32 %v3554_v35, %v3551_v62 }
 0x387   : > { %v9746_v22 = vadd.f32 %v3100_v58, %v2856_v14  ;;  %v3847_v58 = vsel %vm9179_vm10, %v7637_v32, %v3846_v40  ;;  %v8397_v14 = vor.u32 %v8748_v26, %v8396_v60  ;;  %v3560_v31 = vrot.slane %v3558_v50, 5  ;;  %v7536_v32 = vld [vmem:[#allocation2 + $0x70] sm:$0xf] }
 0x388   : > { %v3892_v20 = vunpack.c.l.b16 %v3847_v58  ;;  %v3556_v36 = vrot.slane %v3555_v57, 4  ;;  %v3563_v40 = vshrl.u32 %v3362_v1, 16  ;;  %v7638_v26 = vrot.slane %v3764_v21, 9  ;;  %v3363_v1 = vld [vmem:[#allocation2 + $0x94] sm:$0x1] }
 0x389   : > { %v3103_v37 = vpop.f32.mrf.mxu3  ;;  %6660 = vmatpush.bf16.msrb.mxu0 %v8397_v14 }
 0x38a   : > { %v2411_v48 = vpop.f32.mrf.mxu1  ;;  %v3565_v14 = vrot.slane %v3563_v40, 4 }
 0x38b   : > { %v2439_v54 = vadd.f32 %v2411_v48, %v9440_v52  ;;  %v9753_v10 = vpop.f32.mrf.mxu2  ;;  %v3537_v52 = vrot.slane %v3535_v42, 4  ;;  %v8588_v48 = vld [vmem:[#allocation2 + $0x74] sm:$0xf0]  ;;  %v3561_v42 = vsel %vm9183_vm11, %v3556_v36, %v3560_v31 }
 0x38c   : > { %v7537_v62 = vor.u32 %v8588_v48, %v7536_v32  ;;  %v3620_v60 = vunpack.c.l.b16 %v3561_v42 }
 0x38d   : > { %v2857_v33 = vadd.f32 %v2829_v44, %v2439_v54  ;;  %3297 = vmatmul.bf16.gmra.mxu1 %v7533_v29  ;;  %v3843_v44 = vsel %vm9179_vm10, %v7636_v51, %v3842_v56  ;;  %v3541_v3 = vor.u32 %v3540_v7, %v3537_v52  ;;  %v3546_v54 = vrot.slane %v3544_v18, 5 }
 0x38e   : > { %v3891_v43 = vunpack.c.l.b16 %v3843_v44  ;;  %v3577_v51 = vshrl.u32 %v3364_v46, 16  ;;  %v3854_v7 = vrot.slane %v3361_v11, 5 }
 0x38f   : > { %v9755_v61 = vadd.f32 %v3103_v37, %v2857_v33  ;;  %v3542_v29 = vrot.slane %v3541_v3, 4  ;;  %v3765_v37 = vld [vmem:[#allocation2 + $0x88] sm:$0xe]  ;;  %v3580_v33 = vshll.u32 %v3364_v46, 16 }
 0x390   : > { %3720 = vmatmul.bf16.gmra.mxu2 %v3628_v0  ;;  %v3902_v27 = vpack.c.b16 %v3892_v20, %v3891_v43  ;;  %v7639_v52 = vrot.slane %v3765_v37, 9  ;;  %v3850_v0 = vrot.slane %v3359_v45, 5  ;;  %v3568_v20 = vrot.slane %v3566_v59, 5  ;;  %v3365_v45 = vld [vmem:[#allocation2 + $0x9c] sm:$0x1] }
 0x391   : > { %v9769_v16 = vpop.f32.mrf.mxu3  ;;  %v3547_v58 = vsel %vm9183_vm11, %v3542_v29, %v3546_v54  ;;  %v3579_v3 = vrot.slane %v3577_v51, 4  ;;  %v3582_v50 = vrot.slane %v3580_v33, 5  ;;  %v3586_v48 = vshll.u32 %v3365_v45, 16  ;;  %v8589_v33 = vld [vmem:[#allocation2 + $0x84] sm:$0xf0] }
 0x392   : > { %v9767_v15 = vpop.f32.mrf.mxu1  ;;  %v3619_v43 = vunpack.c.l.b16 %v3547_v58  ;;  %v3851_v11 = vsel %vm9179_vm10, %v7638_v26, %v3850_v0 }
 0x393   : > { %v2834_v13 = vpop.f32.mrf.mxu2  ;;  %v3583_v46 = vor.u32 %v3582_v50, %v3579_v3  ;;  %v3893_v54 = vunpack.c.l.b16 %v3851_v11  ;;  %v3588_v59 = vrot.slane %v3586_v48, 5 }
 0x394   : > { %v3629_v36 = vpack.c.b16 %v3620_v60, %v3619_v43 }
 0x395   : > { %v3584_v21 = vrot.slane %v3583_v46, 4 }
 0x396   : > { %3994 = vmatmul.bf16.gmra.mxu3 %v3902_v27  ;;  %v3569_v27 = vor.u32 %v3568_v20, %v3565_v14  ;;  %v3858_v14 = vrot.slane %v3363_v1, 5  ;;  %v3862_v20 = vrot.slane %v3365_v45, 5 }
 0x397   : > { %v3589_v58 = vsel %vm9183_vm11, %v3584_v21, %v3588_v59 }
 0x398   : > { %v3570_v40 = vrot.slane %v3569_v27, 4  ;;  %v3622_v50 = vunpack.c.l.b16 %v3589_v58 }
 0x399   : > { %v3108_v5 = vpop.f32.mrf.mxu3 }
 0x39a   : > { %v2416_v56 = vpop.f32.mrf.mxu1 }
 0x39b   : > { %v2441_v35 = vadd.f32 %v2416_v56, %v9529_v25  ;;  %v9776_v57 = vpop.f32.mrf.mxu2  ;;  %v3855_v25 = vsel %vm9179_vm10, %v7639_v52, %v3854_v7  ;;  %v3766_v56 = vld [vmem:[#allocation2 + $0x90] sm:$0xe] }
 0x39c   : > { %v3894_v31 = vunpack.c.l.b16 %v3855_v25  ;;  %v7640_v60 = vrot.slane %v3766_v56, 9 }
 0x39d   : > { %v2859_v44 = vadd.f32 %v2834_v13, %v2441_v35  ;;  %3302 = vmatmul.bf16.gmra.mxu1 %v7537_v62  ;;  %v3572_v13 = vshll.u32 %v3363_v1, 16  ;;  %v3767_v62 = vld [vmem:[#allocation2 + $0x98] sm:$0xe]  ;;  %v7540_v35 = vld [vmem:[#allocation2 + $0x80] sm:$0xf] }
 0x39e   : > { %v3903_v51 = vpack.c.b16 %v3894_v31, %v3893_v54  ;;  %v7541_v7 = vor.u32 %v8589_v33, %v7540_v35  ;;  %v3859_v55 = vsel %vm9179_vm10, %v7640_v60, %v3858_v14  ;;  %v7544_v31 = vld [vmem:[#allocation2 + $0x90] sm:$0xf]  ;;  %v8590_v54 = vld [vmem:[#allocation2 + $0x94] sm:$0xf0] }
 0x39f   : > { %v9778_v18 = vadd.f32 %v3108_v5, %v2859_v44  ;;  %v3574_v42 = vrot.slane %v3572_v13, 5  ;;  %v7641_v44 = vrot.slane %v3767_v62, 9  ;;  %v3895_v1 = vunpack.c.l.b16 %v3859_v55 }
 0x3a0   : > { %3725 = vmatmul.bf16.gmra.mxu2 %v3629_v36  ;;  %v7545_v21 = vor.u32 %v8590_v54, %v7544_v31 }
 0x3a1   : > { %v9786_v32 = vpop.f32.mrf.mxu3  ;;  %v3575_v5 = vsel %vm9183_vm11, %v3570_v40, %v3574_v42  ;;  %v3863_v11 = vsel %vm9179_vm10, %v7641_v44, %v3862_v20  ;;  %vm4726_vm10 = vcmask 1046534   ;;  %vm10000_vm11 = vmor %vm1314_vm3, %vm4722_vm8 }
 0x3a2   : > { %v9784_v29 = vpop.f32.mrf.mxu1  ;;  %v3621_v3 = vunpack.c.l.b16 %v3575_v5  ;;  %v3896_v45 = vunpack.c.l.b16 %v3863_v11  ;;  %vm10014_vm3 = vmor %vm10000_vm11, %vm4724_vm9 }
 0x3a3   : > { %v2839_v37 = vpop.f32.mrf.mxu2  ;;  %vm10028_vm12 = vmor %vm10014_vm3, %vm4726_vm10 }
 0x3a4   : > { %v3630_v27 = vpack.c.b16 %v3622_v50, %v3621_v3  ;;  %v3904_v48 = vpack.c.b16 %v3896_v45, %v3895_v1 }
 0x3a6   : > { %3999 = vmatmul.bf16.gmra.mxu3 %v3903_v51 }
 0x3a9   : > { %v3113_v0 = vpop.f32.mrf.mxu3 }
 0x3aa   : > { %v2421_v52 = vpop.f32.mrf.mxu1 }
 0x3ab   : > { %v2443_v26 = vadd.f32 %v2421_v52, %v9609_v63  ;;  %v9793_v25 = vpop.f32.mrf.mxu2 }
 0x3ad   : > { %v2861_v43 = vadd.f32 %v2839_v37, %v2443_v26  ;;  %3307 = vmatmul.bf16.gmra.mxu1 %v7541_v7  ;;  %v9818_v26 = vld [vmem:[%s11078_s4] ss:$0 sm:$0xff] }
 0x3af   : > { %v9795_v36 = vadd.f32 %v3113_v0, %v2861_v43 }
 0x3b0   : > { %3730 = vmatmul.bf16.gmra.mxu2 %v3630_v27 }
 0x3b1   : > { %v9803_v13 = vpop.f32.mrf.mxu3 }
 0x3b2   : > { %v9801_v63 = vpop.f32.mrf.mxu1 }
 0x3b3   : > { %v2844_v46 = vpop.f32.mrf.mxu2 }
 0x3b6   : > { %4004 = vmatmul.bf16.gmra.mxu3 %v3904_v48 }
 0x3b9   : > { %v3118_v42 = vpop.f32.mrf.mxu3 }
 0x3ba   : > { %v2426_v37 = vpop.f32.mrf.mxu1 }
 0x3bb   : > { %v2445_v40 = vadd.f32 %v2426_v37, %v9670_v38  ;;  %v9806_v59 = vpop.f32.mrf.mxu2 }
 0x3bd   : > { %v2863_v49 = vadd.f32 %v2844_v46, %v2445_v40  ;;  %3312 = vmatmul.bf16.gmra.mxu1 %v7545_v21 }
 0x3bf   : > { %v9808_v51 = vadd.f32 %v3118_v42, %v2863_v49 }
 0x3c1   : > { %v9812_v56 = vpop.f32.mrf.mxu3 }
 0x3c2   : > { %v9810_v33 = vpop.f32.mrf.mxu1 }
 0x3c3   : > { %v3696_v62 = vpop.f32.mrf.mxu2 }
 0x3c9   : > { %v3970_v58 = vpop.f32.mrf.mxu3 }
 0x3ca   : > { %v3278_v35 = vpop.f32.mrf.mxu1 }
 0x3cb   : > { %v3318_v5 = vadd.f32 %v3278_v35, %v9685_v24  ;;  %v3698_v52 = vpop.f32.mrf.mxu2 }
 0x3cd   : > { %v3736_v7 = vadd.f32 %v3696_v62, %v3318_v5 }
 0x3cf   : > { %v4010_v60 = vadd.f32 %v3970_v58, %v3736_v7 }
 0x3d1   : > { %v3972_v14 = vpop.f32.mrf.mxu3  ;;  %v4030_v3 = vadd.f32 %v9818_v26, %v4010_v60 }
 0x3d2   : > { %v3280_v38 = vpop.f32.mrf.mxu1 }
 0x3d3   : > { %v3319_v0 = vadd.f32 %v3280_v38, %v9698_v12  ;;  %v3701_v20 = vpop.f32.mrf.mxu2  ;;  %v4046_v55 = vmax.f32 %v4030_v3, 0.0  ;;  %v4232_v3 = vld [vmem:[#allocation3 + $0x18] sm:$0x3] }
 0x3d5   : > { %v3737_v44 = vadd.f32 %v3698_v52, %v3319_v0 }
 0x3d7   : > { %v4011_v50 = vadd.f32 %v3972_v14, %v3737_v44 }
 0x3d9   : > { %v4031_v24 = vadd.f32 %v9818_v26, %v4011_v50  ;;  %v3975_v1 = vpop.f32.mrf.mxu3  ;;  %v4204_v50 = vld [vmem:[#allocation3 + $0x4] sm:$0x7] }
 0x3da   : > { %v3283_v43 = vpop.f32.mrf.mxu1 }
 0x3db   : > { %v4047_v11 = vmax.f32 %v4031_v24, 0.0  ;;  %v3320_v27 = vadd.f32 %v3283_v43, %v9707_v17  ;;  %v3703_v46 = vpop.f32.mrf.mxu2 }
 0x3dd   : > { %v4062_v45 = vmax.f32 %v4046_v55, %v4047_v11  ;;  %v3738_v48 = vadd.f32 %v3701_v20, %v3320_v27 }
 0x3df   : > { %4070 = vst [vmem:[#allocation5] sm:$0xff] %v4062_v45  ;;  %v4012_v12 = vadd.f32 %v3975_v1, %v3738_v48 }
 0x3e1   : > { %v3977_v37 = vpop.f32.mrf.mxu3  ;;  %v4032_v35 = vadd.f32 %v9818_v26, %v4012_v12 }
 0x3e2   : > { %v3285_v31 = vpop.f32.mrf.mxu1 }
 0x3e3   : > { %v3321_v54 = vadd.f32 %v3285_v31, %v9714_v34  ;;  %v3706_v42 = vpop.f32.mrf.mxu2  ;;  %v4048_v38 = vmax.f32 %v4032_v35, 0.0 }
 0x3e5   : > { %v3739_v40 = vadd.f32 %v3703_v46, %v3321_v54 }
 0x3e6   : > { %v4078_v21 = vld [vmem:[#allocation5] ss:$2 sm:$0xf]  ;;  %v4094_v49 = vld [vmem:[#allocation5 + $0x1] ss:$2 sm:$0xf] }
 0x3e7   : > { %v4109_v62 = vmax.f32 %v4078_v21, %v4094_v49  ;;  %v4013_v5 = vadd.f32 %v3977_v37, %v3739_v40 }
 0x3e9   : > { %v4129_v58 = vpack.c.bf16 %v4109_v62, %v4109_v62  ;;  %v4033_v17 = vadd.f32 %v9818_v26, %v4013_v5  ;;  %v3980_v0 = vpop.f32.mrf.mxu3 }
 0x3ea   : > { %v3288_v52 = vpop.f32.mrf.mxu1 }
 0x3eb   : > { %v4138_v7 = vshrl.u32 %v4129_v58, 16  ;;  %v4049_v60 = vmax.f32 %v4033_v17, 0.0  ;;  %v4141_v34 = vshll.u32 %v4129_v58, 16  ;;  %v3708_v20 = vpop.f32.mrf.mxu2  ;;  %v3322_v55 = vadd.f32 %v3288_v52, %v9725_v47 }
 0x3ed   : > { %v4140_v14 = vrot.slane %v4138_v7, 7  ;;  %v4063_v44 = vmax.f32 %v4048_v38, %v4049_v60  ;;  %v3740_v12 = vadd.f32 %v3706_v42, %v3322_v55  ;;  %v8630_v7 = vld [vmem:[%s11079_s5 + $0x78] sm:$0xff] }
 0x3ee   : > { %4529 = vmatpush.bf16.msrb.mxu1 %v8630_v7 }
 0x3ef   : > { %v4143_v24 = vor.u32 %v4141_v34, %v4140_v14  ;;  %4071 = vst [vmem:[#allocation5 + $0x8] sm:$0xff] %v4063_v44  ;;  %v4014_v49 = vadd.f32 %v3980_v0, %v3740_v12 }
 0x3f1   : > { %v4205_v43 = vsel %vm9828_vm13, %v4143_v24, %v4204_v50  ;;  %v3982_v1 = vpop.f32.mrf.mxu3  ;;  %v4034_v60 = vadd.f32 %v9818_v26, %v4014_v49  ;;  %v8638_v50 = vld [vmem:[%s11079_s5 + $0xb8] sm:$0xff]  ;;  %v8388_v24 = vld [vmem:[%s11081_s7 + $0x1d0] sm:$0xf] }
 0x3f2   : > { %4206 = vst [vmem:[#allocation3 + $0x4] sm:$0x7] %v4205_v43  ;;  %v3290_v11 = vpop.f32.mrf.mxu1  ;;  %v8746_v43 = vld [vmem:[%s11081_s7 + $0x1d4] sm:$0xf0]  ;;  %4852 = vmatpush.bf16.msrb.mxu3 %v8638_v50 }
 0x3f3   : > { %v3323_v27 = vadd.f32 %v3290_v11, %v9730_v6  ;;  %v3711_v46 = vpop.f32.mrf.mxu2 }
 0x3f5   : > { %v3741_v45 = vadd.f32 %v3708_v20, %v3323_v27  ;;  %v8622_v20 = vld [vmem:[%s11079_s5 + $0x38] sm:$0xff] }
 0x3f6   : > { %v4080_v48 = vld [vmem:[#allocation5 + $0x8] ss:$2 sm:$0xf]  ;;  %v4096_v31 = vld [vmem:[#allocation5 + $0x9] ss:$2 sm:$0xf]  ;;  %4623 = vmatpush.bf16.msrb.mxu2 %v8622_v20 }
 0x3f7   : > { %v4110_v54 = vmax.f32 %v4080_v48, %v4096_v31  ;;  %v4015_v37 = vadd.f32 %v3982_v1, %v3741_v45  ;;  %v4050_v45 = vmax.f32 %v4034_v60, 0.0  ;;  %v4252_v60 = vld [vmem:[#allocation3] sm:$0x7] }
 0x3f9   : > { %v4253_v40 = vld [vmem:[#allocation3 + $0x4] sm:$0x7]  ;;  %v4130_v47 = vpack.c.bf16 %v4110_v54, %v4110_v54  ;;  %v3985_v35 = vpop.f32.mrf.mxu3  ;;  %v4035_v42 = vadd.f32 %v9818_v26, %v4015_v37  ;;  %v8389_v37 = vor.u32 %v8746_v43, %v8388_v24 }
 0x3fa   : > { %v4269_v21 = vrot.slane %v4253_v40, 2  ;;  %v3293_v62 = vpop.f32.mrf.mxu1 }
 0x3fb   : > { %v3713_v38 = vpop.f32.mrf.mxu2  ;;  %v4145_v44 = vshrl.u32 %v4130_v47, 16  ;;  %v4051_v55 = vmax.f32 %v4035_v42, 0.0  ;;  %v4148_v1 = vshll.u32 %v4130_v47, 16  ;;  %6661 = vmatpush.bf16.msrb.mxu0 %v8389_v37 }
 0x3fc   : > { %v4286_v6 = vsel %vm4276_vm14, %v4253_v40, %v4269_v21  ;;  %v4287_v5 = vsel %vm4280_vm15, %v4253_v40, %v4269_v21  ;;  %v4207_v21 = vld [vmem:[#allocation3 + $0x8] sm:$0x7] }
 0x3fd   : > { %v4289_v58 = vrot.slane %v4287_v5, 2  ;;  %v4346_v17 = vshrl.u32 %v4286_v6, 16  ;;  %v4349_v52 = vshll.u32 %v4286_v6, 16  ;;  %v4147_v54 = vrot.slane %v4145_v44, 7 }
 0x3fe   : > { %v4064_v49 = vmax.f32 %v4050_v45, %v4051_v55  ;;  %v3324_v6 = vadd.f32 %v3293_v62, %v9739_v53  ;;  %v8629_v53 = vld [vmem:[%s11079_s5 + $0x70] sm:$0xff] }
 0x3ff   : > { %v4348_v0 = vrot.slane %v4346_v17, 6  ;;  %v4351_v14 = vrot.slane %v4349_v52, 7  ;;  %v4355_v34 = vshll.u32 %v4289_v58, 16  ;;  %v4150_v58 = vor.u32 %v4148_v1, %v4147_v54  ;;  %4530 = vmatpush.bf16.msrb.mxu1 %v8629_v53 }
 0x400   : > { %v3742_v47 = vadd.f32 %v3711_v46, %v3324_v6  ;;  %4072 = vst [vmem:[#allocation5 + $0x10] sm:$0xff] %v4064_v49  ;;  %v8621_v49 = vld [vmem:[%s11079_s5 + $0x30] sm:$0xff] }
 0x401   : > { %v4352_v11 = vor.u32 %v4351_v14, %v4348_v0  ;;  %v4357_v12 = vrot.slane %v4355_v34, 7  ;;  %v3987_v40 = vpop.f32.mrf.mxu3  ;;  %v4208_v7 = vsel %vm9828_vm13, %v4150_v58, %v4207_v21  ;;  %v1959_v14 = vadd.f32 %v9504_v28, %v9506_v8  ;;  %4624 = vmatpush.bf16.msrb.mxu2 %v8621_v49 }
 0x402   : > { %v3295_v48 = vpop.f32.mrf.mxu1  ;;  %4209 = vst [vmem:[#allocation3 + $0x8] sm:$0x7] %v4208_v7  ;;  %v4016_v62 = vadd.f32 %v3985_v35, %v3742_v47  ;;  %v8628_v47 = vld [vmem:[%s11079_s5 + $0x68] sm:$0xff] }
 0x403   : > { %v4353_v31 = vrot.slane %v4352_v11, 2  ;;  %v3325_v5 = vadd.f32 %v3295_v48, %v9746_v22  ;;  %v3716_v17 = vpop.f32.mrf.mxu2  ;;  %v4268_v22 = vrot.slane %v4252_v60, 2  ;;  %v2246_v28 = vadd.f32 %v9511_v23, %v1959_v14  ;;  %4531 = vmatpush.bf16.msrb.mxu1 %v8628_v47 }
 0x404   : > { %v4036_v34 = vadd.f32 %v9818_v26, %v4016_v62 }
 0x405   : > { %v4358_v42 = vsel %vm9856_vm7, %v4353_v31, %v4357_v12  ;;  %v3743_v52 = vadd.f32 %v3713_v38, %v3325_v5  ;;  %v4279_v46 = vsel %vm4276_vm14, %v4252_v60, %v4268_v22  ;;  %v4281_v38 = vsel %vm4280_vm15, %v4252_v60, %v4268_v22 }
 0x406   : > { %4458 = vst [vmem:[#allocation1 + $0x1] ss:$4 sm:$0xff] %v4358_v42  ;;  %v4333_v50 = vshrl.u32 %v4279_v46, 16  ;;  %v4336_v24 = vshll.u32 %v4279_v46, 16  ;;  %v4052_v55 = vmax.f32 %v4036_v34, 0.0  ;;  %v4283_v35 = vrot.slane %v4281_v38, 2 }
 0x407   : > { %v4017_v0 = vadd.f32 %v3987_v40, %v3743_v52  ;;  %v4082_v8 = vld [vmem:[#allocation5 + $0x10] ss:$2 sm:$0xf]  ;;  %v4098_v31 = vld [vmem:[#allocation5 + $0x11] ss:$2 sm:$0xf]  ;;  %v2440_v37 = vadd.f32 %v9767_v15, %v2246_v28  ;;  %v1964_v34 = vadd.f32 %v9593_v2, %v9595_v4 }
 0x408   : > { %v4335_v1 = vrot.slane %v4333_v50, 6  ;;  %v4338_v45 = vrot.slane %v4336_v24, 7  ;;  %v4111_v21 = vmax.f32 %v4082_v8, %v4098_v31  ;;  %v4342_v23 = vshll.u32 %v4283_v35, 16  ;;  %v8626_v35 = vld [vmem:[%s11079_s5 + $0x58] sm:$0xff] }
 0x409   : > { %v4037_v44 = vadd.f32 %v9818_v26, %v4017_v0  ;;  %v3990_v43 = vpop.f32.mrf.mxu3  ;;  %v4254_v54 = vld [vmem:[#allocation3 + $0x8] sm:$0x7]  ;;  %v2858_v22 = vadd.f32 %v9753_v10, %v2440_v37 }
 0x40a   : > { %v3298_v20 = vpop.f32.mrf.mxu1  ;;  %v4270_v40 = vrot.slane %v4254_v54, 2  ;;  %v4339_v58 = vor.u32 %v4338_v45, %v4335_v1  ;;  %v4131_v46 = vpack.c.bf16 %v4111_v21, %v4111_v21  ;;  %v8637_v10 = vld [vmem:[%s11079_s5 + $0xb0] sm:$0xff] }
 0x40b   : > { %v4053_v11 = vmax.f32 %v4037_v44, 0.0  ;;  %v9875_v48 = vpop.f32.mrf.mxu2  ;;  %v3326_v6 = vadd.f32 %v3298_v20, %v9755_v61  ;;  %v8627_v61 = vld [vmem:[%s11079_s5 + $0x60] sm:$0xff]  ;;  %v4344_v20 = vrot.slane %v4342_v23, 7  ;;  %4853 = vmatpush.bf16.msrb.mxu3 %v8637_v10 }
 0x40c   : > { %v4292_v5 = vsel %vm4276_vm14, %v4254_v54, %v4270_v40  ;;  %v4293_v42 = vsel %vm4280_vm15, %v4254_v54, %v4270_v40  ;;  %v4340_v44 = vrot.slane %v4339_v58, 2  ;;  %4532 = vmatpush.bf16.msrb.mxu1 %v8627_v61  ;;  %v4152_v1 = vshrl.u32 %v4131_v46, 16  ;;  %v8624_v61 = vld [vmem:[%s11079_s5 + $0x48] sm:$0xff] }
 0x40d   : > { %v4065_v12 = vmax.f32 %v4052_v55, %v4053_v11  ;;  %v4295_v52 = vrot.slane %v4293_v42, 2  ;;  %v4359_v7 = vshrl.u32 %v4292_v5, 16  ;;  %v4362_v60 = vshll.u32 %v4292_v5, 16  ;;  %v8620_v55 = vld [vmem:[%s11079_s5 + $0x28] sm:$0xff]  ;;  %v4210_v5 = vld [vmem:[#allocation3 + $0xc] sm:$0x7] }
 0x40e   : > { %v3744_v50 = vadd.f32 %v3716_v17, %v3326_v6  ;;  %v3132_v11 = vadd.f32 %v9769_v16, %v2858_v22  ;;  %4625 = vmatpush.bf16.msrb.mxu2 %v8620_v55  ;;  %v2248_v17 = vadd.f32 %v9597_v9, %v1964_v34  ;;  %v4345_v45 = vsel %vm9856_vm7, %v4340_v44, %v4344_v20  ;;  %v8619_v9 = vld [vmem:[%s11079_s5 + $0x20] sm:$0xff]  ;;  %v8625_v42 = vld [vmem:[%s11079_s5 + $0x50] sm:$0xff] }
 0x40f   : > { %4073 = vst [vmem:[#allocation5 + $0x18] sm:$0xff] %v4065_v12  ;;  %v4361_v62 = vrot.slane %v4359_v7, 6  ;;  %v4364_v0 = vrot.slane %v4362_v60, 7  ;;  %v4368_v14 = vshll.u32 %v4295_v52, 16  ;;  %v4154_v37 = vrot.slane %v4152_v1, 7  ;;  %v8618_v60 = vld [vmem:[%s11079_s5 + $0x18] sm:$0xff] }
 0x410   : > { %v4018_v31 = vadd.f32 %v3990_v43, %v3744_v50  ;;  %v4155_v40 = vshll.u32 %v4131_v46, 16  ;;  %4455 = vst [vmem:[#allocation1] ss:$4 sm:$0xff] %v4345_v45  ;;  %v2442_v6 = vadd.f32 %v9784_v29, %v2248_v17  ;;  %4533 = vmatpush.bf16.msrb.mxu1 %v8626_v35  ;;  %v8623_v55 = vld [vmem:[%s11079_s5 + $0x40] sm:$0xff]  ;;  %v1969_v17 = vadd.f32 %v9656_v30, %v9662_v39 }
 0x411   : > { %v3992_v53 = vpop.f32.mrf.mxu3  ;;  %v4365_v24 = vor.u32 %v4364_v0, %v4361_v62  ;;  %v4370_v4 = vrot.slane %v4368_v14, 7  ;;  %v4213_v14 = vld [vmem:[#allocation3 + $0x10] sm:$0x7] }
 0x412   : > { %v3300_v15 = vpop.f32.mrf.mxu1  ;;  %v4157_v58 = vor.u32 %v4155_v40, %v4154_v37  ;;  %4626 = vmatpush.bf16.msrb.mxu2 %v8619_v9  ;;  %v4038_v29 = vadd.f32 %v9818_v26, %v4018_v31  ;;  %v2860_v22 = vadd.f32 %v9776_v57, %v2442_v6  ;;  %v8635_v57 = vld [vmem:[%s11079_s5 + $0xa0] sm:$0xff]  ;;  %v8633_v40 = vld [vmem:[%s11079_s5 + $0x90] sm:$0xff] }
 0x413   : > { %v9892_v38 = vpop.f32.mrf.mxu2  ;;  %v4366_v2 = vrot.slane %v4365_v24, 2  ;;  %v3327_v12 = vadd.f32 %v3300_v15, %v3132_v11  ;;  %v8617_v24 = vld [vmem:[%s11079_s5 + $0x10] sm:$0xff] }
 0x414   : > { %v4211_v52 = vsel %vm9828_vm13, %v4157_v58, %v4210_v5  ;;  %4534 = vmatpush.bf16.msrb.mxu1 %v8625_v42  ;;  %v4054_v20 = vmax.f32 %v4038_v29, 0.0  ;;  %v3134_v10 = vadd.f32 %v9786_v32, %v2860_v22 }
 0x415   : > { %v4371_v54 = vsel %vm9856_vm7, %v4366_v2, %v4370_v4  ;;  %v3745_v43 = vadd.f32 %v9875_v48, %v3327_v12  ;;  %v8636_v48 = vld [vmem:[%s11079_s5 + $0xa8] sm:$0xff]  ;;  %4212 = vst [vmem:[#allocation3 + $0xc] sm:$0x7] %v4211_v52 }
 0x416   : > { %v4084_v28 = vld [vmem:[#allocation5 + $0x18] ss:$2 sm:$0xf]  ;;  %v4100_v8 = vld [vmem:[#allocation5 + $0x19] ss:$2 sm:$0xf]  ;;  %4854 = vmatpush.bf16.msrb.mxu3 %v8636_v48  ;;  %4627 = vmatpush.bf16.msrb.mxu2 %v8618_v60 }
 0x417   : > { %v4112_v21 = vmax.f32 %v4084_v28, %v4100_v8  ;;  %4461 = vst [vmem:[#allocation1 + $0x2] ss:$4 sm:$0xff] %v4371_v54  ;;  %v4019_v47 = vadd.f32 %v3992_v53, %v3745_v43  ;;  %v8634_v8 = vld [vmem:[%s11079_s5 + $0x98] sm:$0xff]  ;;  %v8632_v52 = vld [vmem:[%s11079_s5 + $0x88] sm:$0xff] }
 0x418   : > { %4535 = vmatpush.bf16.msrb.mxu1 %v8624_v61 }
 0x419   : > { %v9911_v49 = vpop.f32.mrf.mxu3  ;;  %v4132_v23 = vpack.c.bf16 %v4112_v21, %v4112_v21  ;;  %v4039_v53 = vadd.f32 %v9818_v26, %v4019_v47  ;;  %v2250_v21 = vadd.f32 %v9664_v41, %v1969_v17  ;;  %v4228_v17 = vld [vmem:[#allocation3] sm:$0x3] }
 0x41a   : > { %v3303_v16 = vpop.f32.mrf.mxu1  ;;  %4855 = vmatpush.bf16.msrb.mxu3 %v8635_v57  ;;  %4628 = vmatpush.bf16.msrb.mxu2 %v8617_v24 }
 0x41b   : > { %v3723_v15 = vpop.f32.mrf.mxu2  ;;  %v4159_v7 = vshrl.u32 %v4132_v23, 16  ;;  %v4162_v0 = vshll.u32 %v4132_v23, 16  ;;  %v4055_v46 = vmax.f32 %v4039_v53, 0.0  ;;  %v3328_v2 = vadd.f32 %v3303_v16, %v9778_v18  ;;  %v8616_v18 = vld [vmem:[%s11079_s5 + $0x8] sm:$0xff] }
 0x41c   : > { %v4255_v1 = vld [vmem:[#allocation3 + $0xc] sm:$0x7]  ;;  %4536 = vmatpush.bf16.msrb.mxu1 %v8623_v55  ;;  %v2444_v58 = vadd.f32 %v9801_v63, %v2250_v21  ;;  %v4643_v23 = vld [vmem:[#allocation3 + $0x4] sm:$0x6] }
 0x41d   : > { %v4161_v62 = vrot.slane %v4159_v7, 7  ;;  %v4066_v35 = vmax.f32 %v4054_v20, %v4055_v46  ;;  %v4271_v32 = vrot.slane %v4255_v1, 2  ;;  %v3746_v28 = vadd.f32 %v9892_v38, %v3328_v2  ;;  %v8615_v38 = vld [vmem:[%s11079_s5] sm:$0xff] }
 0x41e   : > { %4856 = vmatpush.bf16.msrb.mxu3 %v8634_v8  ;;  %4629 = vmatpush.bf16.msrb.mxu2 %v8616_v18  ;;  %v4659_v7 = vrot.slane %v4643_v23, 2  ;;  %v2862_v60 = vadd.f32 %v9793_v25, %v2444_v58  ;;  %v8631_v46 = vld [vmem:[%s11079_s5 + $0x80] sm:$0xff]  ;;  %v4999_v18 = vld [vmem:[#allocation3 + $0x8] sm:$0x7] }
 0x41f   : > { %v4164_v44 = vor.u32 %v4162_v0, %v4161_v62  ;;  %4074 = vst [vmem:[#allocation5 + $0x20] sm:$0xff] %v4066_v35  ;;  %v4298_v31 = vsel %vm4276_vm14, %v4255_v1, %v4271_v32  ;;  %v4299_v12 = vsel %vm4280_vm15, %v4255_v1, %v4271_v32  ;;  %v4020_v42 = vadd.f32 %v9911_v49, %v3746_v28  ;;  %v4998_v62 = vld [vmem:[#allocation3 + $0x4] sm:$0x7] }
 0x420   : > { %v4301_v39 = vrot.slane %v4299_v12, 2  ;;  %v4372_v54 = vshrl.u32 %v4298_v31, 16  ;;  %v4375_v37 = vshll.u32 %v4298_v31, 16  ;;  %v3136_v57 = vadd.f32 %v9803_v13, %v2862_v60  ;;  %v4644_v13 = vld [vmem:[#allocation3 + $0x8] sm:$0x6] }
 0x421   : > { %v3997_v50 = vpop.f32.mrf.mxu3  ;;  %v4214_v11 = vsel %vm9828_vm13, %v4164_v44, %v4213_v14  ;;  %v4040_v48 = vadd.f32 %v9818_v26, %v4020_v42  ;;  %v9984_v24 = vsel %vm4276_vm14, %v4643_v23, %v4659_v7  ;;  %v9987_v1 = vsel %vm4280_vm15, %v4643_v23, %v4659_v7  ;;  %v4229_v28 = vld [vmem:[#allocation3 + $0x4] sm:$0x3]  ;;  %v4645_v31 = vld [vmem:[#allocation3 + $0xc] sm:$0x6]  ;;  %v4230_v42 = vld [vmem:[#allocation3 + $0x8] sm:$0x3] }
 0x422   : > { %v3305_v34 = vpop.f32.mrf.mxu1  ;;  %4215 = vst [vmem:[#allocation3 + $0x10] sm:$0x7] %v4214_v11  ;;  %v4374_v6 = vrot.slane %v4372_v54, 6  ;;  %v4377_v5 = vrot.slane %v4375_v37, 7  ;;  %v4381_v43 = vshll.u32 %v4301_v39, 16  ;;  %4630 = vmatpush.bf16.msrb.mxu2 %v8615_v38  ;;  %4857 = vmatpush.bf16.msrb.mxu3 %v8633_v40  ;;  %v7772_v8 = vrot.slane %v9984_v24, 9 }
 0x423   : > { %v3329_v4 = vadd.f32 %v3305_v34, %v3134_v10  ;;  %v3726_v45 = vpop.f32.mrf.mxu2  ;;  %v4642_v34 = vld [vmem:[#allocation3] sm:$0x6]  ;;  %v4056_v44 = vmax.f32 %v4040_v48, 0.0  ;;  %v5014_v10 = vrot.slane %v4998_v62, 2  ;;  %v7773_v40 = vrot.slane %v9987_v1, 9 }
 0x424   : > { %v4383_v41 = vrot.slane %v4381_v43, 7  ;;  %v4658_v55 = vrot.slane %v4642_v34, 2  ;;  %v5015_v58 = vrot.slane %v4999_v18, 2  ;;  %v4661_v23 = vrot.slane %v4645_v31, 2  ;;  %v4231_v7 = vld [vmem:[#allocation3 + $0xc] sm:$0x3] }
 0x425   : > { %v3747_v16 = vadd.f32 %v3723_v15, %v3329_v4  ;;  %v4378_v15 = vor.u32 %v4377_v5, %v4374_v6  ;;  %v10007_v60 = vld [vmem:[#allocation3 + $0xc] sm:$0x7] }
 0x426   : > { %v4086_v22 = vld [vmem:[#allocation5 + $0x20] ss:$2 sm:$0xf]  ;;  %v4102_v49 = vld [vmem:[#allocation5 + $0x21] ss:$2 sm:$0xf]  ;;  %4858 = vmatpush.bf16.msrb.mxu3 %v8632_v52  ;;  %v4668_v39 = vsel %vm4276_vm14, %v4642_v34, %v4658_v55  ;;  %v4670_v21 = vsel %vm4280_vm15, %v4642_v34, %v4658_v55 }
 0x427   : > { %v4021_v47 = vadd.f32 %v3997_v50, %v3747_v16  ;;  %v4379_v29 = vrot.slane %v4378_v15, 2  ;;  %v4113_v25 = vmax.f32 %v4086_v22, %v4102_v49  ;;  %v2446_v50 = vadd.f32 %v9810_v33, %v9676_v19 }
 0x428   : > { %v5024_v15 = vsel %vm4276_vm14, %v4998_v62, %v5014_v10  ;;  %v7771_v48 = vrot.slane %v4670_v21, 9  ;;  %v5016_v1 = vrot.slane %v10007_v60, 2 }
 0x429   : > { %v4000_v9 = vpop.f32.mrf.mxu3  ;;  %v4041_v63 = vadd.f32 %v9818_v26, %v4021_v47  ;;  %v4384_v0 = vsel %vm9856_vm7, %v4379_v29, %v4383_v41  ;;  %v4133_v11 = vpack.c.bf16 %v4113_v25, %v4113_v25  ;;  %v2864_v32 = vadd.f32 %v9806_v59, %v2446_v50 }
 0x42a   : > { %v3308_v30 = vpop.f32.mrf.mxu1  ;;  %4464 = vst [vmem:[#allocation1 + $0x3] ss:$4 sm:$0xff] %v4384_v0  ;;  %4859 = vmatpush.bf16.msrb.mxu3 %v8631_v46  ;;  %v4660_v59 = vrot.slane %v4644_v13, 2  ;;  %v7770_v29 = vrot.slane %v4668_v39, 9  ;;  %v5070_v34 = vshrl.u32 %v5024_v15, 16  ;;  %v5073_v25 = vshll.u32 %v5024_v15, 16 }
 0x42b   : > { %v3728_v53 = vpop.f32.mrf.mxu2  ;;  %v3330_v14 = vadd.f32 %v3308_v30, %v9795_v36  ;;  %v4057_v20 = vmax.f32 %v4041_v63, 0.0  ;;  %v4166_v19 = vshrl.u32 %v4133_v11, 16  ;;  %v4169_v37 = vshll.u32 %v4133_v11, 16 }
 0x42c   : > { %v4691_v50 = vsel %vm4280_vm15, %v4645_v31, %v4661_v23 }
 0x42d   : > { %v4067_v35 = vmax.f32 %v4056_v44, %v4057_v20  ;;  %v3748_v2 = vadd.f32 %v3726_v45, %v3330_v14  ;;  %v9992_v45 = vsel %vm4280_vm15, %v4998_v62, %v5014_v10  ;;  %v4168_v54 = vrot.slane %v4166_v19, 7  ;;  %v5001_v10 = vld [vmem:[#allocation3 + $0x10] sm:$0x7] }
 0x42e   : > { %v5027_v52 = vrot.slane %v9992_v45, 2  ;;  %v4684_v62 = vsel %vm4280_vm15, %v4644_v13, %v4660_v59  ;;  %v5030_v44 = vsel %vm4276_vm14, %v4999_v18, %v5015_v58  ;;  %v4689_v20 = vsel %vm4276_vm14, %v4645_v31, %v4661_v23 }
 0x42f   : > { %4075 = vst [vmem:[#allocation5 + $0x28] sm:$0xff] %v4067_v35  ;;  %v4022_v33 = vadd.f32 %v4000_v9, %v3748_v2  ;;  %v4216_v9 = vld [vmem:[#allocation3 + $0x1c] sm:$0x7]  ;;  %v4171_v47 = vor.u32 %v4169_v37, %v4168_v54  ;;  %v5083_v19 = vshrl.u32 %v5030_v44, 16  ;;  %v7777_v45 = vrot.slane %v4691_v50, 9 }
 0x430   : > { %v5017_v31 = vrot.slane %v5001_v10, 2  ;;  %v10044_v54 = vrot.slane %v5070_v34, 6  ;;  %v10046_v37 = vrot.slane %v5073_v25, 7 }
 0x431   : > { %v4002_v36 = vpop.f32.mrf.mxu3  ;;  %v4477_v30 = vld.sshfl [vmem:[#allocation1] sm:$0xff pattern:$0x73625140]  ;;  %v4042_v38 = vadd.f32 %v9818_v26, %v4022_v33  ;;  %v4217_v22 = vsel %vm9828_vm13, %v4171_v47, %v4216_v9 }
 0x432   : > { %v3310_v61 = vpop.f32.mrf.mxu1  ;;  %4549 = vst [vmem:[#allocation1] ss:$4 sm:$0xff] %v4228_v17  ;;  %4537 = vmatmul.bf16.vlgmr.msrb.gmra.mxu1 %v4477_v30  ;;  %v10034_v17 = vsel %vm4280_vm15, %v4999_v18, %v5015_v58 }
 0x433   : > { %v3331_v4 = vadd.f32 %v3310_v61, %v3136_v57  ;;  %v3731_v5 = vpop.f32.mrf.mxu2  ;;  %4552 = vst [vmem:[#allocation1 + $0x1] ss:$4 sm:$0xff] %v4229_v28  ;;  %v4058_v49 = vmax.f32 %v4042_v38, 0.0  ;;  %v4682_v61 = vsel %vm4276_vm14, %v4644_v13, %v4660_v59  ;;  %v7776_v28 = vrot.slane %v4689_v20, 9 }
 0x434   : > { %4555 = vst [vmem:[#allocation1 + $0x2] ss:$4 sm:$0xff] %v4230_v42  ;;  %v7774_v2 = vrot.slane %v4682_v61, 9  ;;  %v5036_v38 = vsel %vm4276_vm14, %v10007_v60, %v5016_v1  ;;  %v5042_v42 = vsel %vm4276_vm14, %v5001_v10, %v5017_v31 }
 0x435   : > { %v3749_v12 = vadd.f32 %v3728_v53, %v3331_v4  ;;  %4558 = vst [vmem:[#allocation1 + $0x3] ss:$4 sm:$0xff] %v4231_v7  ;;  %v3138_v53 = vadd.f32 %v9812_v56, %v2864_v32  ;;  %v7775_v4 = vrot.slane %v4684_v62, 9  ;;  %v5086_v32 = vshll.u32 %v5030_v44, 16 }
 0x436   : > { %4218 = vst [vmem:[#allocation3 + $0x1c] sm:$0x7] %v4217_v22  ;;  %v4088_v0 = vld [vmem:[#allocation5 + $0x28] ss:$2 sm:$0xf]  ;;  %v4743_v43 = vsel %vm10028_vm12, %v7776_v28, %v7777_v45  ;;  %v5096_v58 = vshrl.u32 %v5036_v38, 16  ;;  %v5043_v44 = vsel %vm4280_vm15, %v5001_v10, %v5017_v31  ;;  %v5037_v45 = vsel %vm4280_vm15, %v10007_v60, %v5016_v1 }
 0x437   : > { %v4023_v6 = vadd.f32 %v4002_v36, %v3749_v12  ;;  %v4104_v57 = vld [vmem:[#allocation5 + $0x29] ss:$2 sm:$0xf]  ;;  %v4735_v12 = vsel %vm10028_vm12, %v7772_v8, %v7773_v40  ;;  %v4739_v8 = vsel %vm10028_vm12, %v7774_v2, %v7775_v4  ;;  %v5033_v40 = vrot.slane %v10034_v17, 2  ;;  %v4876_v10 = vld [vmem:[#allocation3 + $0x8] sm:$0x3] }
 0x438   : > { %v4114_v36 = vmax.f32 %v4088_v0, %v4104_v57  ;;  %v5099_v22 = vshll.u32 %v5036_v38, 16  ;;  %v5112_v63 = vshll.u32 %v5042_v42, 16  ;;  %v8744_v57 = vld [vmem:[%s11081_s7 + $0x1c4] sm:$0xf0] }
 0x439   : > { %v4043_v41 = vadd.f32 %v9818_v26, %v4023_v6  ;;  %v4005_v46 = vpop.f32.mrf.mxu3  ;;  %v10055_v6 = vrot.slane %v5083_v19, 6 }
 0x43a   : > { %v3313_v16 = vpop.f32.mrf.mxu1  ;;  %v4134_v33 = vpack.c.bf16 %v4114_v36, %v4114_v36  ;;  %v5114_v2 = vrot.slane %v5112_v63, 7  ;;  %v5101_v31 = vrot.slane %v5099_v22, 7  ;;  %v5289_v63 = vld [vmem:[#allocation3 + $0x4] sm:$0x6] }
 0x43b   : > { %v4059_v14 = vmax.f32 %v4043_v41, 0.0  ;;  %v3332_v55 = vadd.f32 %v3313_v16, %v9808_v51  ;;  %v4731_v51 = vsel %vm10028_vm12, %v7770_v29, %v7771_v48  ;;  %v10042_v16 = vshll.u32 %v5027_v52, 16  ;;  %v3733_v39 = vpop.f32.mrf.mxu2 }
 0x43c   : > { %v4571_v30 = vld.sshfl [vmem:[#allocation1] sm:$0xff pattern:$0x73625140]  ;;  %v4173_v9 = vshrl.u32 %v4134_v33, 16 }
 0x43d   : > { %v4068_v56 = vmax.f32 %v4058_v49, %v4059_v14  ;;  %v3750_v18 = vadd.f32 %v3731_v5, %v3332_v55  ;;  %4778 = vst [vmem:[#allocation1] ss:$4 sm:$0xff] %v4731_v51  ;;  %v4257_v59 = vld [vmem:[#allocation3 + $0x1c] sm:$0x7]  ;;  %4631 = vmatmul.bf16.vlgmr.msrb.gmra.mxu2 %v4571_v30  ;;  %v10057_v5 = vrot.slane %v5086_v32, 7  ;;  %v5109_v49 = vshrl.u32 %v5042_v42, 16 }
 0x43e   : > { %4781 = vst [vmem:[#allocation1 + $0x1] ss:$4 sm:$0xff] %v4735_v12  ;;  %v4273_v21 = vrot.slane %v4257_v59, 2  ;;  %v4176_v14 = vshll.u32 %v4134_v33, 16  ;;  %v4877_v55 = vld [vmem:[#allocation3 + $0xc] sm:$0x3] }
 0x43f   : > { %4076 = vst [vmem:[#allocation5 + $0x30] sm:$0xff] %v4068_v56  ;;  %v4024_v15 = vadd.f32 %v4005_v46, %v3750_v18  ;;  %v8380_v46 = vld [vmem:[%s11081_s7 + $0x1c0] sm:$0xf]  ;;  %v4875_v56 = vld [vmem:[#allocation3 + $0x4] sm:$0x3]  ;;  %v5098_v51 = vrot.slane %v5096_v58, 6 }
 0x440   : > { %4784 = vst [vmem:[#allocation1 + $0x2] ss:$4 sm:$0xff] %v4739_v8  ;;  %v4310_v23 = vsel %vm4276_vm14, %v4257_v59, %v4273_v21  ;;  %v4311_v47 = vsel %vm4280_vm15, %v4257_v59, %v4273_v21  ;;  %v8381_v28 = vor.u32 %v8744_v57, %v8380_v46  ;;  %v4256_v30 = vld [vmem:[#allocation3 + $0x18] sm:$0x7]  ;;  %v4878_v8 = vld [vmem:[#allocation3 + $0x10] sm:$0x3] }
 0x441   : > { %4787 = vst [vmem:[#allocation1 + $0x3] ss:$4 sm:$0xff] %v4743_v43  ;;  %v4007_v52 = vpop.f32.mrf.mxu3  ;;  %v4313_v7 = vrot.slane %v4311_v47, 2  ;;  %v4398_v29 = vshrl.u32 %v4310_v23, 16  ;;  %v4401_v41 = vshll.u32 %v4310_v23, 16  ;;  %v4044_v50 = vadd.f32 %v9818_v26, %v4024_v15 }
 0x442   : > { %v3315_v11 = vpop.f32.mrf.mxu1  ;;  %6662 = vmatpush.bf16.msrb.mxu0 %v8381_v28  ;;  %v5089_v23 = vor.u32 %v10057_v5, %v10055_v6  ;;  %v5092_v15 = vshll.u32 %v5033_v40, 16  ;;  %v8646_v6 = vld [vmem:[%s11079_s5 + $0xf8] sm:$0xff]  ;;  %v5081_v17 = vrot.slane %v10042_v16, 7  ;;  %v5640_v57 = vld [vmem:[#allocation3 + $0x8] sm:$0x7] }
 0x443   : > { %v3333_v13 = vadd.f32 %v3315_v11, %v3138_v53  ;;  %v4175_v53 = vrot.slane %v4173_v9, 7  ;;  %v4400_v61 = vrot.slane %v4398_v29, 6  ;;  %v4403_v62 = vrot.slane %v4401_v41, 7  ;;  %4975 = vmatpush.bf16.msra.mxu1 %v8646_v6  ;;  %v8645_v16 = vld [vmem:[%s11079_s5 + $0xf0] sm:$0xff] }
 0x444   : > { %v4407_v0 = vshll.u32 %v4313_v7, 16  ;;  %v5111_v11 = vrot.slane %v5109_v49, 6  ;;  %v4060_v38 = vmax.f32 %v4044_v50, 0.0  ;;  %v5039_v9 = vrot.slane %v5037_v45, 2 }
 0x445   : > { %v3751_v24 = vadd.f32 %v3733_v39, %v3333_v13  ;;  %v4404_v20 = vor.u32 %v4403_v62, %v4400_v61  ;;  %v4178_v4 = vor.u32 %v4176_v14, %v4175_v53  ;;  %v4219_v13 = vld [vmem:[#allocation3 + $0x20] sm:$0x7]  ;;  %v4272_v39 = vrot.slane %v4256_v30, 2 }
 0x446   : > { %v4090_v34 = vld [vmem:[#allocation5 + $0x30] ss:$2 sm:$0xf]  ;;  %v4106_v25 = vld [vmem:[#allocation5 + $0x31] ss:$2 sm:$0xf]  ;;  %v5115_v21 = vor.u32 %v5114_v2, %v5111_v11 }
 0x447   : > { %v4025_v48 = vadd.f32 %v4007_v52, %v3751_v24  ;;  %v4405_v33 = vrot.slane %v4404_v20, 2  ;;  %v4409_v32 = vrot.slane %v4407_v0, 7  ;;  %v4115_v12 = vmax.f32 %v4090_v34, %v4106_v25  ;;  %v5290_v0 = vld [vmem:[#allocation3 + $0x8] sm:$0x6]  ;;  %4976 = vmatpush.bf16.msra.mxu1 %v8645_v16  ;;  %v10153_v16 = vld [vmem:[#allocation3 + $0x10] sm:$0x7] }
 0x448   : > { %v4800_v19 = vld.sshfl [vmem:[#allocation1] sm:$0xff pattern:$0x73625140]  ;;  %v5076_v24 = vor.u32 %v10046_v37, %v10044_v54  ;;  %v4220_v60 = vsel %vm9828_vm13, %v4178_v4, %v4219_v13  ;;  %v4304_v43 = vsel %vm4276_vm14, %v4256_v30, %v4272_v39  ;;  %v4305_v42 = vsel %vm4280_vm15, %v4256_v30, %v4272_v39  ;;  %v5292_v39 = vld [vmem:[#allocation3 + $0x10] sm:$0x6] }
 0x449   : > { %v4045_v36 = vadd.f32 %v9818_v26, %v4025_v48  ;;  %4907 = vst [vmem:[#allocation1 + $0x2] ss:$4 sm:$0xff] %v4877_v55  ;;  %v5045_v26 = vrot.slane %v5043_v44, 2  ;;  %4860 = vmatmul.bf16.vlgmr.msrb.gmra.mxu3 %v4800_v19  ;;  %v4410_v18 = vsel %vm9856_vm7, %v4405_v33, %v4409_v32  ;;  %v4135_v1 = vpack.c.bf16 %v4115_v12, %v4115_v12  ;;  %v4222_v44 = vld [vmem:[#allocation3 + $0x24] sm:$0x7] }
 0x44a   : > { %4901 = vst [vmem:[#allocation1] ss:$4 sm:$0xff] %v4875_v56  ;;  %v4307_v37 = vrot.slane %v4305_v42, 2  ;;  %v5102_v52 = vor.u32 %v5101_v31, %v5098_v51  ;;  %v4385_v7 = vshrl.u32 %v4304_v43, 16  ;;  %v4388_v29 = vshll.u32 %v4304_v43, 16  ;;  %v8644_v12 = vld [vmem:[%s11079_s5 + $0xe8] sm:$0xff] }
 0x44b   : > { %v4061_v59 = vmax.f32 %v4045_v36, 0.0  ;;  %4904 = vst [vmem:[#allocation1 + $0x1] ss:$4 sm:$0xff] %v4876_v10  ;;  %v5118_v47 = vshll.u32 %v5045_v26, 16  ;;  %v4180_v54 = vshrl.u32 %v4135_v1, 16  ;;  %v5116_v41 = vrot.slane %v5115_v21, 2  ;;  %4977 = vmatpush.bf16.msra.mxu1 %v8644_v12 }
 0x44c   : > { %4910 = vst [vmem:[#allocation1 + $0x3] ss:$4 sm:$0xff] %v4878_v8  ;;  %v4183_v22 = vshll.u32 %v4135_v1, 16  ;;  %v4394_v49 = vshll.u32 %v4307_v37, 16  ;;  %v5077_v5 = vrot.slane %v5076_v24, 2  ;;  %v5105_v53 = vshll.u32 %v5039_v9, 16 }
 0x44d   : > { %v4069_v58 = vmax.f32 %v4060_v38, %v4061_v59  ;;  %4470 = vst [vmem:[#allocation1 + $0x21] ss:$4 sm:$0xff] %v4410_v18  ;;  %v4182_v48 = vrot.slane %v4180_v54, 7  ;;  %v4387_v61 = vrot.slane %v4385_v7, 6  ;;  %v4390_v62 = vrot.slane %v4388_v29, 7  ;;  %v8661_v12 = vld [vmem:[%s11079_s5 + $0x170] sm:$0xff] }
 0x44e   : > { %4221 = vst [vmem:[#allocation3 + $0x20] sm:$0x7] %v4220_v60  ;;  %v5090_v40 = vrot.slane %v5089_v23, 2  ;;  %v5120_v14 = vrot.slane %v5118_v47, 7  ;;  %v5103_v25 = vrot.slane %v5102_v52, 2  ;;  %v4396_v46 = vrot.slane %v4394_v49, 7 }
 0x44f   : > { %4077 = vst [vmem:[#allocation5 + $0x38] sm:$0xff] %v4069_v58  ;;  %v4185_v34 = vor.u32 %v4183_v22, %v4182_v48  ;;  %v4391_v20 = vor.u32 %v4390_v62, %v4387_v61  ;;  %v5305_v50 = vrot.slane %v5289_v63, 2  ;;  %v5094_v36 = vrot.slane %v5092_v15, 7  ;;  %v5291_v26 = vld [vmem:[#allocation3 + $0xc] sm:$0x6]  ;;  %v8654_v60 = vld [vmem:[%s11079_s5 + $0x138] sm:$0xff] }
 0x450   : > { %v5121_v55 = vsel %vm9856_vm7, %v5116_v41, %v5120_v14  ;;  %v5082_v11 = vsel %vm9856_vm7, %v5077_v5, %v5081_v17  ;;  %v5306_v2 = vrot.slane %v5290_v0, 2  ;;  %v5107_v4 = vrot.slane %v5105_v53, 7  ;;  %v10132_v58 = vld [vmem:[#allocation3 + $0x8] sm:$0x6]  ;;  %5266 = vmatpush.bf16.msra.mxu2 %v8654_v60  ;;  %v8643_v15 = vld [vmem:[%s11079_s5 + $0xe0] sm:$0xff] }
 0x451   : > { %v4392_v13 = vrot.slane %v4391_v20, 2  ;;  %v5095_v10 = vsel %vm9856_vm7, %v5090_v40, %v5094_v36  ;;  %v4223_v51 = vsel %vm9828_vm13, %v4185_v34, %v4222_v44  ;;  %v5656_v33 = vrot.slane %v5640_v57, 2  ;;  %v8653_v52 = vld [vmem:[%s11079_s5 + $0x130] sm:$0xff]  ;;  %4978 = vmatpush.bf16.msra.mxu1 %v8643_v15 }
 0x452   : > { %v5108_v32 = vsel %vm9856_vm7, %v5103_v25, %v5107_v4  ;;  %v10111_v31 = vsel %vm4276_vm14, %v5289_v63, %v5305_v50  ;;  %v10117_v30 = vsel %vm4280_vm15, %v5289_v63, %v5305_v50  ;;  %v10120_v18 = vsel %vm4276_vm14, %v5290_v0, %v5306_v2  ;;  %4224 = vst [vmem:[#allocation3 + $0x24] sm:$0x7] %v4223_v51  ;;  %v5641_v20 = vld [vmem:[#allocation3 + $0xc] sm:$0x7]  ;;  %v8642_v51 = vld [vmem:[%s11079_s5 + $0xd8] sm:$0xff] }
 0x453   : > { %v10093_v56 = vld.sshfl [vmem:[#allocation1] sm:$0xff pattern:$0x73625140]  ;;  %v4397_v45 = vsel %vm9856_vm7, %v4392_v13, %v4396_v46  ;;  %v5666_v1 = vsel %vm4276_vm14, %v5640_v57, %v5656_v33  ;;  %v7930_v9 = vrot.slane %v10111_v31, 9  ;;  %v10130_v43 = vsel %vm4280_vm15, %v5290_v0, %v5306_v2 }
 0x454   : > { %5201 = vst [vmem:[#allocation1 + $0x3] ss:$4 sm:$0xff] %v5121_v55  ;;  %v5307_v42 = vrot.slane %v5291_v26, 2  ;;  %v5308_v23 = vrot.slane %v5292_v39, 2  ;;  %v7931_v7 = vrot.slane %v10117_v30, 9  ;;  %v7932_v29 = vrot.slane %v10120_v18, 9  ;;  %5267 = vmatpush.bf16.msra.mxu2 %v8653_v52 }
 0x455   : > { %5192 = vst [vmem:[#allocation1] ss:$4 sm:$0xff] %v5082_v11  ;;  %v4258_v19 = vld [vmem:[#allocation3 + $0x20] sm:$0x7]  ;;  %v5712_v41 = vshrl.u32 %v5666_v1, 16  ;;  %v5715_v48 = vshll.u32 %v5666_v1, 16  ;;  %v5667_v5 = vsel %vm4280_vm15, %v5640_v57, %v5656_v33  ;;  %4979 = vmatpush.bf16.msra.mxu1 %v8642_v51 }
 0x456   : > { %5195 = vst [vmem:[#allocation1 + $0x1] ss:$4 sm:$0xff] %v5095_v10  ;;  %v4274_v28 = vrot.slane %v4258_v19, 2  ;;  %v4092_v49 = vld [vmem:[#allocation5 + $0x38] ss:$2 sm:$0xf]  ;;  %v5329_v53 = vsel %vm4276_vm14, %v5291_v26, %v5307_v42  ;;  %v5331_v61 = vsel %vm4280_vm15, %v5291_v26, %v5307_v42  ;;  %v5336_v17 = vsel %vm4276_vm14, %v5292_v39, %v5308_v23 }
 0x457   : > { %5198 = vst [vmem:[#allocation1 + $0x2] ss:$4 sm:$0xff] %v5108_v32  ;;  %v4108_v6 = vld [vmem:[#allocation5 + $0x39] ss:$2 sm:$0xf]  ;;  %v7933_v63 = vrot.slane %v10130_v43, 9  ;;  %v5338_v40 = vsel %vm4280_vm15, %v5292_v39, %v5308_v23  ;;  %v5372_v39 = vsel %vm10028_vm12, %v7930_v9, %v7931_v7 }
 0x458   : > { %v4316_v38 = vsel %vm4276_vm14, %v4258_v19, %v4274_v28  ;;  %v4317_v59 = vsel %vm4280_vm15, %v4258_v19, %v4274_v28  ;;  %4467 = vst [vmem:[#allocation1 + $0x20] ss:$4 sm:$0xff] %v4397_v45  ;;  %v5947_v62 = vrot.slane %v10132_v58, 2  ;;  %v4116_v44 = vmax.f32 %v4092_v49, %v4108_v6  ;;  %v8662_v19 = vld [vmem:[%s11079_s5 + $0x178] sm:$0xff]  ;;  %v8652_v45 = vld [vmem:[%s11079_s5 + $0x128] sm:$0xff]  ;;  %v8641_v30 = vld [vmem:[%s11079_s5 + $0xd0] sm:$0xff] }
 0x459   : > { %v4319_v24 = vrot.slane %v4317_v59, 2  ;;  %v4411_v8 = vshrl.u32 %v4316_v38, 16  ;;  %v4414_v21 = vshll.u32 %v4316_v38, 16  ;;  %v4259_v34 = vld [vmem:[#allocation3 + $0x24] sm:$0x7]  ;;  %v5669_v46 = vrot.slane %v5667_v5, 2  ;;  %5493 = vmatpush.bf16.msra.mxu3 %v8662_v19  ;;  %5268 = vmatpush.bf16.msra.mxu2 %v8652_v45 }
 0x45a   : > { %v4275_v25 = vrot.slane %v4259_v34, 2  ;;  %v10149_v57 = vrot.slane %v5712_v41, 6  ;;  %v7934_v50 = vrot.slane %v5329_v53, 9  ;;  %v7935_v36 = vrot.slane %v5331_v61, 9  ;;  %4980 = vmatpush.bf16.msra.mxu1 %v8641_v30  ;;  %v8650_v41 = vld [vmem:[%s11079_s5 + $0x118] sm:$0xff] }
 0x45b   : > { %v4413_v47 = vrot.slane %v4411_v8, 6  ;;  %v4416_v54 = vrot.slane %v4414_v21, 7  ;;  %v4420_v37 = vshll.u32 %v4319_v24, 16  ;;  %v10155_v11 = vrot.slane %v5715_v48, 7  ;;  %v8651_v21 = vld [vmem:[%s11079_s5 + $0x120] sm:$0xff] }
 0x45c   : > { %v7936_v2 = vrot.slane %v5336_v17, 9  ;;  %v7937_v4 = vrot.slane %v5338_v40, 9  ;;  %v4322_v13 = vsel %vm4276_vm14, %v4259_v34, %v4275_v25  ;;  %v4323_v10 = vsel %vm4280_vm15, %v4259_v34, %v4275_v25  ;;  %v4225_v61 = vld [vmem:[#allocation3 + $0x28] sm:$0x7]  ;;  %v5643_v17 = vld [vmem:[#allocation3 + $0x14] sm:$0x7] }
 0x45d   : > { %v4417_v22 = vor.u32 %v4416_v54, %v4413_v47  ;;  %v4422_v14 = vrot.slane %v4420_v37, 7  ;;  %v4325_v33 = vrot.slane %v4323_v10, 2  ;;  %v4424_v32 = vshrl.u32 %v4322_v13, 16  ;;  %5494 = vmatpush.bf16.msra.mxu3 %v8661_v12  ;;  %v8660_v47 = vld [vmem:[%s11079_s5 + $0x168] sm:$0xff]  ;;  %5269 = vmatpush.bf16.msra.mxu2 %v8651_v21  ;;  %v8639_v34 = vld [vmem:[%s11079_s5 + $0xc0] sm:$0xff] }
 0x45e   : > { %v4427_v28 = vshll.u32 %v4322_v13, 16  ;;  %v5657_v31 = vrot.slane %v5641_v20, 2  ;;  %v4136_v26 = vpack.c.bf16 %v4116_v44, %v4116_v44  ;;  %v10174_v18 = vld.sshfl [vmem:[#allocation1] sm:$0xff pattern:$0x73625140]  ;;  %v5658_v38 = vrot.slane %v10153_v16, 2 }
 0x45f   : > { %v4418_v0 = vrot.slane %v4417_v22, 2  ;;  %v4426_v59 = vrot.slane %v4424_v32, 6  ;;  %v4433_v8 = vshll.u32 %v4325_v33, 16  ;;  %v5376_v60 = vsel %vm10028_vm12, %v7932_v29, %v7933_v63  ;;  %5419 = vst [vmem:[#allocation1] ss:$4 sm:$0xff] %v5372_v39  ;;  %v8640_v54 = vld [vmem:[%s11079_s5 + $0xc8] sm:$0xff] }
 0x460   : > { %v4429_v24 = vrot.slane %v4427_v28, 7  ;;  %5422 = vst [vmem:[#allocation1 + $0x1] ss:$4 sm:$0xff] %v5376_v60  ;;  %v5672_v43 = vsel %vm4276_vm14, %v5641_v20, %v5657_v31  ;;  %v10185_v42 = vshll.u32 %v5669_v46, 16  ;;  %v10191_v9 = vsel %vm4276_vm14, %v10132_v58, %v5947_v62  ;;  %4981 = vmatpush.bf16.msra.mxu1 %v8640_v54  ;;  %v8649_v46 = vld [vmem:[%s11079_s5 + $0x110] sm:$0xff]  ;;  %v8658_v28 = vld [vmem:[%s11079_s5 + $0x158] sm:$0xff] }
 0x461   : > { %v4423_v55 = vsel %vm9856_vm7, %v4418_v0, %v4422_v14  ;;  %v4187_v23 = vshrl.u32 %v4136_v26, 16  ;;  %v5380_v37 = vsel %vm10028_vm12, %v7934_v50, %v7935_v36  ;;  %v5673_v15 = vsel %vm4280_vm15, %v5641_v20, %v5657_v31  ;;  %5495 = vmatpush.bf16.msra.mxu3 %v8660_v47  ;;  %v8659_v14 = vld [vmem:[%s11079_s5 + $0x160] sm:$0xff]  ;;  %5270 = vmatpush.bf16.msra.mxu2 %v8650_v41  ;;  %v5517_v13 = vld [vmem:[#allocation3 + $0x8] sm:$0x3]  ;;  %v4648_v45 = vld [vmem:[#allocation3 + $0x20] sm:$0x6] }
 0x462   : > { %4473 = vst [vmem:[#allocation1 + $0x22] ss:$4 sm:$0xff] %v4423_v55  ;;  %v4430_v1 = vor.u32 %v4429_v24, %v4426_v59  ;;  %v5718_v52 = vor.u32 %v10155_v11, %v10149_v57  ;;  %v4435_v29 = vrot.slane %v4433_v8, 7  ;;  %v5384_v48 = vsel %vm10028_vm12, %v7936_v2, %v7937_v4  ;;  %v4646_v20 = vld [vmem:[#allocation3 + $0x18] sm:$0x6]  ;;  %v8670_v4 = vld [vmem:[%s11079_s5 + $0x1b8] sm:$0xff] }
 0x463   : > { %5425 = vst [vmem:[#allocation1 + $0x2] ss:$4 sm:$0xff] %v5380_v37  ;;  %v10211_v22 = vsel %vm4280_vm15, %v10153_v16, %v5658_v38  ;;  %v4189_v49 = vrot.slane %v4187_v23, 7  ;;  %v4190_v6 = vshll.u32 %v4136_v26, 16  ;;  %v5725_v5 = vshrl.u32 %v5672_v43, 16  ;;  %v8648_v31 = vld [vmem:[%s11079_s5 + $0x108] sm:$0xff] }
 0x464   : > { %v4431_v7 = vrot.slane %v4430_v1, 2  ;;  %5428 = vst [vmem:[#allocation1 + $0x3] ss:$4 sm:$0xff] %v5384_v48  ;;  %v5728_v63 = vshll.u32 %v5672_v43, 16  ;;  %v5675_v40 = vrot.slane %v5673_v15, 2  ;;  %v10223_v25 = vsel %vm4276_vm14, %v10153_v16, %v5658_v38  ;;  %4982 = vmatpush.bf16.msra.mxu1 %v8639_v34  ;;  %v8657_v43 = vld [vmem:[%s11079_s5 + $0x150] sm:$0xff] }
 0x465   : > { %v4192_v0 = vor.u32 %v4190_v6, %v4189_v49  ;;  %v8090_v44 = vrot.slane %v10191_v9, 9  ;;  %v5681_v57 = vrot.slane %v10211_v22, 2  ;;  %v10230_v50 = vrot.slane %v5718_v52, 2  ;;  %v4647_v33 = vld [vmem:[#allocation3 + $0x1c] sm:$0x6]  ;;  %5496 = vmatpush.bf16.msra.mxu3 %v8659_v14  ;;  %5271 = vmatpush.bf16.msra.mxu2 %v8649_v46  ;;  %v8669_v23 = vld [vmem:[%s11079_s5 + $0x1b0] sm:$0xff] }
 0x466   : > { %v4436_v53 = vsel %vm9856_vm7, %v4431_v7, %v4435_v29  ;;  %v5723_v36 = vrot.slane %v10185_v42, 7  ;;  %v5659_v11 = vrot.slane %v5643_v17, 2  ;;  %v10235_v16 = vrot.slane %v5725_v5, 6  ;;  %v4233_v12 = vld [vmem:[#allocation3 + $0x1c] sm:$0x3]  ;;  %v8656_v34 = vld [vmem:[%s11079_s5 + $0x148] sm:$0xff] }
 0x467   : > { %4476 = vst [vmem:[#allocation1 + $0x23] ss:$4 sm:$0xff] %v4436_v53  ;;  %v4226_v55 = vsel %vm9828_vm13, %v4192_v0, %v4225_v61  ;;  %v10237_v2 = vrot.slane %v5728_v63, 7  ;;  %v10242_v10 = vshll.u32 %v5675_v40, 16  ;;  %v5738_v19 = vshrl.u32 %v10223_v25, 16  ;;  %v8647_v37 = vld [vmem:[%s11079_s5 + $0x100] sm:$0xff] }
 0x468   : > { %4227 = vst [vmem:[#allocation3 + $0x28] sm:$0x7] %v4226_v55  ;;  %v5741_v51 = vshll.u32 %v10223_v25, 16  ;;  %v4662_v32 = vrot.slane %v4646_v20, 2  ;;  %5617 = vmatpush.bf16.msrb.mxu1 %v8670_v4  ;;  %v10254_v30 = vld [vmem:[#allocation3 + $0x1c] sm:$0x7]  ;;  %v5684_v38 = vsel %vm4276_vm14, %v5643_v17, %v5659_v11  ;;  %v5685_v15 = vsel %vm4280_vm15, %v5643_v17, %v5659_v11 }
 0x469   : > { %v4649_v39 = vld [vmem:[#allocation3 + $0x24] sm:$0x6]  ;;  %v4663_v59 = vrot.slane %v4647_v33, 2  ;;  %v4234_v24 = vld [vmem:[#allocation3 + $0x20] sm:$0x3]  ;;  %v4664_v21 = vrot.slane %v4648_v45, 2  ;;  %5497 = vmatpush.bf16.msra.mxu3 %v8658_v28  ;;  %5272 = vmatpush.bf16.msra.mxu2 %v8648_v31 }
 0x46a   : > { %v4696_v60 = vsel %vm4276_vm14, %v4646_v20, %v4662_v32  ;;  %v4698_v1 = vsel %vm4280_vm15, %v4646_v20, %v4662_v32  ;;  %v5736_v47 = vrot.slane %v10242_v10, 7  ;;  %v4665_v54 = vrot.slane %v4649_v39, 2  ;;  %v4235_v41 = vld [vmem:[#allocation3 + $0x24] sm:$0x3]  ;;  %v5518_v48 = vld [vmem:[#allocation3 + $0xc] sm:$0x3] }
 0x46b   : > { %v10252_v26 = vld.sshfl [vmem:[#allocation1] sm:$0xff pattern:$0x73625140]  ;;  %v5751_v52 = vshrl.u32 %v5684_v38, 16  ;;  %v5754_v7 = vshll.u32 %v5684_v38, 16  ;;  %v5018_v29 = vrot.slane %v10254_v30, 2  ;;  %v4703_v6 = vsel %vm4276_vm14, %v4647_v33, %v4663_v59 }
 0x46c   : > { %5543 = vst [vmem:[#allocation1] ss:$4 sm:$0xff] %v5517_v13  ;;  %5618 = vmatpush.bf16.msrb.mxu1 %v8669_v23  ;;  %v10271_v49 = vrot.slane %v5738_v19, 6  ;;  %v10274_v5 = vld [vmem:[#allocation3 + $0x20] sm:$0x7]  ;;  %v7778_v63 = vrot.slane %v4696_v60, 9  ;;  %v4705_v61 = vsel %vm4280_vm15, %v4647_v33, %v4663_v59  ;;  %v10278_v17 = vsel %vm4276_vm14, %v4648_v45, %v4664_v21 }
 0x46d   : > { %v7779_v53 = vrot.slane %v4698_v1, 9  ;;  %v10281_v40 = vsel %vm4280_vm15, %v4648_v45, %v4664_v21  ;;  %v8372_v0 = vld [vmem:[%s11081_s7 + $0x1b0] sm:$0xf]  ;;  %v8742_v14 = vld [vmem:[%s11081_s7 + $0x1b4] sm:$0xf0]  ;;  %5498 = vmatpush.bf16.msra.mxu3 %v8657_v43  ;;  %v5687_v46 = vrot.slane %v5685_v15, 2  ;;  %v4717_v55 = vsel %vm4276_vm14, %v4649_v39, %v4665_v54  ;;  %5273 = vmatpush.bf16.msra.mxu2 %v8647_v37 }
 0x46e   : > { %v4478_v8 = vld.sshfl [vmem:[#allocation1 + $0x20] sm:$0xff pattern:$0x73625140]  ;;  %v5519_v20 = vld [vmem:[#allocation3 + $0x10] sm:$0x3]  ;;  %v8373_v11 = vor.u32 %v8742_v14, %v8372_v0  ;;  %v8668_v4 = vld [vmem:[%s11079_s5 + $0x1a8] sm:$0xff]  ;;  %v4719_v28 = vsel %vm4280_vm15, %v4649_v39, %v4665_v54  ;;  %v5049_v25 = vsel %vm4280_vm15, %v10254_v30, %v5018_v29 }
 0x46f   : > { %4561 = vst [vmem:[#allocation1 + $0x20] ss:$4 sm:$0xff] %v4232_v3  ;;  %4542 = vmatmul.bf16.gmra.mxu1 %v4478_v8  ;;  %v8678_v13 = vld [vmem:[%s11079_s5 + $0x1f8] sm:$0xff]  ;;  %v5753_v19 = vrot.slane %v5751_v52, 6  ;;  %v5756_v33 = vrot.slane %v5754_v7, 7  ;;  %v7780_v32 = vrot.slane %v4703_v6, 9  ;;  %v10312_v8 = vsel %vm4276_vm14, %v10254_v30, %v5018_v29 }
 0x470   : > { %4564 = vst [vmem:[#allocation1 + $0x21] ss:$4 sm:$0xff] %v4233_v12  ;;  %v10299_v3 = vld [vmem:[#allocation3 + $0xc] sm:$0x6]  ;;  %v10302_v45 = vld [vmem:[#allocation3 + $0x28] sm:$0x7]  ;;  %v5731_v12 = vor.u32 %v10237_v2, %v10235_v16  ;;  %6663 = vmatpush.bf16.msrb.mxu0 %v8373_v11  ;;  %5619 = vmatpush.bf16.msrb.mxu1 %v8668_v4  ;;  %v5724_v4 = vsel %vm9856_vm7, %v10230_v50, %v5723_v36 }
 0x471   : > { %4567 = vst [vmem:[#allocation1 + $0x22] ss:$4 sm:$0xff] %v4234_v24  ;;  %v5520_v31 = vld [vmem:[#allocation3 + $0x14] sm:$0x3]  ;;  %v5743_v38 = vrot.slane %v5741_v51, 7  ;;  %v7781_v24 = vrot.slane %v4705_v61, 9  ;;  %v4747_v51 = vsel %vm10028_vm12, %v7778_v63, %v7779_v53  ;;  %5499 = vmatpush.bf16.msra.mxu3 %v8656_v34  ;;  %5908 = vmatpush.bf16.msrb.mxu2 %v8678_v13  ;;  %v5757_v15 = vor.u32 %v5756_v33, %v5753_v19 }
 0x472   : > { %4570 = vst [vmem:[#allocation1 + $0x23] ss:$4 sm:$0xff] %v4235_v41  ;;  %v10308_v59 = vld [vmem:[#allocation3 + $0x10] sm:$0x6]  ;;  %v7782_v21 = vrot.slane %v10278_v17, 9  ;;  %v5019_v39 = vrot.slane %v10274_v5, 2 }
 0x473   : > { %5546 = vst [vmem:[#allocation1 + $0x1] ss:$4 sm:$0xff] %v5518_v48  ;;  %v8667_v16 = vld [vmem:[%s11079_s5 + $0x1a0] sm:$0xff]  ;;  %v7783_v2 = vrot.slane %v10281_v40, 9  ;;  %v7784_v60 = vrot.slane %v4717_v55, 9  ;;  %v8677_v23 = vld [vmem:[%s11079_s5 + $0x1f0] sm:$0xff]  ;;  %v5744_v41 = vor.u32 %v5743_v38, %v10271_v49  ;;  %v4751_v63 = vsel %vm10028_vm12, %v7780_v32, %v7781_v24 }
 0x474   : > { %5549 = vst [vmem:[#allocation1 + $0x2] ss:$4 sm:$0xff] %v5519_v20  ;;  %v10324_v1 = vld [vmem:[#allocation3 + $0x24] sm:$0x7]  ;;  %v8655_v43 = vld [vmem:[%s11079_s5 + $0x140] sm:$0xff]  ;;  %v7785_v54 = vrot.slane %v4719_v28, 9  ;;  %5620 = vmatpush.bf16.msrb.mxu1 %v8667_v16  ;;  %v10353_v0 = vsel %vm4276_vm14, %v10274_v5, %v5019_v39  ;;  %v10376_v32 = vsel %vm4280_vm15, %v10132_v58, %v5947_v62  ;;  %v10394_v62 = vsel %vm4280_vm15, %v10274_v5, %v5019_v39 }
 0x475   : > { %v5021_v30 = vrot.slane %v10302_v45, 2  ;;  %v8686_v37 = vld [vmem:[%s11079_s5 + $0x238] sm:$0xff]  ;;  %5552 = vst [vmem:[#allocation1 + $0x3] ss:$4 sm:$0xff] %v5520_v31  ;;  %v5760_v52 = vshll.u32 %v5687_v46, 16  ;;  %v5732_v29 = vrot.slane %v5731_v12, 2  ;;  %v4755_v40 = vsel %vm10028_vm12, %v7782_v21, %v7783_v2  ;;  %5500 = vmatpush.bf16.msra.mxu3 %v8655_v43  ;;  %5909 = vmatpush.bf16.msrb.mxu2 %v8677_v23 }
 0x476   : > { %v5747_v48 = vshll.u32 %v5681_v57, 16  ;;  %v5948_v6 = vrot.slane %v10299_v3, 2  ;;  %v5051_v53 = vrot.slane %v5049_v25, 2  ;;  %v5020_v61 = vrot.slane %v10324_v1, 2  ;;  %v8666_v17 = vld [vmem:[%s11079_s5 + $0x198] sm:$0xff]  ;;  %v8676_v14 = vld [vmem:[%s11079_s5 + $0x1e8] sm:$0xff] }
 0x477   : > { %v5949_v49 = vrot.slane %v10308_v59, 2  ;;  %v5122_v22 = vshrl.u32 %v10312_v8, 16  ;;  %v5125_v57 = vshll.u32 %v10312_v8, 16  ;;  %v4759_v34 = vsel %vm10028_vm12, %v7784_v60, %v7785_v54  ;;  %v8685_v46 = vld [vmem:[%s11079_s5 + $0x230] sm:$0xff]  ;;  %v5934_v33 = vld [vmem:[#allocation3 + $0x14] sm:$0x6] }
 0x478   : > { %v5066_v20 = vsel %vm4276_vm14, %v10302_v45, %v5021_v30  ;;  %v5758_v55 = vrot.slane %v5757_v15, 2  ;;  %v5762_v11 = vrot.slane %v5760_v52, 7  ;;  %v5745_v13 = vrot.slane %v5744_v41, 2  ;;  %5621 = vmatpush.bf16.msrb.mxu1 %v8666_v17  ;;  %v8665_v50 = vld [vmem:[%s11079_s5 + $0x190] sm:$0xff]  ;;  %v8675_v38 = vld [vmem:[%s11079_s5 + $0x1e0] sm:$0xff]  ;;  %v8664_v23 = vld [vmem:[%s11079_s5 + $0x188] sm:$0xff] }
 0x479   : > { %v4572_v7 = vld.sshfl [vmem:[#allocation1 + $0x20] sm:$0xff pattern:$0x73625140]  ;;  %6135 = vmatpush.bf16.msrb.mxu3 %v8686_v37  ;;  %v5749_v19 = vrot.slane %v5747_v48, 7  ;;  %v10378_v28 = vshll.u32 %v5051_v53, 16  ;;  %v5135_v31 = vshrl.u32 %v10353_v0, 16  ;;  %v5060_v42 = vsel %vm4276_vm14, %v10324_v1, %v5020_v61  ;;  %5910 = vmatpush.bf16.msrb.mxu2 %v8676_v14 }
 0x47a   : > { %4790 = vst [vmem:[#allocation1 + $0x20] ss:$4 sm:$0xff] %v4747_v51  ;;  %4636 = vmatmul.bf16.gmra.mxu2 %v4572_v7  ;;  %v5737_v58 = vsel %vm9856_vm7, %v5732_v29, %v5736_v47  ;;  %v5161_v36 = vshrl.u32 %v5066_v20, 16  ;;  %v5164_v12 = vshll.u32 %v5066_v20, 16  ;;  %v10406_v10 = vsel %vm4276_vm14, %v10299_v3, %v5948_v6  ;;  %v4879_v37 = vld [vmem:[#allocation3 + $0x1c] sm:$0x3] }
 0x47b   : > { %4793 = vst [vmem:[#allocation1 + $0x21] ss:$4 sm:$0xff] %v4751_v63  ;;  %v10408_v47 = vrot.slane %v5122_v22, 6  ;;  %v10410_v5 = vrot.slane %v5125_v57, 7  ;;  %v5763_v8 = vsel %vm9856_vm7, %v5758_v55, %v5762_v11  ;;  %v5950_v21 = vrot.slane %v5934_v33, 2  ;;  %v8674_v29 = vld [vmem:[%s11079_s5 + $0x1d8] sm:$0xff] }
 0x47c   : > { %4796 = vst [vmem:[#allocation1 + $0x22] ss:$4 sm:$0xff] %v4755_v40  ;;  %v10400_v24 = vld.sshfl [vmem:[#allocation1] sm:$0xff pattern:$0x73625140]  ;;  %v5138_v39 = vshll.u32 %v10353_v0, 16  ;;  %v5750_v25 = vsel %vm9856_vm7, %v5745_v13, %v5749_v19  ;;  %v5067_v43 = vsel %vm4280_vm15, %v10302_v45, %v5021_v30  ;;  %5622 = vmatpush.bf16.msrb.mxu1 %v8665_v50  ;;  %v5966_v45 = vsel %vm4280_vm15, %v10299_v3, %v5948_v6 }
 0x47d   : > { %4799 = vst [vmem:[#allocation1 + $0x23] ss:$4 sm:$0xff] %v4759_v34  ;;  %6136 = vmatpush.bf16.msrb.mxu3 %v8685_v46  ;;  %v5148_v16 = vshrl.u32 %v5060_v42, 16  ;;  %v8091_v2 = vrot.slane %v10376_v32, 9  ;;  %v5057_v51 = vrot.slane %v10394_v62, 2  ;;  %v5151_v60 = vshll.u32 %v5060_v42, 16  ;;  %5911 = vmatpush.bf16.msrb.mxu2 %v8675_v38 }
 0x47e   : > { %5834 = vst [vmem:[#allocation1] ss:$4 sm:$0xff] %v5724_v4  ;;  %v8092_v54 = vrot.slane %v10406_v10, 9  ;;  %v10430_v15 = vrot.slane %v5135_v31, 6  ;;  %v5163_v52 = vrot.slane %v5161_v36, 6  ;;  %v5166_v7 = vrot.slane %v5164_v12, 7 }
 0x47f   : > { %4983 = vmatmul.bf16.vlgmr.msra.gmra.mxu1 %v10093_v56  ;;  %v8684_v56 = vld [vmem:[%s11079_s5 + $0x228] sm:$0xff]  ;;  %5837 = vst [vmem:[#allocation1 + $0x1] ss:$4 sm:$0xff] %v5737_v58  ;;  %v10439_v30 = vld [vmem:[#allocation3 + $0x1c] sm:$0x6]  ;;  %v5971_v17 = vsel %vm4276_vm14, %v10308_v59, %v5949_v49  ;;  %v5973_v3 = vsel %vm4280_vm15, %v10308_v59, %v5949_v49  ;;  %v5978_v6 = vsel %vm4276_vm14, %v5934_v33, %v5950_v21  ;;  %v5140_v57 = vrot.slane %v5138_v39, 7 }
 0x480   : > { %5840 = vst [vmem:[#allocation1 + $0x2] ss:$4 sm:$0xff] %v5750_v25  ;;  %v4880_v41 = vld [vmem:[#allocation3 + $0x20] sm:$0x3]  ;;  %v4881_v63 = vld [vmem:[#allocation3 + $0x24] sm:$0x3]  ;;  %v5980_v22 = vsel %vm4280_vm15, %v5934_v33, %v5950_v21  ;;  %v5061_v40 = vsel %vm4280_vm15, %v10324_v1, %v5020_v61  ;;  %v5128_v34 = vor.u32 %v10410_v5, %v10408_v47  ;;  %5623 = vmatpush.bf16.msrb.mxu1 %v8664_v23 }
 0x481   : > { %5843 = vst [vmem:[#allocation1 + $0x3] ss:$4 sm:$0xff] %v5763_v8  ;;  %6137 = vmatpush.bf16.msrb.mxu3 %v8684_v56  ;;  %v8683_v53 = vld [vmem:[%s11079_s5 + $0x220] sm:$0xff]  ;;  %v5150_v0 = vrot.slane %v5148_v16, 6  ;;  %v5069_v14 = vrot.slane %v5067_v43, 2  ;;  %v5153_v20 = vrot.slane %v5151_v60, 7  ;;  %v5167_v46 = vor.u32 %v5166_v7, %v5163_v52  ;;  %5912 = vmatpush.bf16.msrb.mxu2 %v8674_v29 }
 0x482   : > { %v4882_v59 = vld [vmem:[#allocation3 + $0x28] sm:$0x3]  ;;  %v8663_v49 = vld [vmem:[%s11079_s5 + $0x180] sm:$0xff]  ;;  %v8093_v61 = vrot.slane %v5966_v45, 9  ;;  %v8096_v55 = vrot.slane %v5978_v6, 9  ;;  %v8097_v11 = vrot.slane %v5980_v22, 9  ;;  %v5141_v42 = vor.u32 %v5140_v57, %v10430_v15 }
 0x483   : > { %v8673_v1 = vld [vmem:[%s11079_s5 + $0x1d0] sm:$0xff]  ;;  %v5063_v4 = vrot.slane %v5061_v40, 2  ;;  %v8682_v13 = vld [vmem:[%s11079_s5 + $0x218] sm:$0xff]  ;;  %v8094_v19 = vrot.slane %v5971_v17, 9  ;;  %v8095_v33 = vrot.slane %v5973_v3, 9  ;;  %v5133_v32 = vrot.slane %v10378_v28, 7 }
 0x484   : > { %v4801_v48 = vld.sshfl [vmem:[#allocation1 + $0x20] sm:$0xff pattern:$0x73625140]  ;;  %v5309_v31 = vrot.slane %v10439_v30, 2  ;;  %v5170_v50 = vshll.u32 %v5069_v14, 16  ;;  %v5129_v58 = vrot.slane %v5128_v34, 2  ;;  %v5154_v36 = vor.u32 %v5153_v20, %v5150_v0  ;;  %5624 = vmatpush.bf16.msrb.mxu1 %v8663_v49 }
 0x485   : > { %4919 = vst [vmem:[#allocation1 + $0x22] ss:$4 sm:$0xff] %v4881_v63  ;;  %4865 = vmatmul.bf16.gmra.mxu3 %v4801_v48  ;;  %v5144_v62 = vshll.u32 %v5057_v51, 16  ;;  %v6014_v38 = vsel %vm10028_vm12, %v8090_v44, %v8091_v2  ;;  %v5168_v10 = vrot.slane %v5167_v46, 2  ;;  %5913 = vmatpush.bf16.msrb.mxu2 %v8673_v1  ;;  %v8672_v28 = vld [vmem:[%s11079_s5 + $0x1c8] sm:$0xff]  ;;  %v6018_v47 = vsel %vm10028_vm12, %v8092_v54, %v8093_v61  ;;  %v8681_v44 = vld [vmem:[%s11079_s5 + $0x210] sm:$0xff] }
 0x486   : > { %4913 = vst [vmem:[#allocation1 + $0x20] ss:$4 sm:$0xff] %v4879_v37  ;;  %6138 = vmatpush.bf16.msrb.mxu3 %v8683_v53  ;;  %v8364_v9 = vld [vmem:[%s11081_s7 + $0x1a0] sm:$0xf]  ;;  %v5157_v5 = vshll.u32 %v5063_v4, 16  ;;  %v6022_v56 = vsel %vm10028_vm12, %v8094_v19, %v8095_v33  ;;  %v5142_v21 = vrot.slane %v5141_v42, 2  ;;  %v5134_v15 = vsel %vm9856_vm7, %v5129_v58, %v5133_v32 }
 0x487   : > { %4916 = vst [vmem:[#allocation1 + $0x21] ss:$4 sm:$0xff] %v4880_v41  ;;  %v8740_v8 = vld [vmem:[%s11081_s7 + $0x1a4] sm:$0xf0]  ;;  %v5172_v16 = vrot.slane %v5170_v50, 7  ;;  %v5146_v2 = vrot.slane %v5144_v62, 7  ;;  %v5343_v53 = vsel %vm4276_vm14, %v10439_v30, %v5309_v31  ;;  %v5345_v17 = vsel %vm4280_vm15, %v10439_v30, %v5309_v31 }
 0x488   : > { %4922 = vst [vmem:[#allocation1 + $0x23] ss:$4 sm:$0xff] %v4882_v59  ;;  %v10473_v12 = vld.sshfl [vmem:[#allocation1] sm:$0xff pattern:$0x73625140]  ;;  %v8365_v25 = vor.u32 %v8740_v8, %v8364_v9  ;;  %v5155_v51 = vrot.slane %v5154_v36, 2 }
 0x489   : > { %6061 = vst [vmem:[#allocation1] ss:$4 sm:$0xff] %v6014_v38  ;;  %v5294_v39 = vld [vmem:[#allocation3 + $0x20] sm:$0x6]  ;;  %v5295_v60 = vld [vmem:[#allocation3 + $0x24] sm:$0x6]  ;;  %v5173_v23 = vsel %vm9856_vm7, %v5168_v10, %v5172_v16  ;;  %5914 = vmatpush.bf16.msrb.mxu2 %v8672_v28  ;;  %v5147_v45 = vsel %vm9856_vm7, %v5142_v21, %v5146_v2 }
 0x48a   : > { %5274 = vmatmul.bf16.vlgmr.msra.gmra.mxu2 %v10174_v18  ;;  %v6026_v18 = vsel %vm10028_vm12, %v8096_v55, %v8097_v11  ;;  %6139 = vmatpush.bf16.msrb.mxu3 %v8682_v13  ;;  %6064 = vst [vmem:[#allocation1 + $0x1] ss:$4 sm:$0xff] %v6018_v47  ;;  %v5296_v54 = vld [vmem:[#allocation3 + $0x28] sm:$0x6]  ;;  %v8671_v37 = vld [vmem:[%s11079_s5 + $0x1c0] sm:$0xff]  ;;  %v5310_v52 = vrot.slane %v5294_v39, 2 }
 0x48b   : > { %6067 = vst [vmem:[#allocation1 + $0x2] ss:$4 sm:$0xff] %v6022_v56  ;;  %6664 = vmatpush.bf16.msrb.mxu0 %v8365_v25  ;;  %v5159_v7 = vrot.slane %v5157_v5, 7  ;;  %v8680_v29 = vld [vmem:[%s11079_s5 + $0x208] sm:$0xff]  ;;  %v5311_v41 = vrot.slane %v5295_v60, 2  ;;  %v5312_v63 = vrot.slane %v5296_v54, 2 }
 0x48c   : > { %6070 = vst [vmem:[#allocation1 + $0x3] ss:$4 sm:$0xff] %v6026_v18  ;;  %v5350_v3 = vsel %vm4276_vm14, %v5294_v39, %v5310_v52  ;;  %v5352_v6 = vsel %vm4280_vm15, %v5294_v39, %v5310_v52  ;;  %v8679_v22 = vld [vmem:[%s11079_s5 + $0x200] sm:$0xff]  ;;  %v5644_v0 = vld [vmem:[#allocation3 + $0x20] sm:$0x7]  ;;  %v7938_v14 = vrot.slane %v5343_v53, 9 }
 0x48d   : > { %v5160_v48 = vsel %vm9856_vm7, %v5155_v51, %v5159_v7  ;;  %5915 = vmatpush.bf16.msrb.mxu2 %v8671_v37  ;;  %v5357_v57 = vsel %vm4276_vm14, %v5295_v60, %v5311_v41  ;;  %v5359_v40 = vsel %vm4280_vm15, %v5295_v60, %v5311_v41  ;;  %v7939_v30 = vrot.slane %v5345_v17, 9  ;;  %v5645_v59 = vld [vmem:[#allocation3 + $0x24] sm:$0x7]  ;;  %v5647_v1 = vld [vmem:[#allocation3 + $0x2c] sm:$0x7] }
 0x48e   : > { %6140 = vmatpush.bf16.msrb.mxu3 %v8681_v44  ;;  %v5364_v34 = vsel %vm4276_vm14, %v5296_v54, %v5312_v63  ;;  %v5366_v20 = vsel %vm4280_vm15, %v5296_v54, %v5312_v63  ;;  %v7940_v49 = vrot.slane %v5350_v3, 9  ;;  %v7941_v46 = vrot.slane %v5352_v6, 9  ;;  %v5646_v11 = vld [vmem:[#allocation3 + $0x28] sm:$0x7]  ;;  %v5521_v25 = vld [vmem:[#allocation3 + $0x20] sm:$0x3] }
 0x48f   : > { %v4924_v43 = vld.sshfl [vmem:[#allocation1 + $0x20] sm:$0xff pattern:$0x73625140]  ;;  %v7942_v61 = vrot.slane %v5357_v57, 9  ;;  %v7943_v55 = vrot.slane %v5359_v40, 9  ;;  %v5660_v4 = vrot.slane %v5644_v0, 2  ;;  %v5388_v32 = vsel %vm10028_vm12, %v7938_v14, %v7939_v30 }
 0x490   : > { %5213 = vst [vmem:[#allocation1 + $0x23] ss:$4 sm:$0xff] %v5173_v23  ;;  %4988 = vmatmul.bf16.gmra.mxu1 %v4924_v43  ;;  %v7944_v13 = vrot.slane %v5364_v34, 9  ;;  %v7945_v19 = vrot.slane %v5366_v20, 9  ;;  %v5661_v33 = vrot.slane %v5645_v59, 2  ;;  %v5663_v31 = vrot.slane %v5647_v1, 2 }
 0x491   : > { %5204 = vst [vmem:[#allocation1 + $0x20] ss:$4 sm:$0xff] %v5134_v15  ;;  %v5392_v42 = vsel %vm10028_vm12, %v7940_v49, %v7941_v46  ;;  %v5662_v50 = vrot.slane %v5646_v11, 2  ;;  %v5396_v58 = vsel %vm10028_vm12, %v7942_v61, %v7943_v55  ;;  %v5690_v62 = vsel %vm4276_vm14, %v5644_v0, %v5660_v4  ;;  %v5522_v60 = vld [vmem:[#allocation3 + $0x24] sm:$0x3] }
 0x492   : > { %5207 = vst [vmem:[#allocation1 + $0x21] ss:$4 sm:$0xff] %v5147_v45  ;;  %6141 = vmatpush.bf16.msrb.mxu3 %v8680_v29  ;;  %v5400_v36 = vsel %vm10028_vm12, %v7944_v13, %v7945_v19  ;;  %v5696_v38 = vsel %vm4276_vm14, %v5645_v59, %v5661_v33  ;;  %v5708_v10 = vsel %vm4276_vm14, %v5647_v1, %v5663_v31  ;;  %v5764_v47 = vshrl.u32 %v5690_v62, 16  ;;  %v5524_v45 = vld [vmem:[#allocation3 + $0x2c] sm:$0x3] }
 0x493   : > { %5210 = vst [vmem:[#allocation1 + $0x22] ss:$4 sm:$0xff] %v5160_v48  ;;  %v5702_v28 = vsel %vm4276_vm14, %v5646_v11, %v5662_v50  ;;  %v5691_v18 = vsel %vm4280_vm15, %v5644_v0, %v5660_v4  ;;  %v5767_v9 = vshll.u32 %v5690_v62, 16  ;;  %v5777_v5 = vshrl.u32 %v5696_v38, 16  ;;  %v5523_v63 = vld [vmem:[#allocation3 + $0x28] sm:$0x3] }
 0x494   : > { %v5780_v44 = vshll.u32 %v5696_v38, 16  ;;  %v5803_v56 = vshrl.u32 %v5708_v10, 16  ;;  %v5806_v8 = vshll.u32 %v5708_v10, 16  ;;  %v5709_v21 = vsel %vm4280_vm15, %v5647_v1, %v5663_v31  ;;  %v5935_v46 = vld [vmem:[#allocation3 + $0x20] sm:$0x6] }
 0x495   : > { %5501 = vmatmul.bf16.vlgmr.msra.gmra.mxu3 %v10252_v26  ;;  %v5790_v39 = vshrl.u32 %v5702_v28, 16  ;;  %v5793_v16 = vshll.u32 %v5702_v28, 16  ;;  %v5693_v2 = vrot.slane %v5691_v18, 2  ;;  %v5766_v51 = vrot.slane %v5764_v47, 6  ;;  %v5936_v55 = vld [vmem:[#allocation3 + $0x24] sm:$0x6] }
 0x496   : > { %6142 = vmatpush.bf16.msrb.mxu3 %v8679_v22  ;;  %v5697_v43 = vsel %vm4280_vm15, %v5645_v59, %v5661_v33  ;;  %v5769_v23 = vrot.slane %v5767_v9, 7  ;;  %v5779_v54 = vrot.slane %v5777_v5, 6  ;;  %v5703_v15 = vsel %vm4280_vm15, %v5646_v11, %v5662_v50  ;;  %v5938_v11 = vld [vmem:[#allocation3 + $0x2c] sm:$0x6]  ;;  %v5937_v13 = vld [vmem:[#allocation3 + $0x28] sm:$0x6] }
 0x497   : > { %v5711_v52 = vrot.slane %v5709_v21, 2  ;;  %v5805_v7 = vrot.slane %v5803_v56, 6  ;;  %v5808_v29 = vrot.slane %v5806_v8, 7  ;;  %v5792_v41 = vrot.slane %v5790_v39, 6 }
 0x498   : > { %v5795_v48 = vrot.slane %v5793_v16, 7  ;;  %v5699_v53 = vrot.slane %v5697_v43, 2  ;;  %v5705_v17 = vrot.slane %v5703_v15, 2  ;;  %v5770_v3 = vor.u32 %v5769_v23, %v5766_v51  ;;  %v6083_v10 = vld.sshfl [vmem:[#allocation1] sm:$0xff pattern:$0x73625140] }
 0x499   : > { %v5809_v22 = vor.u32 %v5808_v29, %v5805_v7  ;;  %v5812_v57 = vshll.u32 %v5711_v52, 16  ;;  %v5773_v40 = vshll.u32 %v5693_v2, 16  ;;  %v5954_v50 = vrot.slane %v5938_v11, 2  ;;  %v8738_v15 = vld [vmem:[%s11081_s7 + $0x194] sm:$0xf0] }
 0x49a   : > { %v5215_v26 = vld.sshfl [vmem:[#allocation1 + $0x20] sm:$0xff pattern:$0x73625140]  ;;  %v5796_v0 = vor.u32 %v5795_v48, %v5792_v41  ;;  %v5786_v14 = vshll.u32 %v5699_v53, 16  ;;  %v5771_v30 = vrot.slane %v5770_v3, 2  ;;  %v5799_v34 = vshll.u32 %v5705_v17, 16 }
 0x49b   : > { %5279 = vmatmul.bf16.gmra.mxu2 %v5215_v26  ;;  %5431 = vst [vmem:[#allocation1 + $0x20] ss:$4 sm:$0xff] %v5388_v32  ;;  %v5810_v59 = vrot.slane %v5809_v22, 2  ;;  %v5814_v49 = vrot.slane %v5812_v57, 7  ;;  %v5775_v1 = vrot.slane %v5773_v40, 7  ;;  %v5951_v32 = vrot.slane %v5935_v46, 2 }
 0x49c   : > { %5434 = vst [vmem:[#allocation1 + $0x21] ss:$4 sm:$0xff] %v5392_v42  ;;  %v5797_v61 = vrot.slane %v5796_v0, 2  ;;  %v5788_v4 = vrot.slane %v5786_v14, 7  ;;  %v5801_v26 = vrot.slane %v5799_v34, 7  ;;  %v5952_v42 = vrot.slane %v5936_v55, 2 }
 0x49d   : > { %5437 = vst [vmem:[#allocation1 + $0x22] ss:$4 sm:$0xff] %v5396_v58  ;;  %v5776_v33 = vsel %vm9856_vm7, %v5771_v30, %v5775_v1  ;;  %v5815_v31 = vsel %vm9856_vm7, %v5810_v59, %v5814_v49  ;;  %v5953_v62 = vrot.slane %v5937_v13, 2  ;;  %v5987_v38 = vsel %vm4280_vm15, %v5935_v46, %v5951_v32  ;;  %v8348_v14 = vld [vmem:[%s11081_s7 + $0x180] sm:$0xf] }
 0x49e   : > { %5440 = vst [vmem:[#allocation1 + $0x23] ss:$4 sm:$0xff] %v5400_v36  ;;  %v5802_v58 = vsel %vm9856_vm7, %v5797_v61, %v5801_v26  ;;  %v5985_v36 = vsel %vm4276_vm14, %v5935_v46, %v5951_v32  ;;  %v5992_v28 = vsel %vm4276_vm14, %v5936_v55, %v5952_v42  ;;  %v5994_v47 = vsel %vm4280_vm15, %v5936_v55, %v5952_v42  ;;  %v8736_v30 = vld [vmem:[%s11081_s7 + $0x184] sm:$0xf0]  ;;  %v8276_v34 = vld [vmem:[%s11081_s7 + $0xf0] sm:$0xf] }
 0x49f   : > { %v6006_v18 = vsel %vm4276_vm14, %v5938_v11, %v5954_v50  ;;  %v6008_v9 = vsel %vm4280_vm15, %v5938_v11, %v5954_v50  ;;  %v5999_v27 = vsel %vm4276_vm14, %v5937_v13, %v5953_v62  ;;  %v6001_v5 = vsel %vm4280_vm15, %v5937_v13, %v5953_v62  ;;  %v8718_v59 = vld [vmem:[%s11081_s7 + $0xf4] sm:$0xf0]  ;;  %v8212_v49 = vld [vmem:[%s11081_s7 + $0x70] sm:$0xf]  ;;  %v8268_v26 = vld [vmem:[%s11081_s7 + $0xe0] sm:$0xf] }
 0x4a0   : > { %5625 = vmatmul.bf16.vlgmr.msrb.gmra.mxu1 %v10400_v24  ;;  %v5782_v24 = vrot.slane %v5780_v44, 7  ;;  %v8098_v44 = vrot.slane %v5985_v36, 9  ;;  %v8099_v56 = vrot.slane %v5987_v38, 9  ;;  %v8100_v8 = vrot.slane %v5992_v28, 9  ;;  %v8702_v46 = vld [vmem:[%s11081_s7 + $0x74] sm:$0xf0] }
 0x4a1   : > { %v8101_v21 = vrot.slane %v5994_v47, 9  ;;  %v8104_v39 = vrot.slane %v6006_v18, 9  ;;  %v8105_v16 = vrot.slane %v6008_v9, 9  ;;  %v8103_v2 = vrot.slane %v6001_v5, 9  ;;  %v8716_v32 = vld [vmem:[%s11081_s7 + $0xe4] sm:$0xf0] }
 0x4a2   : > { %v5783_v6 = vor.u32 %v5782_v24, %v5779_v54  ;;  %v8277_v1 = vor.u32 %v8718_v59, %v8276_v34  ;;  %v8213_v61 = vor.u32 %v8702_v46, %v8212_v49  ;;  %v8700_v42 = vld [vmem:[%s11081_s7 + $0x64] sm:$0xf0]  ;;  %v8260_v50 = vld [vmem:[%s11081_s7 + $0xd0] sm:$0xf]  ;;  %v8734_v18 = vld [vmem:[%s11081_s7 + $0x174] sm:$0xf0] }
 0x4a3   : > { %v6034_v43 = vsel %vm10028_vm12, %v8100_v8, %v8101_v21  ;;  %v6042_v23 = vsel %vm10028_vm12, %v8104_v39, %v8105_v16  ;;  %v8196_v38 = vld [vmem:[%s11081_s7 + $0x50] sm:$0xf]  ;;  %v8712_v8 = vld [vmem:[%s11081_s7 + $0xc4] sm:$0xf0]  ;;  %v8188_v21 = vld [vmem:[%s11081_s7 + $0x40] sm:$0xf] }
 0x4a4   : > { %v5784_v20 = vrot.slane %v5783_v6, 2  ;;  %6633 = vmatpush.bf16.msra.mxu2 %v8277_v1  ;;  %6620 = vmatpush.bf16.msra.mxu1 %v8213_v61  ;;  %v8340_v28 = vld [vmem:[%s11081_s7 + $0x170] sm:$0xf]  ;;  %v8696_v16 = vld [vmem:[%s11081_s7 + $0x44] sm:$0xf0]  ;;  %vm6212_vm13 = vcmask 1041409  }
 0x4a5   : > { %v5442_v37 = vld.sshfl [vmem:[#allocation1 + $0x20] sm:$0xff pattern:$0x73625140]  ;;  %v8708_v1 = vld [vmem:[%s11081_s7 + $0xa4] sm:$0xf0] }
 0x4a6   : > { %5506 = vmatmul.bf16.gmra.mxu3 %v5442_v37  ;;  %5555 = vst [vmem:[#allocation1 + $0x20] ss:$4 sm:$0xff] %v5521_v25  ;;  %v8102_v25 = vrot.slane %v5999_v27, 9  ;;  %v8356_v37 = vld [vmem:[%s11081_s7 + $0x190] sm:$0xf]  ;;  %v8341_v27 = vor.u32 %v8734_v18, %v8340_v28 }
 0x4a7   : > { %5558 = vst [vmem:[#allocation1 + $0x21] ss:$4 sm:$0xff] %v5522_v60  ;;  %v6030_v60 = vsel %vm10028_vm12, %v8098_v44, %v8099_v56  ;;  %v8357_v52 = vor.u32 %v8738_v15, %v8356_v37  ;;  %v8252_v56 = vld [vmem:[%s11081_s7 + $0xc0] sm:$0xf]  ;;  %v8180_v37 = vld [vmem:[%s11081_s7 + $0x30] sm:$0xf] }
 0x4a8   : > { %5561 = vst [vmem:[#allocation1 + $0x22] ss:$4 sm:$0xff] %v5523_v63  ;;  %v6038_v54 = vsel %vm10028_vm12, %v8102_v25, %v8103_v2  ;;  %6646 = vmatpush.bf16.msra.mxu3 %v8341_v27  ;;  %v8253_v39 = vor.u32 %v8712_v8, %v8252_v56  ;;  %v8332_v25 = vld [vmem:[%s11081_s7 + $0x160] sm:$0xf]  ;;  %v8732_v2 = vld [vmem:[%s11081_s7 + $0x164] sm:$0xf0] }
 0x4a9   : > { %5564 = vst [vmem:[#allocation1 + $0x23] ss:$4 sm:$0xff] %v5524_v45  ;;  %6665 = vmatpush.bf16.msrb.mxu0 %v8357_v52  ;;  %v8694_v52 = vld [vmem:[%s11081_s7 + $0x34] sm:$0xf0]  ;;  %v8172_v61 = vld [vmem:[%s11081_s7 + $0x20] sm:$0xf] }
 0x4aa   : > { %v8308_v18 = vld [vmem:[%s11081_s7 + $0x130] sm:$0xf] }
 0x4ab   : > { %5916 = vmatmul.bf16.vlgmr.msrb.gmra.mxu2 %v10473_v12  ;;  %v5789_v12 = vsel %vm9856_vm7, %v5784_v20, %v5788_v4  ;;  %v8349_v20 = vor.u32 %v8736_v30, %v8348_v14  ;;  %v8181_v30 = vor.u32 %v8694_v52, %v8180_v37  ;;  %v8300_v37 = vld [vmem:[%s11081_s7 + $0x120] sm:$0xf] }
 0x4ad   : > { %6666 = vmatpush.bf16.msrb.mxu0 %v8349_v20 }
 0x4af   : > { %v4538_v7 = vpop.f32.mrf.mxu1 }
 0x4b0   : > { %v5566_v19 = vld.sshfl [vmem:[#allocation1 + $0x20] sm:$0xff pattern:$0x73625140] }
 0x4b1   : > { %5630 = vmatmul.bf16.gmra.mxu1 %v5566_v19  ;;  %5846 = vst [vmem:[#allocation1 + $0x20] ss:$4 sm:$0xff] %v5776_v33 }
 0x4b2   : > { %5849 = vst [vmem:[#allocation1 + $0x21] ss:$4 sm:$0xff] %v5789_v12  ;;  %v8204_v12 = vld [vmem:[%s11081_s7 + $0x60] sm:$0xf] }
 0x4b3   : > { %5852 = vst [vmem:[#allocation1 + $0x22] ss:$4 sm:$0xff] %v5802_v58  ;;  %v8714_v58 = vld [vmem:[%s11081_s7 + $0xd4] sm:$0xf0]  ;;  %v8205_v36 = vor.u32 %v8700_v42, %v8204_v12  ;;  %v8728_v12 = vld [vmem:[%s11081_s7 + $0x144] sm:$0xf0] }
 0x4b4   : > { %5855 = vst [vmem:[#allocation1 + $0x23] ss:$4 sm:$0xff] %v5815_v31  ;;  %v8269_v31 = vor.u32 %v8716_v32, %v8268_v26  ;;  %v8261_v47 = vor.u32 %v8714_v58, %v8260_v50  ;;  %v8316_v32 = vld [vmem:[%s11081_s7 + $0x140] sm:$0xf]  ;;  %v8228_v42 = vld [vmem:[%s11081_s7 + $0x90] sm:$0xf] }
 0x4b5   : > { %6621 = vmatpush.bf16.msra.mxu1 %v8205_v36  ;;  %v8706_v50 = vld [vmem:[%s11081_s7 + $0x94] sm:$0xf0]  ;;  %v8164_v58 = vld [vmem:[%s11081_s7 + $0x10] sm:$0xf] }
 0x4b6   : > { %6143 = vmatmul.bf16.vlgmr.msrb.gmra.mxu3 %v6083_v10  ;;  %v8698_v10 = vld [vmem:[%s11081_s7 + $0x54] sm:$0xf0]  ;;  %6634 = vmatpush.bf16.msra.mxu2 %v8269_v31  ;;  %v8317_v31 = vor.u32 %v8728_v12, %v8316_v32  ;;  %v8229_v28 = vor.u32 %v8706_v50, %v8228_v42  ;;  %v8262_v42 = vld [vmem:[%s11081_s7 + $0xd8] sm:$0xf0]  ;;  %v8749_v50 = vld [vmem:[%s11081_s7 + $0x1f4] sm:$0xf] }
 0x4b7   : > { %v10573_v29 = vpop.f32.mrf.mxu1  ;;  %v8197_v9 = vor.u32 %v8698_v10, %v8196_v38 }
 0x4b9   : > { %6622 = vmatpush.bf16.msra.mxu1 %v8197_v9  ;;  %v8726_v9 = vld [vmem:[%s11081_s7 + $0x134] sm:$0xf0] }
 0x4ba   : > { %6635 = vmatpush.bf16.msra.mxu2 %v8261_v47  ;;  %v8690_v47 = vld [vmem:[%s11081_s7 + $0x14] sm:$0xf0] }
 0x4bb   : > { %v5857_v51 = vld.sshfl [vmem:[#allocation1 + $0x20] sm:$0xff pattern:$0x73625140] }
 0x4bc   : > { %5921 = vmatmul.bf16.gmra.mxu2 %v5857_v51  ;;  %6073 = vst [vmem:[#allocation1 + $0x20] ss:$4 sm:$0xff] %v6030_v60 }
 0x4bd   : > { %6076 = vst [vmem:[#allocation1 + $0x21] ss:$4 sm:$0xff] %v6034_v43  ;;  %v8189_v43 = vor.u32 %v8696_v16, %v8188_v21 }
 0x4be   : > { %6079 = vst [vmem:[#allocation1 + $0x22] ss:$4 sm:$0xff] %v6038_v54  ;;  %v8244_v54 = vld [vmem:[%s11081_s7 + $0xb0] sm:$0xf]  ;;  %6636 = vmatpush.bf16.msra.mxu2 %v8253_v39 }
 0x4bf   : > { %6082 = vst [vmem:[#allocation1 + $0x23] ss:$4 sm:$0xff] %v6042_v23  ;;  %v8333_v23 = vor.u32 %v8732_v2, %v8332_v25  ;;  %6623 = vmatpush.bf16.msra.mxu1 %v8189_v43  ;;  %v8220_v2 = vld [vmem:[%s11081_s7 + $0x80] sm:$0xf] }
 0x4c0   : > { %v4632_v35 = vpop.f32.mrf.mxu2 }
 0x4c1   : > { %v4633_v44 = vadd.f32 %v4632_v35, %v4538_v7  ;;  %v8324_v7 = vld [vmem:[%s11081_s7 + $0x150] sm:$0xf]  ;;  %v8730_v35 = vld [vmem:[%s11081_s7 + $0x154] sm:$0xf0]  ;;  %6647 = vmatpush.bf16.msra.mxu3 %v8333_v23 }
 0x4c2   : > { %v8325_v34 = vor.u32 %v8730_v35, %v8324_v7 }
 0x4c3   : > { %6624 = vmatpush.bf16.msra.mxu1 %v8181_v30 }
 0x4c5   : > { %6648 = vmatpush.bf16.msra.mxu3 %v8325_v34 }
 0x4c6   : > { %v6084_v24 = vld.sshfl [vmem:[#allocation1 + $0x20] sm:$0xff pattern:$0x73625140] }
 0x4c7   : > { %6148 = vmatmul.bf16.gmra.mxu3 %v6084_v24  ;;  %v8710_v24 = vld [vmem:[%s11081_s7 + $0xb4] sm:$0xf0] }
 0x4c8   : > { %v10577_v41 = vpop.f32.mrf.mxu2  ;;  %v8245_v15 = vor.u32 %v8710_v24, %v8244_v54  ;;  %v8688_v24 = vld [vmem:[%s11081_s7 + $0x4] sm:$0xf0] }
 0x4c9   : > { %v4635_v49 = vadd.f32 %v10577_v41, %v10573_v29  ;;  %v10714_v29 = vld [vmem:[%s11080_s6] ss:$0 sm:$0xff]  ;;  %6649 = vmatpush.bf16.msra.mxu3 %v8317_v31  ;;  %v8713_v31 = vld [vmem:[%s11081_s7 + $0xd4] sm:$0xf] }
 0x4ca   : > { %6637 = vmatpush.bf16.msra.mxu2 %v8245_v15  ;;  %v8724_v15 = vld [vmem:[%s11081_s7 + $0x124] sm:$0xf0] }
 0x4cc   : > { %v4861_v48 = vpop.f32.mrf.mxu3 }
 0x4cd   : > { %v4871_v51 = vadd.f32 %v4861_v48, %v4633_v44  ;;  %v8309_v44 = vor.u32 %v8726_v9, %v8308_v18  ;;  %v8198_v9 = vld [vmem:[%s11081_s7 + $0x58] sm:$0xf0] }
 0x4cf   : > { %6650 = vmatpush.bf16.msra.mxu3 %v8309_v44  ;;  %v8733_v44 = vld [vmem:[%s11081_s7 + $0x174] sm:$0xf] }
 0x4d4   : > { %v10583_v17 = vpop.f32.mrf.mxu3 }
 0x4ec   : > { %v10575_v45 = vpop.f32.mrf.mxu1 }
 0x4f4   : > { %v10579_v63 = vpop.f32.mrf.mxu1 }
 0x4fc   : > { %v10587_v6 = vpop.f32.mrf.mxu1 }
 0x4fd   : > { %v10581_v53 = vpop.f32.mrf.mxu2  ;;  %v4994_v48 = vadd.f32 %v10587_v6, %v4871_v51  ;;  %v8236_v6 = vld [vmem:[%s11081_s7 + $0xa0] sm:$0xf] }
 0x4fe   : > { %v8237_v41 = vor.u32 %v8708_v1, %v8236_v6  ;;  %v4638_v25 = vadd.f32 %v10581_v53, %v10575_v45  ;;  %v8278_v45 = vld [vmem:[%s11081_s7 + $0xf8] sm:$0xf0]  ;;  %v8156_v53 = vld [vmem:[%s11081_s7] sm:$0xf]  ;;  %v8292_v6 = vld [vmem:[%s11081_s7 + $0x110] sm:$0xf] }
 0x4ff   : > { %v8157_v35 = vor.u32 %v8688_v24, %v8156_v53  ;;  %v8190_v53 = vld [vmem:[%s11081_s7 + $0x48] sm:$0xf0] }
 0x500   : > { %6638 = vmatpush.bf16.msra.mxu2 %v8237_v41  ;;  %v8699_v41 = vld [vmem:[%s11081_s7 + $0x64] sm:$0xf] }
 0x504   : > { %v10593_v40 = vpop.f32.mrf.mxu1  ;;  %6639 = vmatpush.bf16.msra.mxu2 %v8229_v28 }
 0x505   : > { %v10585_v3 = vpop.f32.mrf.mxu2 }
 0x508   : > { %v10589_v22 = vpop.f32.mrf.mxu3 }
 0x509   : > { %v4873_v23 = vadd.f32 %v10589_v22, %v4638_v25  ;;  %v8701_v22 = vld [vmem:[%s11081_s7 + $0x74] sm:$0xf]  ;;  %v8747_v25 = vld [vmem:[%s11081_s7 + $0x1e4] sm:$0xf] }
 0x50d   : > { %v10591_v57 = vpop.f32.mrf.mxu2  ;;  %v10617_v4 = vpop.f32.mrf.mxu1 }
 0x50e   : > { %v5285_v59 = vadd.f32 %v10591_v57, %v4994_v48  ;;  %v4872_v57 = vadd.f32 %v10583_v17, %v4635_v49  ;;  %v8301_v48 = vor.u32 %v8724_v15, %v8300_v37  ;;  %v4996_v30 = vadd.f32 %v10617_v4, %v4873_v23  ;;  %v8715_v49 = vld [vmem:[%s11081_s7 + $0xe4] sm:$0xf]  ;;  %v8334_v23 = vld [vmem:[%s11081_s7 + $0x168] sm:$0xf0]  ;;  %v8709_v15 = vld [vmem:[%s11081_s7 + $0xb4] sm:$0xf] }
 0x510   : > { %v10595_v0 = vpop.f32.mrf.mxu3  ;;  %v4995_v36 = vadd.f32 %v10593_v40, %v4872_v57  ;;  %v8165_v40 = vor.u32 %v8690_v47, %v8164_v58  ;;  %6651 = vmatpush.bf16.msra.mxu3 %v8301_v48  ;;  %v4640_v58 = vadd.f32 %v10585_v3, %v10579_v63  ;;  %v8265_v47 = vor.u32 %v8713_v31, %v8262_v42  ;;  %v8720_v63 = vld [vmem:[%s11081_s7 + $0x104] sm:$0xf0]  ;;  %v8697_v3 = vld [vmem:[%s11081_s7 + $0x54] sm:$0xf]  ;;  %v8691_v42 = vld [vmem:[%s11081_s7 + $0x24] sm:$0xf] }
 0x515   : > { %v10615_v55 = vpop.f32.mrf.mxu2  ;;  %v10623_v33 = vpop.f32.mrf.mxu1 }
 0x516   : > { %v5286_v56 = vadd.f32 %v10615_v55, %v4995_v36  ;;  %v8704_v55 = vld [vmem:[%s11081_s7 + $0x84] sm:$0xf0] }
 0x517   : > { %v8221_v43 = vor.u32 %v8704_v55, %v8220_v2 }
 0x518   : > { %v5502_v11 = vpop.f32.mrf.mxu3 }
 0x519   : > { %v5512_v46 = vadd.f32 %v5502_v11, %v5285_v59  ;;  %v8692_v11 = vld [vmem:[%s11081_s7 + $0x24] sm:$0xf0]  ;;  %6640 = vmatpush.bf16.msra.mxu2 %v8221_v43 }
 0x51a   : > { %v8173_v17 = vor.u32 %v8692_v11, %v8172_v61  ;;  %v8206_v11 = vld [vmem:[%s11081_s7 + $0x68] sm:$0xf0] }
 0x51c   : > { %6625 = vmatpush.bf16.msra.mxu1 %v8173_v17  ;;  %v8209_v17 = vor.u32 %v8699_v41, %v8206_v11 }
 0x51d   : > { %v5626_v60 = vpop.f32.mrf.mxu1 }
 0x51e   : > { %v10619_v13 = vpop.f32.mrf.mxu2  ;;  %v5636_v26 = vadd.f32 %v5626_v60, %v5512_v46  ;;  %v8270_v46 = vld [vmem:[%s11081_s7 + $0xe8] sm:$0xf0] }
 0x51f   : > { %v8273_v4 = vor.u32 %v8715_v49, %v8270_v46  ;;  %v5287_v32 = vadd.f32 %v10619_v13, %v4996_v30  ;;  %v8693_v30 = vld [vmem:[%s11081_s7 + $0x34] sm:$0xf] }
 0x520   : > { %v10621_v19 = vpop.f32.mrf.mxu3  ;;  %6626 = vmatpush.bf16.msra.mxu1 %v8165_v40 }
 0x521   : > { %v5513_v39 = vadd.f32 %v10621_v19, %v5286_v56  ;;  %v8717_v19 = vld [vmem:[%s11081_s7 + $0xf4] sm:$0xf]  ;;  %v8342_v56 = vld [vmem:[%s11081_s7 + $0x178] sm:$0xf0] }
 0x522   : > { %v8281_v54 = vor.u32 %v8717_v19, %v8278_v45  ;;  %v8398_v19 = vld [vmem:[%s11081_s7 + $0x1e8] sm:$0xf0] }
 0x523   : > { %v8401_v45 = vor.u32 %v8747_v25, %v8398_v19  ;;  %v8222_v19 = vld [vmem:[%s11081_s7 + $0x88] sm:$0xf0] }
 0x524   : > { %6685 = vmatpush.bf16.msrb.mxu2 %v8281_v54  ;;  %6627 = vmatpush.bf16.msra.mxu1 %v8157_v35 }
 0x525   : > { %v5628_v38 = vpop.f32.mrf.mxu1 }
 0x526   : > { %v10643_v62 = vpop.f32.mrf.mxu2  ;;  %v5637_v51 = vadd.f32 %v5628_v38, %v5513_v39  ;;  %v8406_v38 = vld [vmem:[%s11081_s7 + $0x1f8] sm:$0xf0]  ;;  %v8345_v39 = vor.u32 %v8733_v44, %v8342_v56 }
 0x527   : > { %v8409_v18 = vor.u32 %v8749_v50, %v8406_v38  ;;  %v8174_v50 = vld [vmem:[%s11081_s7 + $0x28] sm:$0xf0] }
 0x528   : > { %6686 = vmatpush.bf16.msrb.mxu2 %v8273_v4  ;;  %v8238_v4 = vld [vmem:[%s11081_s7 + $0xa8] sm:$0xf0] }
 0x529   : > { %v10657_v5 = vpop.f32.mrf.mxu3  ;;  %6711 = vmatpush.bf16.msra.mxu0 %v8409_v18  ;;  %v8177_v18 = vor.u32 %v8691_v42, %v8174_v50  ;;  %v8758_v50 = vld [vmem:[%s11083_s9 + $0x38] sm:$0xff] }
 0x52a   : > { %v5514_v28 = vadd.f32 %v10657_v5, %v5287_v32 }
 0x52c   : > { %6687 = vmatpush.bf16.msrb.mxu2 %v8265_v47 }
 0x52d   : > { %6712 = vmatpush.bf16.msra.mxu0 %v8401_v45 }
 0x52e   : > { %v5917_v14 = vpop.f32.mrf.mxu2  ;;  %v5631_v1 = vpop.f32.mrf.mxu1 }
 0x52f   : > { %v5927_v10 = vadd.f32 %v5917_v14, %v5636_v26  ;;  %v8214_v14 = vld [vmem:[%s11081_s7 + $0x78] sm:$0xf0]  ;;  %v8722_v26 = vld [vmem:[%s11081_s7 + $0x114] sm:$0xf0] }
 0x530   : > { %v8217_v59 = vor.u32 %v8701_v22, %v8214_v14  ;;  %v8293_v12 = vor.u32 %v8722_v26, %v8292_v6  ;;  %v8390_v14 = vld [vmem:[%s11081_s7 + $0x1d8] sm:$0xf0] }
 0x531   : > { %v10696_v20 = vpop.f32.mrf.mxu3  ;;  %v8182_v6 = vld [vmem:[%s11081_s7 + $0x38] sm:$0xf0] }
 0x532   : > { %6672 = vmatpush.bf16.msrb.mxu1 %v8217_v59  ;;  %6652 = vmatpush.bf16.msra.mxu3 %v8293_v12  ;;  %v8185_v11 = vor.u32 %v8693_v30, %v8182_v6  ;;  %v8743_v12 = vld [vmem:[%s11081_s7 + $0x1c4] sm:$0xf]  ;;  %v8721_v30 = vld [vmem:[%s11081_s7 + $0x114] sm:$0xf] }
 0x536   : > { %v5919_v8 = vpop.f32.mrf.mxu2  ;;  %6673 = vmatpush.bf16.msrb.mxu1 %v8209_v17  ;;  %v5633_v22 = vpop.f32.mrf.mxu1  ;;  %v8382_v17 = vld [vmem:[%s11081_s7 + $0x1c8] sm:$0xf0] }
 0x537   : > { %v5928_v52 = vadd.f32 %v5919_v8, %v5637_v51  ;;  %v5638_v8 = vadd.f32 %v5631_v1, %v5514_v28  ;;  %v8695_v51 = vld [vmem:[%s11081_s7 + $0x44] sm:$0xf]  ;;  %v8729_v1 = vld [vmem:[%s11081_s7 + $0x154] sm:$0xf]  ;;  %v8385_v31 = vor.u32 %v8743_v12, %v8382_v17  ;;  %v8286_v17 = vld [vmem:[%s11081_s7 + $0x108] sm:$0xf0] }
 0x538   : > { %v8193_v48 = vor.u32 %v8695_v51, %v8190_v53  ;;  %v8705_v28 = vld [vmem:[%s11081_s7 + $0x94] sm:$0xf]  ;;  %v8739_v51 = vld [vmem:[%s11081_s7 + $0x1a4] sm:$0xf]  ;;  %v8366_v53 = vld [vmem:[%s11081_s7 + $0x1a8] sm:$0xf0] }
 0x539   : > { %v6144_v27 = vpop.f32.mrf.mxu3  ;;  %v8719_v12 = vld [vmem:[%s11081_s7 + $0x104] sm:$0xf] }
 0x53a   : > { %v6154_v21 = vadd.f32 %v6144_v27, %v5927_v10  ;;  %v8284_v10 = vld [vmem:[%s11081_s7 + $0x100] sm:$0xf]  ;;  %v4874_v27 = vadd.f32 %v10595_v0, %v4640_v58  ;;  %v8711_v0 = vld [vmem:[%s11081_s7 + $0xc4] sm:$0xf] }
 0x53b   : > { %v8285_v5 = vor.u32 %v8720_v63, %v8284_v10  ;;  %v8727_v58 = vld [vmem:[%s11081_s7 + $0x144] sm:$0xf]  ;;  %v8318_v10 = vld [vmem:[%s11081_s7 + $0x148] sm:$0xf0]  ;;  %v8230_v63 = vld [vmem:[%s11081_s7 + $0x98] sm:$0xf0] }
 0x53c   : > { %v6162_v16 = vadd.f32 %v10714_v29, %v6154_v21  ;;  %v8201_v21 = vor.u32 %v8697_v3, %v8198_v9  ;;  %v4997_v2 = vadd.f32 %v10623_v33, %v4874_v27  ;;  %v8731_v33 = vld [vmem:[%s11081_s7 + $0x164] sm:$0xf]  ;;  %v8741_v3 = vld [vmem:[%s11081_s7 + $0x1b4] sm:$0xf]  ;;  %v8374_v9 = vld [vmem:[%s11081_s7 + $0x1b8] sm:$0xf0]  ;;  %v8321_v56 = vor.u32 %v8727_v58, %v8318_v10 }
 0x53d   : > { %6653 = vmatpush.bf16.msra.mxu3 %v8285_v5  ;;  %v8233_v25 = vor.u32 %v8705_v28, %v8230_v63 }
 0x53e   : > { %v6166_v60 = vmax.f32 %v6162_v16, 0.0  ;;  %v8254_v16 = vld [vmem:[%s11081_s7 + $0xc8] sm:$0xf0]  ;;  %v5288_v54 = vadd.f32 %v10643_v62, %v4997_v2  ;;  %6674 = vmatpush.bf16.msrb.mxu1 %v8201_v21  ;;  %v8337_v62 = vor.u32 %v8731_v33, %v8334_v23  ;;  %v8689_v21 = vld [vmem:[%s11081_s7 + $0x14] sm:$0xf]  ;;  %v8369_v23 = vor.u32 %v8739_v51, %v8366_v53  ;;  %v8759_v53 = vld [vmem:[%s11083_s9 + $0x40] sm:$0xff] }
 0x53f   : > { %v5922_v13 = vpop.f32.mrf.mxu2  ;;  %v8257_v43 = vor.u32 %v8711_v0, %v8254_v16  ;;  %v8725_v0 = vld [vmem:[%s11081_s7 + $0x134] sm:$0xf]  ;;  %v8310_v2 = vld [vmem:[%s11081_s7 + $0x138] sm:$0xf0]  ;;  %v8687_v33 = vld [vmem:[%s11081_s7 + $0x4] sm:$0xf] }
 0x540   : > { %v6174_v7 = vrot.slane %v6166_v60, 4  ;;  %v8313_v45 = vor.u32 %v8725_v0, %v8310_v2  ;;  %v8764_v0 = vld [vmem:[%s11083_s9 + $0x68] sm:$0xff]  ;;  %v8762_v2 = vld [vmem:[%s11083_s9 + $0x58] sm:$0xff]  ;;  %v6294_v51 = vld [vmem:[%s11082_s8] sm:$0x3] }
 0x541   : > { %v6146_v34 = vpop.f32.mrf.mxu3  ;;  %6698 = vmatpush.bf16.msrb.mxu3 %v8345_v39  ;;  %6688 = vmatpush.bf16.msrb.mxu2 %v8257_v43  ;;  %v8166_v39 = vld [vmem:[%s11081_s7 + $0x18] sm:$0xf0] }
 0x542   : > { %v6182_v61 = vmax.f32 %v6166_v60, %v6174_v7  ;;  %v6155_v57 = vadd.f32 %v6146_v34, %v5928_v52  ;;  %v5929_v60 = vadd.f32 %v5922_v13, %v5638_v8  ;;  %v8246_v52 = vld [vmem:[%s11081_s7 + $0xb8] sm:$0xf0]  ;;  %v8745_v7 = vld [vmem:[%s11081_s7 + $0x1d4] sm:$0xf]  ;;  %v5515_v34 = vadd.f32 %v10696_v20, %v5288_v54  ;;  %v8707_v20 = vld [vmem:[%s11081_s7 + $0xa4] sm:$0xf]  ;;  %6675 = vmatpush.bf16.msrb.mxu1 %v8193_v48 }
 0x543   : > { %v8249_v49 = vor.u32 %v8709_v15, %v8246_v52  ;;  %v8393_v46 = vor.u32 %v8745_v7, %v8390_v14  ;;  %v8241_v38 = vor.u32 %v8707_v20, %v8238_v4  ;;  %v8377_v8 = vor.u32 %v8741_v3, %v8374_v9  ;;  %v8158_v54 = vld [vmem:[%s11081_s7 + $0x8] sm:$0xf0]  ;;  %v8737_v7 = vld [vmem:[%s11081_s7 + $0x194] sm:$0xf] }
 0x544   : > { %6186 = vst [vmem:[#allocation6] sm:$0xf] %v6182_v61  ;;  %v6163_v36 = vadd.f32 %v10714_v29, %v6155_v57  ;;  %v8326_v61 = vld [vmem:[%s11081_s7 + $0x158] sm:$0xf0]  ;;  %v5639_v26 = vadd.f32 %v5633_v22, %v5515_v34  ;;  %v8169_v43 = vor.u32 %v8689_v21, %v8166_v39  ;;  %v8161_v22 = vor.u32 %v8687_v33, %v8158_v54  ;;  %v8765_v21 = vld [vmem:[%s11083_s9 + $0x70] sm:$0xff]  ;;  %v8752_v39 = vld [vmem:[%s11083_s9 + $0x8] sm:$0xff] }
 0x545   : > { %6699 = vmatpush.bf16.msrb.mxu3 %v8337_v62  ;;  %v8329_v32 = vor.u32 %v8729_v1, %v8326_v61  ;;  %6713 = vmatpush.bf16.msra.mxu0 %v8393_v46  ;;  %v8294_v34 = vld [vmem:[%s11081_s7 + $0x118] sm:$0xf0]  ;;  %v8735_v1 = vld [vmem:[%s11081_s7 + $0x184] sm:$0xf]  ;;  %v8350_v61 = vld [vmem:[%s11081_s7 + $0x188] sm:$0xf0] }
 0x546   : > { %v6167_v40 = vmax.f32 %v6163_v36, 0.0  ;;  %6689 = vmatpush.bf16.msrb.mxu2 %v8249_v49  ;;  %6676 = vmatpush.bf16.msrb.mxu1 %v8185_v11 }
 0x547   : > { %v5924_v57 = vpop.f32.mrf.mxu2 }
 0x548   : > { %v6175_v55 = vrot.slane %v6167_v40, 4  ;;  %v5930_v13 = vadd.f32 %v5924_v57, %v5639_v26 }
 0x549   : > { %6700 = vmatpush.bf16.msrb.mxu3 %v8329_v32  ;;  %6714 = vmatpush.bf16.msra.mxu0 %v8385_v31  ;;  %v8353_v32 = vor.u32 %v8735_v1, %v8350_v61 }
 0x54a   : > { %v6183_v24 = vmax.f32 %v6167_v40, %v6175_v55  ;;  %v6149_v37 = vpop.f32.mrf.mxu3  ;;  %6690 = vmatpush.bf16.msrb.mxu2 %v8241_v38  ;;  %v8703_v55 = vld [vmem:[%s11081_s7 + $0x84] sm:$0xf]  ;;  %6677 = vmatpush.bf16.msrb.mxu1 %v8177_v18 }
 0x54b   : > { %v6156_v35 = vadd.f32 %v6149_v37, %v5929_v60  ;;  %v6190_v5 = vld [vmem:[#allocation6] ss:$2 sm:$0x3]  ;;  %v6198_v44 = vld [vmem:[#allocation6 + $0x1] ss:$2 sm:$0x3]  ;;  %v8225_v52 = vor.u32 %v8703_v55, %v8222_v19 }
 0x54c   : > { %6187 = vst [vmem:[#allocation6 + $0x4] sm:$0xf] %v6183_v24  ;;  %v8723_v24 = vld [vmem:[%s11081_s7 + $0x124] sm:$0xf]  ;;  %v8302_v37 = vld [vmem:[%s11081_s7 + $0x128] sm:$0xf0] }
 0x54d   : > { %v6164_v59 = vadd.f32 %v10714_v29, %v6156_v35  ;;  %6701 = vmatpush.bf16.msrb.mxu3 %v8321_v56  ;;  %6715 = vmatpush.bf16.msra.mxu0 %v8377_v8  ;;  %v8358_v35 = vld [vmem:[%s11081_s7 + $0x198] sm:$0xf0]  ;;  %v8305_v14 = vor.u32 %v8723_v24, %v8302_v37  ;;  %v8753_v8 = vld [vmem:[%s11083_s9 + $0x10] sm:$0xff] }
 0x54e   : > { %6691 = vmatpush.bf16.msrb.mxu2 %v8233_v25  ;;  %6678 = vmatpush.bf16.msrb.mxu1 %v8169_v43  ;;  %v8361_v46 = vor.u32 %v8737_v7, %v8358_v35  ;;  %v8766_v56 = vld [vmem:[%s11083_s9 + $0x78] sm:$0xff]  ;;  %v8763_v25 = vld [vmem:[%s11083_s9 + $0x60] sm:$0xff]  ;;  %v8761_v55 = vld [vmem:[%s11083_s9 + $0x50] sm:$0xff] }
 0x54f   : > { %v6168_v41 = vmax.f32 %v6164_v59, 0.0 }
 0x551   : > { %v6176_v36 = vrot.slane %v6168_v41, 4  ;;  %6702 = vmatpush.bf16.msrb.mxu3 %v8313_v45  ;;  %6716 = vmatpush.bf16.msra.mxu0 %v8369_v23  ;;  %v6296_v45 = vperm.slane %v6294_v51, 0 }
 0x552   : > { %v6151_v47 = vpop.f32.mrf.mxu3  ;;  %6692 = vmatpush.bf16.msrb.mxu2 %v8225_v52  ;;  %6679 = vmatpush.bf16.msrb.mxu1 %v8161_v22 }
 0x553   : > { %v6184_v27 = vmax.f32 %v6168_v41, %v6176_v36  ;;  %v6157_v40 = vadd.f32 %v6151_v47, %v5930_v13  ;;  %v6192_v57 = vld [vmem:[#allocation6 + $0x4] ss:$2 sm:$0x3]  ;;  %v6200_v20 = vld [vmem:[#allocation6 + $0x5] ss:$2 sm:$0x3]  ;;  %v8297_v41 = vor.u32 %v8721_v30, %v8294_v34  ;;  %v8289_v13 = vor.u32 %v8719_v12, %v8286_v17 }
 0x554   : > { %v6206_v42 = vmax.f32 %v6192_v57, %v6200_v20  ;;  %v8757_v47 = vld [vmem:[%s11083_s9 + $0x30] sm:$0xff]  ;;  %v6297_v34 = vperm.slane %v6294_v51, 1  ;;  %v8810_v12 = vld [vmem:[%s11084_s10] ss:$0 sm:$0xff] }
 0x555   : > { %6188 = vst [vmem:[#allocation6 + $0x8] sm:$0xf] %v6184_v27  ;;  %v6165_v16 = vadd.f32 %v10714_v29, %v6157_v40  ;;  %v6205_v29 = vmax.f32 %v6190_v5, %v6198_v44  ;;  %6703 = vmatpush.bf16.msrb.mxu3 %v8305_v14  ;;  %6717 = vmatpush.bf16.msra.mxu0 %v8361_v46  ;;  %v8756_v40 = vld [vmem:[%s11083_s9 + $0x28] sm:$0xff]  ;;  %v8755_v5 = vld [vmem:[%s11083_s9 + $0x20] sm:$0xff]  ;;  %v8754_v44 = vld [vmem:[%s11083_s9 + $0x18] sm:$0xff] }
 0x556   : > { %v6223_v28 = vrot.slane %v6206_v42, 1 }
 0x557   : > { %v6169_v60 = vmax.f32 %v6165_v16, 0.0  ;;  %v6215_v62 = vrot.slane %v6205_v29, 1  ;;  %v8751_v16 = vld [vmem:[%s11083_s9] sm:$0xff] }
 0x559   : > { %v6177_v15 = vrot.slane %v6169_v60, 4  ;;  %6704 = vmatpush.bf16.msrb.mxu3 %v8297_v41  ;;  %6718 = vmatpush.bf16.msra.mxu0 %v8353_v32 }
 0x55b   : > { %v6185_v48 = vmax.f32 %v6169_v60, %v6177_v15 }
 0x55c   : > { %v6194_v59 = vld [vmem:[#allocation6 + $0x8] ss:$2 sm:$0x3]  ;;  %v6202_v49 = vld [vmem:[#allocation6 + $0x9] ss:$2 sm:$0x3] }
 0x55d   : > { %6189 = vst [vmem:[#allocation6 + $0xc] sm:$0xf] %v6185_v48  ;;  %v6207_v6 = vmax.f32 %v6194_v59, %v6202_v49  ;;  %6705 = vmatpush.bf16.msrb.mxu3 %v8289_v13 }
 0x55f   : > { %v6216_v4 = vsel %vm6212_vm13, %v6207_v6, %v6215_v62  ;;  %v6211_v26 = vrot.slane %v6207_v6, 7 }
 0x560   : > { %v6227_v11 = vpack.c.bf16 %v6216_v4, %v6216_v4 }
 0x561   : > { %v6213_v31 = vsel %vm6212_vm13, %v6211_v26, %v6205_v29  ;;  %v8760_v29 = vld [vmem:[%s11083_s9 + $0x48] sm:$0xff] }
 0x562   : > { %6641 = vmatmul.bf16.vlgmr.msra.gmra.mxu2 %v6227_v11  ;;  %v6226_v58 = vpack.c.bf16 %v6213_v31, %v6213_v31 }
 0x563   : > { %6873 = vmatpush.bf16.msra.mxu2 %v8766_v56 }
 0x564   : > { %6628 = vmatmul.bf16.vlgmr.msra.gmra.mxu1 %v6226_v58  ;;  %v6196_v36 = vld [vmem:[#allocation6 + $0xc] ss:$2 sm:$0x3]  ;;  %v6204_v38 = vld [vmem:[#allocation6 + $0xd] ss:$2 sm:$0x3] }
 0x565   : > { %v6208_v10 = vmax.f32 %v6196_v36, %v6204_v38  ;;  %6860 = vmatpush.bf16.msra.mxu1 %v8758_v50 }
 0x567   : > { %v6220_v18 = vrot.slane %v6208_v10, 7  ;;  %v6224_v63 = vsel %vm6212_vm13, %v6208_v10, %v6223_v28  ;;  %6874 = vmatpush.bf16.msra.mxu2 %v8765_v21 }
 0x568   : > { %v6229_v3 = vpack.c.bf16 %v6224_v63, %v6224_v63 }
 0x569   : > { %v6221_v9 = vsel %vm6212_vm13, %v6220_v18, %v6206_v42  ;;  %6861 = vmatpush.bf16.msra.mxu1 %v8757_v47 }
 0x56a   : > { %6667 = vmatmul.bf16.vlgmr.msrb.gmra.mxu0 %v6229_v3  ;;  %v6228_v27 = vpack.c.bf16 %v6221_v9, %v6221_v9 }
 0x56b   : > { %6875 = vmatpush.bf16.msra.mxu2 %v8764_v0 }
 0x56c   : > { %6654 = vmatmul.bf16.vlgmr.msra.gmra.mxu3 %v6228_v27 }
 0x56d   : > { %6862 = vmatpush.bf16.msra.mxu1 %v8756_v40 }
 0x56f   : > { %6876 = vmatpush.bf16.msra.mxu2 %v8763_v25 }
 0x571   : > { %6863 = vmatpush.bf16.msra.mxu1 %v8755_v5 }
 0x572   : > { %6693 = vmatmul.bf16.vlgmr.msrb.gmra.mxu2 %v6227_v11 }
 0x573   : > { %6877 = vmatpush.bf16.msra.mxu2 %v8762_v2 }
 0x574   : > { %6680 = vmatmul.bf16.vlgmr.msrb.gmra.mxu1 %v6226_v58 }
 0x575   : > { %6864 = vmatpush.bf16.msra.mxu1 %v8754_v44 }
 0x577   : > { %6878 = vmatpush.bf16.msra.mxu2 %v8761_v55 }
 0x579   : > { %6865 = vmatpush.bf16.msra.mxu1 %v8753_v8 }
 0x57a   : > { %6719 = vmatmul.bf16.vlgmr.msra.gmra.mxu0 %v6229_v3 }
 0x57b   : > { %6879 = vmatpush.bf16.msra.mxu2 %v8760_v29 }
 0x57c   : > { %6706 = vmatmul.bf16.vlgmr.msrb.gmra.mxu3 %v6228_v27 }
 0x57d   : > { %6866 = vmatpush.bf16.msra.mxu1 %v8752_v39 }
 0x57f   : > { %6880 = vmatpush.bf16.msra.mxu2 %v8759_v53 }
 0x581   : > { %6867 = vmatpush.bf16.msra.mxu1 %v8751_v16 }
 0x5e1   : > { %v6629_v19 = vpop.f32.mrf.mxu1 }
 0x5e2   : > { %v6630_v23 = vadd.f32 %v6629_v19, %v6296_v45 }
 0x5e5   : > { %v6642_v60 = vpop.f32.mrf.mxu2 }
 0x5e6   : > { %v6643_v24 = vadd.f32 %v6642_v60, %v6630_v23 }
 0x5e7   : > { %v6668_v43 = vpop.f32.mrf.mxu0 }
 0x5e9   : > { %v6631_v33 = vpop.f32.mrf.mxu1 }
 0x5ed   : > { %v6644_v54 = vpop.f32.mrf.mxu2 }
 0x5ef   : > { %v6655_v37 = vpop.f32.mrf.mxu3  ;;  %v6670_v15 = vpop.f32.mrf.mxu0 }
 0x5f0   : > { %v6656_v52 = vadd.f32 %v6655_v37, %v6643_v24 }
 0x5f1   : > { %v6681_v7 = vpop.f32.mrf.mxu1 }
 0x5f2   : > { %v6669_v35 = vadd.f32 %v6668_v43, %v6656_v52  ;;  %v6682_v49 = vadd.f32 %v6681_v7, %v6297_v34 }
 0x5f4   : > { %v6724_v48 = vmax.f32 %v6669_v35, 0.0 }
 0x5f5   : > { %v6694_v62 = vpop.f32.mrf.mxu2 }
 0x5f6   : > { %v6726_v22 = vpack.c.bf16 %v6724_v48, %v6724_v48  ;;  %v6695_v6 = vadd.f32 %v6694_v62, %v6682_v49 }
 0x5f7   : > { %v6657_v14 = vpop.f32.mrf.mxu3  ;;  %v6720_v30 = vpop.f32.mrf.mxu0 }
 0x5f8   : > { %6868 = vmatmul.bf16.vlgmr.msra.gmra.mxu1 %v6726_v22 }
 0x5f9   : > { %v6683_v59 = vpop.f32.mrf.mxu1 }
 0x5fd   : > { %v6696_v46 = vpop.f32.mrf.mxu2 }
 0x5ff   : > { %v6707_v1 = vpop.f32.mrf.mxu3  ;;  %v6722_v61 = vpop.f32.mrf.mxu0 }
 0x600   : > { %v6708_v57 = vadd.f32 %v6707_v1, %v6695_v6 }
 0x602   : > { %v6721_v20 = vadd.f32 %v6720_v30, %v6708_v57 }
 0x604   : > { %v6725_v4 = vmax.f32 %v6721_v20, 0.0 }
 0x606   : > { %v6727_v26 = vpack.c.bf16 %v6725_v4, %v6725_v4 }
 0x607   : > { %v6709_v41 = vpop.f32.mrf.mxu3 }
 0x608   : > { %6881 = vmatmul.bf16.vlgmr.msra.gmra.mxu2 %v6727_v26 }
 0x675   : > { %v6869_v11 = vpop.f32.mrf.mxu1 }
 0x676   : > { %v6870_v17 = vadd.f32 %v8810_v12, %v6869_v11 }
 0x67d   : > { %v6871_v32 = vpop.f32.mrf.mxu1 }
 0x68b   : > { %v6882_v31 = vpop.f32.mrf.mxu2 }
 0x68c   : > { %v6883_v42 = vadd.f32 %v6882_v31, %v6870_v17 }
 0x68e   : > { %6886 = vst [vmem:[%s382_s14] sm:$0x3] %v6883_v42 }
 0x68f   : > { %8839 = shalt.err (!%p8836_p3)
}
 0x690   : > { %8767 = dma.vmem_to_hbm [thread:$0]  (%p8972_p5), %s6901_s15, 32, %s6903_s21, %s6888_s16  }
 0x693   : > { %v6884_v50 = vpop.f32.mrf.mxu2 }
 0x694 PF: > { %p8773_p4 = scmp.ge.s32.totalorder %s8874_s20, 2  ;;  %s6914_s22 = sand.u32 1, %s8862_s17  }
 0x695   : > { %s6915_s26 = scalar_lea.sflag [#allocation8], %s6914_s22 }
 0x696   : > { %p8770_p7 = pnand %p8773_p4, %p8976_p6 }
 0x698   : > { %p8771_p8 = pneg %p8770_p7 }
 0x69a   : > { %8857 = dma.done.wait (%p8771_p8), %s6915_s26, 32  }
 0x69b   : > { %8859 = vsyncadd (%p8771_p8), %s6915_s26, 4294967264  ;;  %s11111_s0 = sld [smem:[#allocation10_spill]]  ;;  %p21_p9 = scmp.ge.s32.totalorder %s8960_s23, 4  }
 0x69c   : > { %s11112_s17 = smov %s8866_s18  ;;  %s11113_s18 = smov %s8870_s19 }
 0x69d   : > { %s11115_s20 = smov %s8960_s23  ;;  %23 = sbr.rel (!%p21_p9) target bundleno = 6 (0x6), region = 235 }
 0x6a1   : > { %s11114_s19 = smov %s11111_s0 }
 0x6a2   :  { %6921 = vsyncpa [#allocation8], 1 }
 0x6a3   :  { %6923 = vsyncpa [#allocation8 + $0x1], 1 }

</bundles_post_ra>
